<compile_context>
chip_gen: v5e
topology: v5e:2x2
jax: 0.10.0
libtpu: 0.0.40
codegen_flags: <defaults>
</compile_context>

<pallas_src>
import functools

import jax
import jax.numpy as jnp
from jax.experimental import pallas as pl
from jax.experimental.pallas import tpu as pltpu


def _round_up(x, m):
    return (x + m - 1) // m * m


def _pick_batch_tile(batch, num_points, target_rows=2048):
    """Batch tile: multiple of 8, sized so tile*num_points ~ target_rows."""
    tb = max(8, (target_rows // max(num_points, 1)) // 8 * 8)
    return min(tb, _round_up(batch, 8))


# ---------------------------------------------------------------------------
# Fused kernel: two PointNet streams + max-pool + fuse FC + points_fc +
# states_fc + ReLU + L2-normalize + final concat.
# ---------------------------------------------------------------------------
def _state_pointcloud_kernel(
    obj_ref, tgt_ref, sg_ref,
    w1_ref, b1_ref, w2_ref, b2_ref, w3_ref, b3_ref,
    wf_ref, bf_ref, wp_ref, bp_ref, ws_ref, bs_ref,
    out_ref,
    *, num_points: int, batch_tile: int,
):
    f32 = jnp.float32

    def linear(x, w_ref, b_ref, relu=True):
        y = jnp.dot(x, w_ref[...], preferred_element_type=f32) + b_ref[...]
        if relu:
            y = jnp.maximum(y, 0.0)
        return y

    def l2_normalize(x, eps=1e-12):          # matches F.normalize(dim=-1)
        norm = jnp.sqrt(jnp.sum(x * x, axis=-1, keepdims=True))
        return x / jnp.maximum(norm, eps)

    def stream_feature(pts2d):                # (batch_tile*num_points, 6)
        h = linear(pts2d, w1_ref, b1_ref)     # -> 64
        h = linear(h, w2_ref, b2_ref)         # -> 128
        h = linear(h, w3_ref, b3_ref)         # -> D
        h = h.reshape(batch_tile, num_points, h.shape[-1])
        return jnp.max(h, axis=1)             # max-pool over points -> (tb, D)

    f_obj = stream_feature(obj_ref[...].astype(f32))
    f_tgt = stream_feature(tgt_ref[...].astype(f32))

    pn = linear(jnp.concatenate([f_obj, f_tgt], axis=-1), wf_ref, bf_ref)
    points_feat = l2_normalize(linear(pn, wp_ref, bp_ref))
    states_feat = l2_normalize(linear(sg_ref[...].astype(f32), ws_ref, bs_ref))

    out_ref[...] = jnp.concatenate([states_feat, points_feat],
                                   axis=-1).astype(out_ref.dtype)


# ---------------------------------------------------------------------------
# Wrapper
# ---------------------------------------------------------------------------
def state_pointcloud_forward(params, obj_pts, tgt_pts, states_goal,
                             *, batch_tile=None):
    B, N, C = obj_pts.shape
    assert C == 6 and tgt_pts.shape == (B, N, 6)
    assert N % 8 == 0, "num_points must be a multiple of 8 (sublane tiling)"
    S = states_goal.shape[1]
    D = params["points_fc"][0].shape[1]

    tb = _pick_batch_tile(B, N) if batch_tile is None else batch_tile
    Bp = _round_up(B, tb)                 # ragged batch -> zero-pad, slice later
    Spad = _round_up(S, 128)              # lane-dense states input

    obj_p = jnp.pad(obj_pts, ((0, Bp - B), (0, 0), (0, 0)))
    tgt_p = jnp.pad(tgt_pts, ((0, Bp - B), (0, 0), (0, 0)))
    sg_p = jnp.pad(states_goal, ((0, Bp - B), (0, Spad - S)))
    obj2d = obj_p.reshape(Bp * N, 6)      # per-point rows; 1x1 conv == linear
    tgt2d = tgt_p.reshape(Bp * N, 6)

    w1, b1 = params["pn1"]
    w2, b2 = params["pn2"]
    w3, b3 = params["pn3"]
    wf, bf = params["fuse"]
    wp, bp = params["points_fc"]
    ws, bs = params["states_fc"]
    ws_p = jnp.pad(ws, ((0, Spad - S), (0, 0)))   # zero rows for padded lanes

    def _resident(a):  # full-array block, constant index -> stays in VMEM
        return pl.BlockSpec(a.shape, lambda i, _nd=a.ndim: (0,) * _nd)

    kernel = functools.partial(_state_pointcloud_kernel,
                               num_points=N, batch_tile=tb)

    out = pl.pallas_call(
        kernel,
        out_shape=jax.ShapeDtypeStruct((Bp, 2 * D), jnp.float32),
        grid=(Bp // tb,),
        in_specs=[
            pl.BlockSpec((tb * N, 6), lambda i: (i, 0)),    # object points+normals
            pl.BlockSpec((tb * N, 6), lambda i: (i, 0)),    # target points+normals
            pl.BlockSpec((tb, Spad), lambda i: (i, 0)),     # [minimal_obs, goal]
            _resident(w1), _resident(b1),
            _resident(w2), _resident(b2),
            _resident(w3), _resident(b3),
            _resident(wf), _resident(bf),
            _resident(wp), _resident(bp),
            _resident(ws_p), _resident(bs),
        ],
        out_specs=pl.BlockSpec((tb, 2 * D), lambda i: (i, 0)),
        compiler_params=pltpu.CompilerParams(
            dimension_semantics=("parallel",),          # batch tiles independent
            vmem_limit_bytes=32 * 1024 * 1024,          # safe on v5e/v6e/v7x
        ),
    )(obj2d, tgt2d, sg_p, w1, b1, w2, b2, w3, b3, wf, bf, wp, bp, ws_p, bs)
    return out[:B]


# ---------------------------------------------------------------------------
# Parameter init (deterministic, nn.Linear-style uniform).
# ---------------------------------------------------------------------------
def init_params(key, state_dim, pointnet_output_dim, dtype=jnp.float32):
    D = pointnet_output_dim
    dims = {
        "pn1": (6, 64),
        "pn2": (64, 128),
        "pn3": (128, D),
        "fuse": (2 * D, D),
        "points_fc": (D, D),
        "states_fc": (state_dim, D),
    }
    params = {}
    for name, (di, do) in dims.items():
        key, kw, kb = jax.random.split(key, 3)
        bound = 1.0 / float(di) ** 0.5
        params[name] = (
            jax.random.uniform(kw, (di, do), dtype, -bound, bound),
            jax.random.uniform(kb, (1, do), dtype, -bound, bound),
        )
    return params


# ---------------------------------------------------------------------------
# Pure-JAX reference.
# ---------------------------------------------------------------------------
def state_pointcloud_ref(params, obj_pts, tgt_pts, states_goal):
    def lin(x, wb, relu=True):
        w, b = wb
        y = x @ w + b
        return jnp.maximum(y, 0.0) if relu else y

    def l2n(x, eps=1e-12):
        n = jnp.sqrt(jnp.sum(x * x, axis=-1, keepdims=True))
        return x / jnp.maximum(n, eps)

    def stream(p):
        Bb, N, _ = p.shape
        h = p.reshape(Bb * N, 6)
        h = lin(h, params["pn1"])
        h = lin(h, params["pn2"])
        h = lin(h, params["pn3"])
        return jnp.max(h.reshape(Bb, N, -1), axis=1)

    pn = lin(jnp.concatenate([stream(obj_pts), stream(tgt_pts)], -1),
             params["fuse"])
    points_feat = l2n(lin(pn, params["points_fc"]))
    states_feat = l2n(lin(states_goal, params["states_fc"]))
    return jnp.concatenate([states_feat, points_feat], axis=-1)


# ---------------------------------------------------------------------------
# flat2dict equivalent (args.flat2dict in the PyTorch module).
# ---------------------------------------------------------------------------
def make_flat2dict(minimal_dim, goal_dim, num_points):
    sizes = {
        "minimal_obs": minimal_dim,
        "desired_goal": goal_dim,
        "object_points": num_points * 3,
        "object_normals": num_points * 3,
        "target_points": num_points * 3,
        "target_normals": num_points * 3,
    }

    def flat2dict(x):
        out, off = {}, 0
        for k, s in sizes.items():
            out[k] = x[:, off:off + s]
            off += s
        return out

    return flat2dict, sum(sizes.values())


if __name__ == "__main__":
    key = jax.random.PRNGKey(0)

    batch = 2
    num_points = 64
    pointnet_output_dim = 128
    minimal_dim, goal_dim = 13, 7
    state_dim = minimal_dim + goal_dim

    flat2dict, flat_dim = make_flat2dict(minimal_dim, goal_dim, num_points)

    k_params, k_x = jax.random.split(key)
    params = init_params(k_params, state_dim, pointnet_output_dim)
    x = jax.random.normal(k_x, (batch, flat_dim), jnp.float32)

    obs = flat2dict(x)
    B = x.shape[0]
    obj_pts = jnp.concatenate(
        [obs["object_points"].reshape(B, num_points, 3),
         obs["object_normals"].reshape(B, num_points, 3)], axis=-1)
    tgt_pts = jnp.concatenate(
        [obs["target_points"].reshape(B, num_points, 3),
         obs["target_normals"].reshape(B, num_points, 3)], axis=-1)
    # PyTorch's transpose(2, 1) only adapts to Conv1d's (B, C, N) layout; a
    # 1x1 Conv1d is a per-point Linear, so we keep (B, N, 6) directly.
    states_goal = jnp.concatenate([obs["minimal_obs"], obs["desired_goal"]],
                                  axis=-1)

    y = state_pointcloud_forward(params, obj_pts, tgt_pts, states_goal)
    y = jax.block_until_ready(y)

    y_ref = state_pointcloud_ref(params, obj_pts, tgt_pts, states_goal)
    assert y.shape == (batch, 2 * pointnet_output_dim), y.shape
    assert jnp.allclose(y, y_ref, atol=1e-4, rtol=1e-4), \
        float(jnp.max(jnp.abs(y - y_ref)))

    print("KERNEL_OK")
</pallas_src>

<mosaic_0001>
module attributes {stable_mosaic.version = 11 : i64} {
  func.func @_state_pointcloud_kernel(%arg0: i32, %arg1: memref<512x6xf32, #tpu.memory_space<vmem>>, %arg2: memref<512x6xf32, #tpu.memory_space<vmem>>, %arg3: memref<8x128xf32, #tpu.memory_space<vmem>>, %arg4: memref<6x64xf32, #tpu.memory_space<vmem>>, %arg5: memref<1x64xf32, #tpu.memory_space<vmem>>, %arg6: memref<64x128xf32, #tpu.memory_space<vmem>>, %arg7: memref<1x128xf32, #tpu.memory_space<vmem>>, %arg8: memref<128x128xf32, #tpu.memory_space<vmem>>, %arg9: memref<1x128xf32, #tpu.memory_space<vmem>>, %arg10: memref<256x128xf32, #tpu.memory_space<vmem>>, %arg11: memref<1x128xf32, #tpu.memory_space<vmem>>, %arg12: memref<128x128xf32, #tpu.memory_space<vmem>>, %arg13: memref<1x128xf32, #tpu.memory_space<vmem>>, %arg14: memref<128x128xf32, #tpu.memory_space<vmem>>, %arg15: memref<1x128xf32, #tpu.memory_space<vmem>>, %arg16: memref<8x256xf32, #tpu.memory_space<vmem>>) attributes {dimension_semantics = [#tpu.dimension_semantics<parallel>], iteration_bounds = array<i64: 1>, scalar_prefetch = 0 : i64, scratch_operands = 0 : i64, tpu.core_type = #tpu.core_type<tc>, window_params = [{transform_indices = @transform_0, window_bounds = array<i64: 512, 6>}, {transform_indices = @transform_1, window_bounds = array<i64: 512, 6>}, {transform_indices = @transform_2, window_bounds = array<i64: 8, 128>}, {pipeline_mode = #tpu.pipeline_mode<synchronous>, transform_indices = @transform_3, window_bounds = array<i64: 6, 64>}, {pipeline_mode = #tpu.pipeline_mode<synchronous>, transform_indices = @transform_4, window_bounds = array<i64: 1, 64>}, {pipeline_mode = #tpu.pipeline_mode<synchronous>, transform_indices = @transform_5, window_bounds = array<i64: 64, 128>}, {pipeline_mode = #tpu.pipeline_mode<synchronous>, transform_indices = @transform_6, window_bounds = array<i64: 1, 128>}, {pipeline_mode = #tpu.pipeline_mode<synchronous>, transform_indices = @transform_7, window_bounds = array<i64: 128, 128>}, {pipeline_mode = #tpu.pipeline_mode<synchronous>, transform_indices = @transform_8, window_bounds = array<i64: 1, 128>}, {pipeline_mode = #tpu.pipeline_mode<synchronous>, transform_indices = @transform_9, window_bounds = array<i64: 256, 128>}, {pipeline_mode = #tpu.pipeline_mode<synchronous>, transform_indices = @transform_10, window_bounds = array<i64: 1, 128>}, {pipeline_mode = #tpu.pipeline_mode<synchronous>, transform_indices = @transform_11, window_bounds = array<i64: 128, 128>}, {pipeline_mode = #tpu.pipeline_mode<synchronous>, transform_indices = @transform_12, window_bounds = array<i64: 1, 128>}, {pipeline_mode = #tpu.pipeline_mode<synchronous>, transform_indices = @transform_13, window_bounds = array<i64: 128, 128>}, {pipeline_mode = #tpu.pipeline_mode<synchronous>, transform_indices = @transform_14, window_bounds = array<i64: 1, 128>}, {transform_indices = @transform_15, window_bounds = array<i64: 8, 256>}]} {
    %c0 = arith.constant 0 : index
    %c0_0 = arith.constant 0 : index
    %0 = vector.load %arg1[%c0, %c0_0] : memref<512x6xf32, #tpu.memory_space<vmem>>, vector<512x6xf32>
    %c0_1 = arith.constant 0 : index
    %c0_2 = arith.constant 0 : index
    %1 = vector.load %arg4[%c0_1, %c0_2] : memref<6x64xf32, #tpu.memory_space<vmem>>, vector<6x64xf32>
    %cst = arith.constant dense<0.000000e+00> : vector<512x64xf32>
    %2 = tpu.matmul %0, %1, %cst {dimension_numbers = #tpu.dot_dimension_numbers<[1], [0], [0], [1], [0, 0, 1, 1], [], []>} : vector<512x6xf32>, vector<6x64xf32>, vector<512x64xf32> -> vector<512x64xf32>
    %c0_3 = arith.constant 0 : index
    %c0_4 = arith.constant 0 : index
    %3 = vector.load %arg5[%c0_3, %c0_4] : memref<1x64xf32, #tpu.memory_space<vmem>>, vector<1x64xf32>
    %4 = vector.broadcast %3 : vector<1x64xf32> to vector<512x64xf32>
    %5 = arith.addf %2, %4 : vector<512x64xf32>
    %cst_5 = arith.constant 0.000000e+00 : f32
    %6 = vector.broadcast %cst_5 : f32 to vector<512x64xf32>
    %7 = arith.maximumf %5, %6 : vector<512x64xf32>
    %c0_6 = arith.constant 0 : index
    %c0_7 = arith.constant 0 : index
    %8 = vector.load %arg6[%c0_6, %c0_7] : memref<64x128xf32, #tpu.memory_space<vmem>>, vector<64x128xf32>
    %cst_8 = arith.constant dense<0.000000e+00> : vector<512x128xf32>
    %9 = tpu.matmul %7, %8, %cst_8 {dimension_numbers = #tpu.dot_dimension_numbers<[1], [0], [0], [1], [0, 0, 1, 1], [], []>} : vector<512x64xf32>, vector<64x128xf32>, vector<512x128xf32> -> vector<512x128xf32>
    %c0_9 = arith.constant 0 : index
    %c0_10 = arith.constant 0 : index
    %10 = vector.load %arg7[%c0_9, %c0_10] : memref<1x128xf32, #tpu.memory_space<vmem>>, vector<1x128xf32>
    %11 = vector.broadcast %10 : vector<1x128xf32> to vector<512x128xf32>
    %12 = arith.addf %9, %11 : vector<512x128xf32>
    %cst_11 = arith.constant 0.000000e+00 : f32
    %13 = vector.broadcast %cst_11 : f32 to vector<512x128xf32>
    %14 = arith.maximumf %12, %13 : vector<512x128xf32>
    %c0_12 = arith.constant 0 : index
    %c0_13 = arith.constant 0 : index
    %15 = vector.load %arg8[%c0_12, %c0_13] : memref<128x128xf32, #tpu.memory_space<vmem>>, vector<128x128xf32>
    %cst_14 = arith.constant dense<0.000000e+00> : vector<512x128xf32>
    %16 = tpu.matmul %14, %15, %cst_14 {dimension_numbers = #tpu.dot_dimension_numbers<[1], [0], [0], [1], [0, 0, 1, 1], [], []>} : vector<512x128xf32>, vector<128x128xf32>, vector<512x128xf32> -> vector<512x128xf32>
    %c0_15 = arith.constant 0 : index
    %c0_16 = arith.constant 0 : index
    %17 = vector.load %arg9[%c0_15, %c0_16] : memref<1x128xf32, #tpu.memory_space<vmem>>, vector<1x128xf32>
    %18 = vector.broadcast %17 : vector<1x128xf32> to vector<512x128xf32>
    %19 = arith.addf %16, %18 : vector<512x128xf32>
    %cst_17 = arith.constant 0.000000e+00 : f32
    %20 = vector.broadcast %cst_17 : f32 to vector<512x128xf32>
    %21 = arith.maximumf %19, %20 : vector<512x128xf32>
    %22 = vector.shape_cast %21 : vector<512x128xf32> to vector<8x64x128xf32>
    %cst_18 = arith.constant dense<0xFF800000> : vector<8x128xf32>
    %23 = vector.multi_reduction <maximumf>, %22, %cst_18 [1] : vector<8x64x128xf32> to vector<8x128xf32>
    %c0_19 = arith.constant 0 : index
    %c0_20 = arith.constant 0 : index
    %24 = vector.load %arg2[%c0_19, %c0_20] : memref<512x6xf32, #tpu.memory_space<vmem>>, vector<512x6xf32>
    %c0_21 = arith.constant 0 : index
    %c0_22 = arith.constant 0 : index
    %25 = vector.load %arg4[%c0_21, %c0_22] : memref<6x64xf32, #tpu.memory_space<vmem>>, vector<6x64xf32>
    %cst_23 = arith.constant dense<0.000000e+00> : vector<512x64xf32>
    %26 = tpu.matmul %24, %25, %cst_23 {dimension_numbers = #tpu.dot_dimension_numbers<[1], [0], [0], [1], [0, 0, 1, 1], [], []>} : vector<512x6xf32>, vector<6x64xf32>, vector<512x64xf32> -> vector<512x64xf32>
    %c0_24 = arith.constant 0 : index
    %c0_25 = arith.constant 0 : index
    %27 = vector.load %arg5[%c0_24, %c0_25] : memref<1x64xf32, #tpu.memory_space<vmem>>, vector<1x64xf32>
    %28 = vector.broadcast %27 : vector<1x64xf32> to vector<512x64xf32>
    %29 = arith.addf %26, %28 : vector<512x64xf32>
    %cst_26 = arith.constant 0.000000e+00 : f32
    %30 = vector.broadcast %cst_26 : f32 to vector<512x64xf32>
    %31 = arith.maximumf %29, %30 : vector<512x64xf32>
    %c0_27 = arith.constant 0 : index
    %c0_28 = arith.constant 0 : index
    %32 = vector.load %arg6[%c0_27, %c0_28] : memref<64x128xf32, #tpu.memory_space<vmem>>, vector<64x128xf32>
    %cst_29 = arith.constant dense<0.000000e+00> : vector<512x128xf32>
    %33 = tpu.matmul %31, %32, %cst_29 {dimension_numbers = #tpu.dot_dimension_numbers<[1], [0], [0], [1], [0, 0, 1, 1], [], []>} : vector<512x64xf32>, vector<64x128xf32>, vector<512x128xf32> -> vector<512x128xf32>
    %c0_30 = arith.constant 0 : index
    %c0_31 = arith.constant 0 : index
    %34 = vector.load %arg7[%c0_30, %c0_31] : memref<1x128xf32, #tpu.memory_space<vmem>>, vector<1x128xf32>
    %35 = vector.broadcast %34 : vector<1x128xf32> to vector<512x128xf32>
    %36 = arith.addf %33, %35 : vector<512x128xf32>
    %cst_32 = arith.constant 0.000000e+00 : f32
    %37 = vector.broadcast %cst_32 : f32 to vector<512x128xf32>
    %38 = arith.maximumf %36, %37 : vector<512x128xf32>
    %c0_33 = arith.constant 0 : index
    %c0_34 = arith.constant 0 : index
    %39 = vector.load %arg8[%c0_33, %c0_34] : memref<128x128xf32, #tpu.memory_space<vmem>>, vector<128x128xf32>
    %cst_35 = arith.constant dense<0.000000e+00> : vector<512x128xf32>
    %40 = tpu.matmul %38, %39, %cst_35 {dimension_numbers = #tpu.dot_dimension_numbers<[1], [0], [0], [1], [0, 0, 1, 1], [], []>} : vector<512x128xf32>, vector<128x128xf32>, vector<512x128xf32> -> vector<512x128xf32>
    %c0_36 = arith.constant 0 : index
    %c0_37 = arith.constant 0 : index
    %41 = vector.load %arg9[%c0_36, %c0_37] : memref<1x128xf32, #tpu.memory_space<vmem>>, vector<1x128xf32>
    %42 = vector.broadcast %41 : vector<1x128xf32> to vector<512x128xf32>
    %43 = arith.addf %40, %42 : vector<512x128xf32>
    %cst_38 = arith.constant 0.000000e+00 : f32
    %44 = vector.broadcast %cst_38 : f32 to vector<512x128xf32>
    %45 = arith.maximumf %43, %44 : vector<512x128xf32>
    %46 = vector.shape_cast %45 : vector<512x128xf32> to vector<8x64x128xf32>
    %cst_39 = arith.constant dense<0xFF800000> : vector<8x128xf32>
    %47 = vector.multi_reduction <maximumf>, %46, %cst_39 [1] : vector<8x64x128xf32> to vector<8x128xf32>
    %48 = tpu.concatenate %23, %47 in 1 : vector<8x128xf32>, vector<8x128xf32> -> vector<8x256xf32>
    %c0_40 = arith.constant 0 : index
    %c0_41 = arith.constant 0 : index
    %49 = vector.load %arg10[%c0_40, %c0_41] : memref<256x128xf32, #tpu.memory_space<vmem>>, vector<256x128xf32>
    %cst_42 = arith.constant dense<0.000000e+00> : vector<8x128xf32>
    %50 = tpu.matmul %48, %49, %cst_42 {dimension_numbers = #tpu.dot_dimension_numbers<[1], [0], [0], [1], [0, 0, 1, 1], [], []>} : vector<8x256xf32>, vector<256x128xf32>, vector<8x128xf32> -> vector<8x128xf32>
    %c0_43 = arith.constant 0 : index
    %c0_44 = arith.constant 0 : index
    %51 = vector.load %arg11[%c0_43, %c0_44] : memref<1x128xf32, #tpu.memory_space<vmem>>, vector<1x128xf32>
    %52 = vector.broadcast %51 : vector<1x128xf32> to vector<8x128xf32>
    %53 = arith.addf %50, %52 : vector<8x128xf32>
    %cst_45 = arith.constant 0.000000e+00 : f32
    %54 = vector.broadcast %cst_45 : f32 to vector<8x128xf32>
    %55 = arith.maximumf %53, %54 : vector<8x128xf32>
    %c0_46 = arith.constant 0 : index
    %c0_47 = arith.constant 0 : index
    %56 = vector.load %arg12[%c0_46, %c0_47] : memref<128x128xf32, #tpu.memory_space<vmem>>, vector<128x128xf32>
    %cst_48 = arith.constant dense<0.000000e+00> : vector<8x128xf32>
    %57 = tpu.matmul %55, %56, %cst_48 {dimension_numbers = #tpu.dot_dimension_numbers<[1], [0], [0], [1], [0, 0, 1, 1], [], []>} : vector<8x128xf32>, vector<128x128xf32>, vector<8x128xf32> -> vector<8x128xf32>
    %c0_49 = arith.constant 0 : index
    %c0_50 = arith.constant 0 : index
    %58 = vector.load %arg13[%c0_49, %c0_50] : memref<1x128xf32, #tpu.memory_space<vmem>>, vector<1x128xf32>
    %59 = vector.broadcast %58 : vector<1x128xf32> to vector<8x128xf32>
    %60 = arith.addf %57, %59 : vector<8x128xf32>
    %cst_51 = arith.constant 0.000000e+00 : f32
    %61 = vector.broadcast %cst_51 : f32 to vector<8x128xf32>
    %62 = arith.maximumf %60, %61 : vector<8x128xf32>
    %63 = arith.mulf %62, %62 : vector<8x128xf32>
    %cst_52 = arith.constant dense<0.000000e+00> : vector<8xf32>
    %64 = vector.multi_reduction <add>, %63, %cst_52 [1] : vector<8x128xf32> to vector<8xf32>
    %65 = vector.shape_cast %64 : vector<8xf32> to vector<8x1xf32>
    %66 = math.sqrt %65 : vector<8x1xf32>
    %cst_53 = arith.constant 9.99999996E-13 : f32
    %67 = vector.broadcast %cst_53 : f32 to vector<8x1xf32>
    %68 = arith.maximumf %66, %67 : vector<8x1xf32>
    %69 = vector.broadcast %68 : vector<8x1xf32> to vector<8x128xf32>
    %70 = arith.divf %62, %69 : vector<8x128xf32>
    %c0_54 = arith.constant 0 : index
    %c0_55 = arith.constant 0 : index
    %71 = vector.load %arg3[%c0_54, %c0_55] : memref<8x128xf32, #tpu.memory_space<vmem>>, vector<8x128xf32>
    %c0_56 = arith.constant 0 : index
    %c0_57 = arith.constant 0 : index
    %72 = vector.load %arg14[%c0_56, %c0_57] : memref<128x128xf32, #tpu.memory_space<vmem>>, vector<128x128xf32>
    %cst_58 = arith.constant dense<0.000000e+00> : vector<8x128xf32>
    %73 = tpu.matmul %71, %72, %cst_58 {dimension_numbers = #tpu.dot_dimension_numbers<[1], [0], [0], [1], [0, 0, 1, 1], [], []>} : vector<8x128xf32>, vector<128x128xf32>, vector<8x128xf32> -> vector<8x128xf32>
    %c0_59 = arith.constant 0 : index
    %c0_60 = arith.constant 0 : index
    %74 = vector.load %arg15[%c0_59, %c0_60] : memref<1x128xf32, #tpu.memory_space<vmem>>, vector<1x128xf32>
    %75 = vector.broadcast %74 : vector<1x128xf32> to vector<8x128xf32>
    %76 = arith.addf %73, %75 : vector<8x128xf32>
    %cst_61 = arith.constant 0.000000e+00 : f32
    %77 = vector.broadcast %cst_61 : f32 to vector<8x128xf32>
    %78 = arith.maximumf %76, %77 : vector<8x128xf32>
    %79 = arith.mulf %78, %78 : vector<8x128xf32>
    %cst_62 = arith.constant dense<0.000000e+00> : vector<8xf32>
    %80 = vector.multi_reduction <add>, %79, %cst_62 [1] : vector<8x128xf32> to vector<8xf32>
    %81 = vector.shape_cast %80 : vector<8xf32> to vector<8x1xf32>
    %82 = math.sqrt %81 : vector<8x1xf32>
    %cst_63 = arith.constant 9.99999996E-13 : f32
    %83 = vector.broadcast %cst_63 : f32 to vector<8x1xf32>
    %84 = arith.maximumf %82, %83 : vector<8x1xf32>
    %85 = vector.broadcast %84 : vector<8x1xf32> to vector<8x128xf32>
    %86 = arith.divf %78, %85 : vector<8x128xf32>
    %87 = tpu.concatenate %86, %70 in 1 : vector<8x128xf32>, vector<8x128xf32> -> vector<8x256xf32>
    %c0_64 = arith.constant 0 : index
    %c0_65 = arith.constant 0 : index
    %88 = vector.load %arg16[%c0_64, %c0_65] : memref<8x256xf32, #tpu.memory_space<vmem>>, vector<8x256xf32>
    tpu.vector_store %arg16[%c0_64, %c0_65], %87 {strides = array<i32>} : memref<8x256xf32, #tpu.memory_space<vmem>>, vector<8x256xf32>,
    return
  }
  func.func @transform_0(%arg0: i32) -> (i32, i32) {
    %c0_i32 = arith.constant 0 : i32
    %c0_i32_0 = arith.constant 0 : i32
    return %arg0, %c0_i32 : i32, i32
  }
  func.func @transform_1(%arg0: i32) -> (i32, i32) {
    %c0_i32 = arith.constant 0 : i32
    %c0_i32_0 = arith.constant 0 : i32
    return %arg0, %c0_i32 : i32, i32
  }
  func.func @transform_2(%arg0: i32) -> (i32, i32) {
    %c0_i32 = arith.constant 0 : i32
    %c0_i32_0 = arith.constant 0 : i32
    return %arg0, %c0_i32 : i32, i32
  }
  func.func @transform_3(%arg0: i32) -> (i32, i32) {
    %c0_i32 = arith.constant 0 : i32
    %c0_i32_0 = arith.constant 0 : i32
    %c0_i32_1 = arith.constant 0 : i32
    return %c0_i32, %c0_i32_0 : i32, i32
  }
  func.func @transform_4(%arg0: i32) -> (i32, i32) {
    %c0_i32 = arith.constant 0 : i32
    %c0_i32_0 = arith.constant 0 : i32
    %c0_i32_1 = arith.constant 0 : i32
    return %c0_i32, %c0_i32_0 : i32, i32
  }
  func.func @transform_5(%arg0: i32) -> (i32, i32) {
    %c0_i32 = arith.constant 0 : i32
    %c0_i32_0 = arith.constant 0 : i32
    %c0_i32_1 = arith.constant 0 : i32
    return %c0_i32, %c0_i32_0 : i32, i32
  }
  func.func @transform_6(%arg0: i32) -> (i32, i32) {
    %c0_i32 = arith.constant 0 : i32
    %c0_i32_0 = arith.constant 0 : i32
    %c0_i32_1 = arith.constant 0 : i32
    return %c0_i32, %c0_i32_0 : i32, i32
  }
  func.func @transform_7(%arg0: i32) -> (i32, i32) {
    %c0_i32 = arith.constant 0 : i32
    %c0_i32_0 = arith.constant 0 : i32
    %c0_i32_1 = arith.constant 0 : i32
    return %c0_i32, %c0_i32_0 : i32, i32
  }
  func.func @transform_8(%arg0: i32) -> (i32, i32) {
    %c0_i32 = arith.constant 0 : i32
    %c0_i32_0 = arith.constant 0 : i32
    %c0_i32_1 = arith.constant 0 : i32
    return %c0_i32, %c0_i32_0 : i32, i32
  }
  func.func @transform_9(%arg0: i32) -> (i32, i32) {
    %c0_i32 = arith.constant 0 : i32
    %c0_i32_0 = arith.constant 0 : i32
    %c0_i32_1 = arith.constant 0 : i32
    return %c0_i32, %c0_i32_0 : i32, i32
  }
  func.func @transform_10(%arg0: i32) -> (i32, i32) {
    %c0_i32 = arith.constant 0 : i32
    %c0_i32_0 = arith.constant 0 : i32
    %c0_i32_1 = arith.constant 0 : i32
    return %c0_i32, %c0_i32_0 : i32, i32
  }
  func.func @transform_11(%arg0: i32) -> (i32, i32) {
    %c0_i32 = arith.constant 0 : i32
    %c0_i32_0 = arith.constant 0 : i32
    %c0_i32_1 = arith.constant 0 : i32
    return %c0_i32, %c0_i32_0 : i32, i32
  }
  func.func @transform_12(%arg0: i32) -> (i32, i32) {
    %c0_i32 = arith.constant 0 : i32
    %c0_i32_0 = arith.constant 0 : i32
    %c0_i32_1 = arith.constant 0 : i32
    return %c0_i32, %c0_i32_0 : i32, i32
  }
  func.func @transform_13(%arg0: i32) -> (i32, i32) {
    %c0_i32 = arith.constant 0 : i32
    %c0_i32_0 = arith.constant 0 : i32
    %c0_i32_1 = arith.constant 0 : i32
    return %c0_i32, %c0_i32_0 : i32, i32
  }
  func.func @transform_14(%arg0: i32) -> (i32, i32) {
    %c0_i32 = arith.constant 0 : i32
    %c0_i32_0 = arith.constant 0 : i32
    %c0_i32_1 = arith.constant 0 : i32
    return %c0_i32, %c0_i32_0 : i32, i32
  }
  func.func @transform_15(%arg0: i32) -> (i32, i32) {
    %c0_i32 = arith.constant 0 : i32
    %c0_i32_0 = arith.constant 0 : i32
    return %arg0, %c0_i32 : i32, i32
  }
}

</mosaic_0001>

<bundles_post_ra>
// kernel: tpu_custom_call.1
= control target key start
LH: loop header
LB: loop body
LE: loop exit
PB: predicated region body
PF: predicated region fallthrough
CT: control target
= control target key end

     0   :  { %vm313_vm0 = vcmask 1045504   ;;  %vm120_vm1 = vcmask 48128   ;;  %s5143_s0 = inlined_call_operand.vmem [shape: f32[512,6], index: 0, kind: input, shape index: {}]   ;;  %s5144_s1 = inlined_call_operand.vmem [shape: f32[512,6], index: 1, kind: input, shape index: {}]   ;;  %s5145_s2 = inlined_call_operand.vmem [shape: f32[8,128], index: 2, kind: input, shape index: {}]   ;;  %s5146_s3 = inlined_call_operand.vmem [shape: f32[6,64], index: 3, kind: input, shape index: {}]   ;;  %s5147_s4 = inlined_call_operand.vmem [shape: f32[1,64], index: 4, kind: input, shape index: {}]   ;;  %s5148_s5 = inlined_call_operand.vmem [shape: f32[64,128], index: 5, kind: input, shape index: {}]   ;;  %s5149_s6 = inlined_call_operand.vmem [shape: f32[1,128], index: 6, kind: input, shape index: {}]   ;;  %s5150_s7 = inlined_call_operand.vmem [shape: f32[128,128], index: 7, kind: input, shape index: {}]   ;;  %s5151_s8 = inlined_call_operand.vmem [shape: f32[1,128], index: 8, kind: input, shape index: {}]   ;;  %s5152_s9 = inlined_call_operand.vmem [shape: f32[256,128], index: 9, kind: input, shape index: {}]   ;;  %s5153_s10 = inlined_call_operand.vmem [shape: f32[1,128], index: 10, kind: input, shape index: {}]   ;;  %s5154_s11 = inlined_call_operand.vmem [shape: f32[128,128], index: 11, kind: input, shape index: {}]   ;;  %s5155_s12 = inlined_call_operand.vmem [shape: f32[1,128], index: 12, kind: input, shape index: {}]   ;;  %s5156_s13 = inlined_call_operand.vmem [shape: f32[128,128], index: 13, kind: input, shape index: {}]   ;;  %s5157_s14 = inlined_call_operand.vmem [shape: f32[1,128], index: 14, kind: input, shape index: {}]   ;;  %s5158_s15 = inlined_call_operand.hbm [shape: f32[8,256], index: 15, kind: output, shape index: {}]  }
   0x1   :  { %v3509_v0 = vld [vmem:[%s5146_s3] sm:$0x3f]  ;;  %v597_v2 = vld [vmem:[%s5148_s5 + $0x38] sm:$0xff]  ;;  %v596_v3 = vld [vmem:[%s5148_s5 + $0x30] sm:$0xff] }
   0x2   :  { %v87_v1 = vld [vmem:[%s5143_s0 + $0x120] sm:$0xff]  ;;  %3373 = vmatpush.msk.msra.mxu1 %vm313_vm0, %v3509_v0  ;;  %3115 = vmatpush.msk.msra.mxu0 %vm313_vm0, %v3509_v0 }
   0x3   :  { %3152 = vmatmul.msk.f32.vlgmr.msra.gmra.mxu1 %vm120_vm1, %v87_v1  ;;  %3374 = vmatpush.msk.msra.mxu3 %vm313_vm0, %v3509_v0 }
   0x4   :  { %2194 = vmatpush.msrb.mxu0 %v597_v2  ;;  %803 = vmatpush.msrb.mxu1 %v597_v2 }
   0x6   :  { %2195 = vmatpush.msrb.mxu0 %v596_v3  ;;  %804 = vmatpush.msrb.mxu1 %v596_v3 }
   0x7   :  { %20 = vsyncpa [#allocation3], 0  ;;  %v88_v4 = vld [vmem:[%s5143_s0 + $0x128] sm:$0xff]  ;;  %v89_v5 = vld [vmem:[%s5143_s0 + $0x130] sm:$0xff]  ;;  %vm602_vm2 = vcmask 523264   ;;  %vm2844_vm3 = vcmask 1041409  }
   0x8   :  { %v90_v6 = vld [vmem:[%s5143_s0 + $0x138] sm:$0xff]  ;;  %v595_v7 = vld [vmem:[%s5148_s5 + $0x28] sm:$0xff]  ;;  %v91_v8 = vld [vmem:[%s5143_s0 + $0x140] sm:$0xff]  ;;  %vm2846_vm4 = vcmask 1042434   ;;  %vm2848_vm5 = vcmask 1043459   ;;  %vm2850_vm6 = vcmask 1044484  }
   0x9   :  { %805 = vmatpush.msrb.mxu1 %v595_v7  ;;  %2196 = vmatpush.msrb.mxu0 %v595_v7  ;;  %v92_v9 = vld [vmem:[%s5143_s0 + $0x148] sm:$0xff]  ;;  %v93_v10 = vld [vmem:[%s5143_s0 + $0x150] sm:$0xff]  ;;  %v594_v11 = vld [vmem:[%s5148_s5 + $0x20] sm:$0xff]  ;;  %vm2852_vm7 = vcmask 1045509   ;;  %vm2854_vm8 = vcmask 1046534   ;;  %vm2856_vm9 = vcmask 1047559  }
   0xa   :  { %v94_v12 = vld [vmem:[%s5143_s0 + $0x158] sm:$0xff]  ;;  %v51_v13 = vld [vmem:[%s5143_s0] sm:$0xff]  ;;  %v52_v15 = vld [vmem:[%s5143_s0 + $0x8] sm:$0xff] }
   0xb   :  { %3153 = vmatmul.msk.f32.gmra.mxu1 %vm120_vm1, %v88_v4  ;;  %2197 = vmatpush.msrb.mxu0 %v594_v11  ;;  %v95_v14 = vld [vmem:[%s5143_s0 + $0x160] sm:$0xff]  ;;  %v96_v16 = vld [vmem:[%s5143_s0 + $0x168] sm:$0xff]  ;;  %v53_v17 = vld [vmem:[%s5143_s0 + $0x10] sm:$0xff] }
   0xc   :  { %806 = vmatpush.msrb.mxu1 %v594_v11  ;;  %3116 = vmatmul.msk.f32.vlgmr.msra.gmra.mxu0 %vm120_vm1, %v51_v13  ;;  %v97_v18 = vld [vmem:[%s5143_s0 + $0x170] sm:$0xff]  ;;  %v593_v19 = vld [vmem:[%s5148_s5 + $0x18] sm:$0xff]  ;;  %v99_v22 = vld [vmem:[%s5143_s0 + $0x180] sm:$0xff] }
   0xd   :  { %v54_v20 = vld [vmem:[%s5143_s0 + $0x18] sm:$0xff]  ;;  %2198 = vmatpush.msrb.mxu0 %v593_v19  ;;  %v55_v23 = vld [vmem:[%s5143_s0 + $0x20] sm:$0xff]  ;;  %v100_v24 = vld [vmem:[%s5143_s0 + $0x188] sm:$0xff] }
   0xe   :  { %807 = vmatpush.msrb.mxu1 %v593_v19  ;;  %v98_v21 = vld [vmem:[%s5143_s0 + $0x178] sm:$0xff]  ;;  %v56_v25 = vld [vmem:[%s5143_s0 + $0x28] sm:$0xff]  ;;  %v592_v26 = vld [vmem:[%s5148_s5 + $0x10] sm:$0xff] }
   0xf   :  { %2199 = vmatpush.msrb.mxu0 %v592_v26  ;;  %v101_v27 = vld [vmem:[%s5143_s0 + $0x190] sm:$0xff]  ;;  %v102_v29 = vld [vmem:[%s5143_s0 + $0x198] sm:$0xff]  ;;  %v103_v32 = vld [vmem:[%s5143_s0 + $0x1a0] sm:$0xff] }
  0x10   :  { %808 = vmatpush.msrb.mxu1 %v592_v26  ;;  %v57_v28 = vld [vmem:[%s5143_s0 + $0x30] sm:$0xff]  ;;  %v58_v30 = vld [vmem:[%s5143_s0 + $0x38] sm:$0xff]  ;;  %v59_v33 = vld [vmem:[%s5143_s0 + $0x40] sm:$0xff] }
  0x11   :  { %v104_v35 = vld [vmem:[%s5143_s0 + $0x1a8] sm:$0xff]  ;;  %v105_v39 = vld [vmem:[%s5143_s0 + $0x1b0] sm:$0xff]  ;;  %v106_v42 = vld [vmem:[%s5143_s0 + $0x1b8] sm:$0xff] }
  0x12   :  { %v60_v36 = vld [vmem:[%s5143_s0 + $0x48] sm:$0xff]  ;;  %v61_v40 = vld [vmem:[%s5143_s0 + $0x50] sm:$0xff]  ;;  %v62_v43 = vld [vmem:[%s5143_s0 + $0x58] sm:$0xff] }
  0x13   :  { %3154 = vmatmul.msk.f32.gmra.mxu1 %vm120_vm1, %v89_v5  ;;  %v591_v37 = vld [vmem:[%s5148_s5 + $0x8] sm:$0xff]  ;;  %v107_v45 = vld [vmem:[%s5143_s0 + $0x1c0] sm:$0xff]  ;;  %v109_v52 = vld [vmem:[%s5143_s0 + $0x1d0] sm:$0xff] }
  0x14   :  { %3117 = vmatmul.msk.f32.gmra.mxu0 %vm120_vm1, %v52_v15  ;;  %809 = vmatpush.msrb.mxu1 %v591_v37  ;;  %v63_v46 = vld [vmem:[%s5143_s0 + $0x60] sm:$0xff]  ;;  %v108_v49 = vld [vmem:[%s5143_s0 + $0x1c8] sm:$0xff]  ;;  %v65_v53 = vld [vmem:[%s5143_s0 + $0x70] sm:$0xff] }
  0x15   :  { %2200 = vmatpush.msrb.mxu0 %v591_v37  ;;  %v590_v47 = vld [vmem:[%s5148_s5] sm:$0xff]  ;;  %v64_v50 = vld [vmem:[%s5143_s0 + $0x68] sm:$0xff]  ;;  %v110_v55 = vld [vmem:[%s5143_s0 + $0x1d8] sm:$0xff] }
  0x16   :  { %810 = vmatpush.msrb.mxu1 %v590_v47  ;;  %v66_v56 = vld [vmem:[%s5143_s0 + $0x78] sm:$0xff]  ;;  %v111_v59 = vld [vmem:[%s5143_s0 + $0x1e0] sm:$0xff]  ;;  %v112_v63 = vld [vmem:[%s5143_s0 + $0x1e8] sm:$0xff] }
  0x17   :  { %2201 = vmatpush.msrb.mxu0 %v590_v47  ;;  %v67_v60 = vld [vmem:[%s5143_s0 + $0x80] sm:$0xff]  ;;  %v68_v1 = vld [vmem:[%s5143_s0 + $0x88] sm:$0xff]  ;;  %v113_v4 = vld [vmem:[%s5143_s0 + $0x1f0] sm:$0xff] }
  0x18   :  { %v69_v5 = vld [vmem:[%s5143_s0 + $0x90] sm:$0xff]  ;;  %v71_v15 = vld [vmem:[%s5143_s0 + $0xa0] sm:$0xff] }
  0x19   :  { %v75_v37 = vld [vmem:[%s5143_s0 + $0xc0] sm:$0xff] }
  0x1b   :  { %3155 = vmatmul.msk.f32.gmra.mxu1 %vm120_vm1, %v90_v6 }
  0x1c   :  { %3118 = vmatmul.msk.f32.gmra.mxu0 %vm120_vm1, %v53_v17 }
  0x23   :  { %3156 = vmatmul.msk.f32.gmra.mxu1 %vm120_vm1, %v91_v8  ;;  %v114_v8 = vld [vmem:[%s5143_s0 + $0x1f8] sm:$0xff] }
  0x24   :  { %3119 = vmatmul.msk.f32.gmra.mxu0 %vm120_vm1, %v54_v20  ;;  %v72_v20 = vld [vmem:[%s5143_s0 + $0xa8] sm:$0xff] }
  0x2b   :  { %3157 = vmatmul.msk.f32.gmra.mxu1 %vm120_vm1, %v92_v9  ;;  %v70_v9 = vld [vmem:[%s5143_s0 + $0x98] sm:$0xff] }
  0x2c   :  { %3120 = vmatmul.msk.f32.gmra.mxu0 %vm120_vm1, %v55_v23 }
  0x33   :  { %3158 = vmatmul.msk.f32.gmra.mxu1 %vm120_vm1, %v93_v10  ;;  %v3758_v10 = vld [vmem:[%s5147_s4] ss:$0 sm:$0xff] }
  0x34   :  { %3121 = vmatmul.msk.f32.gmra.mxu0 %vm120_vm1, %v56_v25  ;;  %v73_v25 = vld [vmem:[%s5143_s0 + $0xb0] sm:$0xff] }
  0x3b   :  { %3159 = vmatmul.msk.f32.gmra.mxu1 %vm120_vm1, %v94_v12 }
  0x3c   :  { %3122 = vmatmul.msk.f32.gmra.mxu0 %vm120_vm1, %v57_v28 }
  0x43   :  { %3160 = vmatmul.msk.f32.gmra.mxu1 %vm120_vm1, %v95_v14 }
  0x44   :  { %3123 = vmatmul.msk.f32.gmra.mxu0 %vm120_vm1, %v58_v30  ;;  %v74_v30 = vld [vmem:[%s5143_s0 + $0xb8] sm:$0xff] }
  0x4b   :  { %3161 = vmatmul.msk.f32.gmra.mxu1 %vm120_vm1, %v96_v16 }
  0x4c   :  { %3124 = vmatmul.msk.f32.gmra.mxu0 %vm120_vm1, %v59_v33 }
  0x53   :  { %3162 = vmatmul.msk.f32.gmra.mxu1 %vm120_vm1, %v97_v18 }
  0x54   :  { %3125 = vmatmul.msk.f32.gmra.mxu0 %vm120_vm1, %v60_v36 }
  0x5b   :  { %3163 = vmatmul.msk.f32.gmra.mxu1 %vm120_vm1, %v98_v21 }
  0x5c   :  { %3126 = vmatmul.msk.f32.gmra.mxu0 %vm120_vm1, %v61_v40 }
  0x63   :  { %3164 = vmatmul.msk.f32.gmra.mxu1 %vm120_vm1, %v99_v22 }
  0x64   :  { %3127 = vmatmul.msk.f32.gmra.mxu0 %vm120_vm1, %v62_v43 }
  0x6b   :  { %3165 = vmatmul.msk.f32.gmra.mxu1 %vm120_vm1, %v100_v24 }
  0x6c   :  { %3128 = vmatmul.msk.f32.gmra.mxu0 %vm120_vm1, %v63_v46 }
  0x73   :  { %3166 = vmatmul.msk.f32.gmra.mxu1 %vm120_vm1, %v101_v27 }
  0x74   :  { %3129 = vmatmul.msk.f32.gmra.mxu0 %vm120_vm1, %v64_v50 }
  0x7b   :  { %3167 = vmatmul.msk.f32.gmra.mxu1 %vm120_vm1, %v102_v29 }
  0x7c   :  { %3130 = vmatmul.msk.f32.gmra.mxu0 %vm120_vm1, %v65_v53 }
  0x80   :  { %v3631_v31 = vpop.f32.mrf.mxu1 }
  0x83   :  { %3168 = vmatmul.msk.f32.gmra.mxu1 %vm120_vm1, %v103_v32 }
  0x84   :  { %3131 = vmatmul.msk.f32.gmra.mxu0 %vm120_vm1, %v66_v56 }
  0x88   :  { %v3641_v34 = vpop.f32.mrf.mxu1 }
  0x89   :  { %v334_v57 = vpop.f32.mrf.mxu0 }
  0x8a   :  { %v335_v11 = vadd.f32 %v3758_v10, %v334_v57 }
  0x8b   :  { %3169 = vmatmul.msk.f32.gmra.mxu1 %vm120_vm1, %v104_v35 }
  0x8c   :  { %3132 = vmatmul.msk.f32.gmra.mxu0 %vm120_vm1, %v67_v60  ;;  %v526_v13 = vmax.f32 %v335_v11, 0.0 }
  0x90   :  { %v3654_v38 = vpop.f32.mrf.mxu1 }
  0x91   :  { %v337_v61 = vpop.f32.mrf.mxu0 }
  0x92   :  { %v338_v16 = vadd.f32 %v3758_v10, %v337_v61 }
  0x93   :  { %3170 = vmatmul.msk.f32.gmra.mxu1 %vm120_vm1, %v105_v39 }
  0x94   :  { %3133 = vmatmul.msk.f32.gmra.mxu0 %vm120_vm1, %v68_v1  ;;  %v527_v18 = vmax.f32 %v338_v16, 0.0  ;;  %v1080_v16 = vld [vmem:[%s5150_s7 + $0x60] sm:$0xff] }
  0x98   :  { %v3664_v41 = vpop.f32.mrf.mxu1 }
  0x99   :  { %v340_v2 = vpop.f32.mrf.mxu0 }
  0x9a   :  { %v341_v21 = vadd.f32 %v3758_v10, %v340_v2  ;;  %v79_v2 = vld [vmem:[%s5143_s0 + $0xe0] sm:$0xff] }
  0x9b   :  { %3171 = vmatmul.msk.f32.gmra.mxu1 %vm120_vm1, %v106_v42 }
  0x9c   :  { %3134 = vmatmul.msk.f32.gmra.mxu0 %vm120_vm1, %v69_v5  ;;  %v528_v23 = vmax.f32 %v341_v21, 0.0  ;;  %v1083_v5 = vld [vmem:[%s5150_s7 + $0x78] sm:$0xff]  ;;  %v1078_v21 = vld [vmem:[%s5150_s7 + $0x50] sm:$0xff] }
  0x9d   :  { %1088 = vmatpush.msra.mxu2 %v1083_v5  ;;  %2459 = vmatpush.msrb.mxu3 %v1083_v5 }
  0xa0   :  { %v3674_v44 = vpop.f32.mrf.mxu1 }
  0xa1   :  { %v343_v6 = vpop.f32.mrf.mxu0 }
  0xa2   :  { %v344_v26 = vadd.f32 %v3758_v10, %v343_v6 }
  0xa3   :  { %3172 = vmatmul.msk.f32.gmra.mxu1 %vm120_vm1, %v107_v45  ;;  %v76_v45 = vld [vmem:[%s5143_s0 + $0xc8] sm:$0xff] }
  0xa4   :  { %3135 = vmatmul.msk.f32.gmra.mxu0 %vm120_vm1, %v70_v9  ;;  %v529_v28 = vmax.f32 %v344_v26, 0.0  ;;  %v1082_v9 = vld [vmem:[%s5150_s7 + $0x70] sm:$0xff] }
  0xa5   :  { %1089 = vmatpush.msra.mxu2 %v1082_v9  ;;  %2460 = vmatpush.msrb.mxu3 %v1082_v9 }
  0xa8   :  { %v3687_v48 = vpop.f32.mrf.mxu1 }
  0xa9   :  { %v346_v12 = vpop.f32.mrf.mxu0 }
  0xaa   :  { %v347_v32 = vadd.f32 %v3758_v10, %v346_v12  ;;  %v80_v12 = vld [vmem:[%s5143_s0 + $0xe8] sm:$0xff] }
  0xab   :  { %3173 = vmatmul.msk.f32.gmra.mxu1 %vm120_vm1, %v108_v49 }
  0xac   :  { %3136 = vmatmul.msk.f32.gmra.mxu0 %vm120_vm1, %v71_v15  ;;  %v530_v35 = vmax.f32 %v347_v32, 0.0 }
  0xb0   :  { %v3697_v51 = vpop.f32.mrf.mxu1 }
  0xb1   :  { %v349_v17 = vpop.f32.mrf.mxu0 }
  0xb2   :  { %v350_v39 = vadd.f32 %v3758_v10, %v349_v17  ;;  %v1079_v17 = vld [vmem:[%s5150_s7 + $0x58] sm:$0xff] }
  0xb3   :  { %3174 = vmatmul.msk.f32.gmra.mxu1 %vm120_vm1, %v109_v52  ;;  %v77_v52 = vld [vmem:[%s5143_s0 + $0xd0] sm:$0xff] }
  0xb4   :  { %3137 = vmatmul.msk.f32.gmra.mxu0 %vm120_vm1, %v72_v20  ;;  %v531_v42 = vmax.f32 %v350_v39, 0.0  ;;  %v1073_v39 = vld [vmem:[%s5150_s7 + $0x28] sm:$0xff] }
  0xb8   :  { %v3707_v54 = vpop.f32.mrf.mxu1 }
  0xb9   :  { %v352_v22 = vpop.f32.mrf.mxu0 }
  0xba   :  { %v353_v46 = vadd.f32 %v3758_v10, %v352_v22 }
  0xbb   :  { %3175 = vmatmul.msk.f32.gmra.mxu1 %vm120_vm1, %v110_v55 }
  0xbc   :  { %3138 = vmatmul.msk.f32.gmra.mxu0 %vm120_vm1, %v73_v25  ;;  %v532_v49 = vmax.f32 %v353_v46, 0.0  ;;  %v1077_v25 = vld [vmem:[%s5150_s7 + $0x48] sm:$0xff] }
  0xc0   :  { %v3717_v58 = vpop.f32.mrf.mxu1 }
  0xc1   :  { %v355_v27 = vpop.f32.mrf.mxu0 }
  0xc2   :  { %v356_v53 = vadd.f32 %v3758_v10, %v355_v27  ;;  %v1076_v27 = vld [vmem:[%s5150_s7 + $0x40] sm:$0xff] }
  0xc3   :  { %3176 = vmatmul.msk.f32.gmra.mxu1 %vm120_vm1, %v111_v59  ;;  %v78_v59 = vld [vmem:[%s5143_s0 + $0xd8] sm:$0xff] }
  0xc4   :  { %3139 = vmatmul.msk.f32.gmra.mxu0 %vm120_vm1, %v74_v30  ;;  %v533_v56 = vmax.f32 %v356_v53, 0.0  ;;  %v83_v53 = vld [vmem:[%s5143_s0 + $0x100] sm:$0xff] }
  0xc8   :  { %v3727_v62 = vpop.f32.mrf.mxu1 }
  0xc9   :  { %v358_v33 = vpop.f32.mrf.mxu0 }
  0xca   :  { %v359_v60 = vadd.f32 %v3758_v10, %v358_v33  ;;  %v1074_v33 = vld [vmem:[%s5150_s7 + $0x30] sm:$0xff] }
  0xcb   :  { %3177 = vmatmul.msk.f32.gmra.mxu1 %vm120_vm1, %v112_v63 }
  0xcc   :  { %3140 = vmatmul.msk.f32.gmra.mxu0 %vm120_vm1, %v75_v37  ;;  %v534_v63 = vmax.f32 %v359_v60, 0.0  ;;  %v82_v37 = vld [vmem:[%s5143_s0 + $0xf8] sm:$0xff] }
  0xd0   :  { %v3737_v3 = vpop.f32.mrf.mxu1 }
  0xd1   :  { %v361_v40 = vpop.f32.mrf.mxu0 }
  0xd3   :  { %3178 = vmatmul.msk.f32.gmra.mxu1 %vm120_vm1, %v113_v4  ;;  %v362_v4 = vadd.f32 %v3758_v10, %v361_v40 }
  0xd4   :  { %3141 = vmatmul.msk.f32.gmra.mxu0 %vm120_vm1, %v76_v45  ;;  %v1071_v45 = vld [vmem:[%s5150_s7 + $0x18] sm:$0xff] }
  0xd8   :  { %v3747_v7 = vpop.f32.mrf.mxu1 }
  0xd9   :  { %v364_v47 = vpop.f32.mrf.mxu0 }
  0xda   :  { %v365_v15 = vadd.f32 %v3758_v10, %v364_v47 }
  0xdb   :  { %3179 = vmatmul.msk.f32.gmra.mxu1 %vm120_vm1, %v114_v8  ;;  %v535_v8 = vmax.f32 %v362_v4, 0.0 }
  0xdc   :  { %3142 = vmatmul.msk.f32.gmra.mxu0 %vm120_vm1, %v77_v52  ;;  %v536_v20 = vmax.f32 %v365_v15, 0.0 }
  0xe0   :  { %v3763_v14 = vpop.f32.mrf.mxu1 }
  0xe1   :  { %v367_v55 = vpop.f32.mrf.mxu0 }
  0xe2   :  { %v368_v26 = vadd.f32 %v3758_v10, %v367_v55  ;;  %v1069_v55 = vld [vmem:[%s5150_s7 + $0x8] sm:$0xff] }
  0xe3   :  { %3180 = vmatmul.msk.f32.vlgmr.msrb.gmra.mxu1 %vm602_vm2, %v526_v13  ;;  %v1081_v13 = vld [vmem:[%s5150_s7 + $0x68] sm:$0xff] }
  0xe4   :  { %3143 = vmatmul.msk.f32.gmra.mxu0 %vm120_vm1, %v78_v59  ;;  %1090 = vmatpush.msra.mxu2 %v1081_v13  ;;  %v537_v32 = vmax.f32 %v368_v26, 0.0  ;;  %v1068_v59 = vld [vmem:[%s5150_s7] sm:$0xff] }
  0xe5   :  { %2461 = vmatpush.msrb.mxu3 %v1081_v13 }
  0xe6   :  { %1091 = vmatpush.msra.mxu2 %v1080_v16 }
  0xe7   :  { %2462 = vmatpush.msrb.mxu3 %v1080_v16  ;;  %v86_v16 = vld [vmem:[%s5143_s0 + $0x118] sm:$0xff] }
  0xe8   :  { %v3771_v19 = vpop.f32.mrf.mxu1  ;;  %1092 = vmatpush.msra.mxu2 %v1079_v17 }
  0xe9   :  { %v370_v61 = vpop.f32.mrf.mxu0  ;;  %2463 = vmatpush.msrb.mxu3 %v1079_v17 }
  0xea   :  { %1093 = vmatpush.msra.mxu2 %v1078_v21  ;;  %v371_v40 = vadd.f32 %v3758_v10, %v370_v61 }
  0xeb   :  { %3181 = vmatmul.msk.f32.gmra.mxu1 %vm602_vm2, %v527_v18  ;;  %2464 = vmatpush.msrb.mxu3 %v1078_v21 }
  0xec   :  { %3144 = vmatmul.msk.f32.gmra.mxu0 %vm120_vm1, %v79_v2  ;;  %1094 = vmatpush.msra.mxu2 %v1077_v25  ;;  %v538_v47 = vmax.f32 %v371_v40, 0.0  ;;  %v84_v2 = vld [vmem:[%s5143_s0 + $0x108] sm:$0xff] }
  0xed   :  { %2465 = vmatpush.msrb.mxu3 %v1077_v25 }
  0xee   :  { %1095 = vmatpush.msra.mxu2 %v1076_v27 }
  0xef   :  { %2466 = vmatpush.msrb.mxu3 %v1076_v27 }
  0xf0   :  { %v3779_v24 = vpop.f32.mrf.mxu1 }
  0xf1   :  { %v3838_v6 = vpop.f32.mrf.mxu0 }
  0xf3   :  { %3182 = vmatmul.msk.f32.gmra.mxu1 %vm602_vm2, %v528_v23  ;;  %v81_v23 = vld [vmem:[%s5143_s0 + $0xf0] sm:$0xff] }
  0xf4   :  { %3145 = vmatmul.msk.f32.gmra.mxu0 %vm120_vm1, %v80_v12 }
  0xf8   :  { %v3787_v29 = vpop.f32.mrf.mxu1 }
  0xf9   :  { %v3860_v18 = vpop.f32.mrf.mxu0 }
  0xfa   :  { %v377_v4 = vadd.f32 %v3758_v10, %v3860_v18  ;;  %v3950_v18 = vld [vmem:[%s5149_s6] ss:$0 sm:$0xff] }
  0xfb   :  { %3183 = vmatmul.msk.f32.gmra.mxu1 %vm602_vm2, %v529_v28  ;;  %v1075_v28 = vld [vmem:[%s5150_s7 + $0x38] sm:$0xff] }
  0xfc   :  { %3146 = vmatmul.msk.f32.gmra.mxu0 %vm120_vm1, %v81_v23  ;;  %1096 = vmatpush.msra.mxu2 %v1075_v28 }
  0xfd   :  { %2467 = vmatpush.msrb.mxu3 %v1075_v28 }
  0xfe   :  { %1097 = vmatpush.msra.mxu2 %v1074_v33 }
  0xff   :  { %2468 = vmatpush.msrb.mxu3 %v1074_v33 }
 0x100   :  { %v3795_v36 = vpop.f32.mrf.mxu1  ;;  %1098 = vmatpush.msra.mxu2 %v1073_v39 }
 0x101   :  { %v379_v30 = vpop.f32.mrf.mxu0  ;;  %2469 = vmatpush.msrb.mxu3 %v1073_v39 }
 0x102   :  { %v380_v9 = vadd.f32 %v3758_v10, %v379_v30 }
 0x103   :  { %3184 = vmatmul.msk.f32.gmra.mxu1 %vm602_vm2, %v530_v35 }
 0x104   :  { %3147 = vmatmul.msk.f32.gmra.mxu0 %vm120_vm1, %v82_v37  ;;  %v541_v13 = vmax.f32 %v380_v9, 0.0 }
 0x108   :  { %v3803_v43 = vpop.f32.mrf.mxu1 }
 0x109   :  { %v382_v46 = vpop.f32.mrf.mxu0 }
 0x10a   :  { %v383_v17 = vadd.f32 %v3758_v10, %v382_v46 }
 0x10b   :  { %3185 = vmatmul.msk.f32.gmra.mxu1 %vm602_vm2, %v531_v42  ;;  %v1072_v42 = vld [vmem:[%s5150_s7 + $0x20] sm:$0xff] }
 0x10c   :  { %1099 = vmatpush.msra.mxu2 %v1072_v42  ;;  %2470 = vmatpush.msrb.mxu3 %v1072_v42  ;;  %v542_v21 = vmax.f32 %v383_v17, 0.0 }
 0x10d   :  { %3148 = vmatmul.msk.f32.gmra.mxu0 %vm120_vm1, %v83_v53 }
 0x10e   :  { %1100 = vmatpush.msra.mxu2 %v1071_v45  ;;  %2471 = vmatpush.msrb.mxu3 %v1071_v45 }
 0x110   :  { %v3811_v50 = vpop.f32.mrf.mxu1 }
 0x111   :  { %v385_v60 = vpop.f32.mrf.mxu0 }
 0x112   :  { %v386_v27 = vadd.f32 %v3758_v10, %v385_v60 }
 0x113   :  { %3186 = vmatmul.msk.f32.gmra.mxu1 %vm602_vm2, %v532_v49  ;;  %v1070_v49 = vld [vmem:[%s5150_s7 + $0x10] sm:$0xff]  ;;  %s3106_s7 = sshll.u32 %s5158_s15, 4  ;;  %s3107_s7 = int_to_ptr.hbm [resolvable:$true] %s3106_s7 }
 0x114   :  { %1101 = vmatpush.msra.mxu2 %v1070_v49  ;;  %2472 = vmatpush.msrb.mxu3 %v1070_v49  ;;  %v543_v30 = vmax.f32 %v386_v27, 0.0 }
 0x115   :  { %3149 = vmatmul.msk.f32.gmra.mxu0 %vm120_vm1, %v84_v2 }
 0x116   :  { %1102 = vmatpush.msra.mxu2 %v1069_v55  ;;  %2473 = vmatpush.msrb.mxu3 %v1069_v55 }
 0x118   :  { %v3819_v57 = vpop.f32.mrf.mxu1  ;;  %1103 = vmatpush.msra.mxu2 %v1068_v59  ;;  %2474 = vmatpush.msrb.mxu3 %v1068_v59 }
 0x119   :  { %v388_v5 = vpop.f32.mrf.mxu0 }
 0x11a   :  { %3244 = vmatpush.msk.msrb.mxu2 %vm313_vm0, %v3509_v0  ;;  %v85_v0 = vld [vmem:[%s5143_s0 + $0x110] sm:$0xff]  ;;  %v389_v39 = vadd.f32 %v3758_v10, %v388_v5 }
 0x11b   :  { %3187 = vmatmul.msk.f32.gmra.mxu1 %vm602_vm2, %v533_v56  ;;  %v374_v56 = vadd.f32 %v3758_v10, %v3838_v6  ;;  %v540_v6 = vmax.f32 %v377_v4, 0.0 }
 0x11c   :  { %v544_v42 = vmax.f32 %v389_v39, 0.0 }
 0x11d   :  { %v539_v61 = vmax.f32 %v374_v56, 0.0  ;;  %3150 = vmatmul.msk.f32.gmra.mxu0 %vm120_vm1, %v85_v0 }
 0x120   :  { %v3827_v1 = vpop.f32.mrf.mxu1 }
 0x121   :  { %v391_v12 = vpop.f32.mrf.mxu0 }
 0x122   :  { %v392_v49 = vadd.f32 %v3758_v10, %v391_v12 }
 0x123   :  { %3188 = vmatmul.msk.f32.gmra.mxu1 %vm602_vm2, %v534_v63 }
 0x124   :  { %v545_v53 = vmax.f32 %v392_v49, 0.0 }
 0x125   :  { %3151 = vmatmul.msk.f32.gmra.mxu0 %vm120_vm1, %v86_v16 }
 0x128   :  { %v3843_v11 = vpop.f32.mrf.mxu1 }
 0x12b   :  { %3189 = vmatmul.msk.f32.gmra.mxu1 %vm602_vm2, %v535_v8 }
 0x130   :  { %v3865_v22 = vpop.f32.mrf.mxu1 }
 0x133   :  { %3190 = vmatmul.msk.f32.gmra.mxu1 %vm602_vm2, %v536_v20  ;;  %v394_v20 = vpop.f32.mrf.mxu0 }
 0x138   :  { %v3885_v35 = vpop.f32.mrf.mxu1 }
 0x13b   :  { %3191 = vmatmul.msk.f32.gmra.mxu1 %vm602_vm2, %v537_v32  ;;  %v397_v28 = vpop.f32.mrf.mxu0 }
 0x13c   :  { %v398_v9 = vadd.f32 %v3758_v10, %v397_v28 }
 0x13e   :  { %v547_v12 = vmax.f32 %v398_v9, 0.0 }
 0x140   :  { %v3905_v52 = vpop.f32.mrf.mxu1 }
 0x143   :  { %3192 = vmatmul.msk.f32.gmra.mxu1 %vm602_vm2, %v538_v47  ;;  %v400_v40 = vpop.f32.mrf.mxu0 }
 0x148   :  { %v3922_v63 = vpop.f32.mrf.mxu1 }
 0x14b   :  { %3193 = vmatmul.msk.f32.gmra.mxu1 %vm602_vm2, %v539_v61  ;;  %v403_v55 = vpop.f32.mrf.mxu0  ;;  %v395_v61 = vadd.f32 %v3758_v10, %v394_v20  ;;  %v401_v20 = vadd.f32 %v3758_v10, %v400_v40 }
 0x14c   :  { %v404_v28 = vadd.f32 %v3758_v10, %v403_v55 }
 0x14d   :  { %v546_v2 = vmax.f32 %v395_v61, 0.0 }
 0x150   :  { %v3931_v8 = vpop.f32.mrf.mxu1 }
 0x153   :  { %3194 = vmatmul.msk.f32.gmra.mxu1 %vm602_vm2, %v540_v6  ;;  %v406_v6 = vpop.f32.mrf.mxu0 }
 0x154   :  { %v407_v40 = vadd.f32 %v3758_v10, %v406_v6 }
 0x158   :  { %v3939_v15 = vpop.f32.mrf.mxu1 }
 0x15b   :  { %3195 = vmatmul.msk.f32.gmra.mxu1 %vm602_vm2, %v541_v13 }
 0x160   :  { %v812_v23 = vpop.f32.mrf.mxu1 }
 0x161   :  { %v813_v25 = vadd.f32 %v3950_v18, %v812_v23  ;;  %v548_v23 = vmax.f32 %v401_v20, 0.0 }
 0x163   :  { %3196 = vmatmul.msk.f32.gmra.mxu1 %vm602_vm2, %v542_v21  ;;  %v1004_v26 = vmax.f32 %v813_v25, 0.0  ;;  %v409_v21 = vpop.f32.mrf.mxu0 }
 0x165   :  { %1104 = vmatmul.f32.vlgmr.msra.gmra.mxu2 %v1004_v26 }
 0x168   :  { %v815_v32 = vpop.f32.mrf.mxu1 }
 0x169   :  { %v816_v33 = vadd.f32 %v3950_v18, %v815_v32  ;;  %v549_v32 = vmax.f32 %v404_v28, 0.0 }
 0x16b   :  { %3197 = vmatmul.msk.f32.gmra.mxu1 %vm602_vm2, %v543_v30  ;;  %v1005_v37 = vmax.f32 %v816_v33, 0.0  ;;  %v412_v30 = vpop.f32.mrf.mxu0 }
 0x16d   :  { %1107 = vmatmul.f32.gmra.mxu2 %v1005_v37 }
 0x170   :  { %v818_v45 = vpop.f32.mrf.mxu1 }
 0x171   :  { %v819_v46 = vadd.f32 %v3950_v18, %v818_v45 }
 0x173   :  { %3198 = vmatmul.msk.f32.gmra.mxu1 %vm602_vm2, %v544_v42  ;;  %v1006_v47 = vmax.f32 %v819_v46, 0.0  ;;  %v550_v42 = vmax.f32 %v407_v40, 0.0  ;;  %v415_v45 = vpop.f32.mrf.mxu0 }
 0x174   :  { %v416_v9 = vadd.f32 %v3758_v10, %v415_v45 }
 0x175   :  { %1110 = vmatmul.f32.gmra.mxu2 %v1006_v47 }
 0x178   :  { %v821_v56 = vpop.f32.mrf.mxu1 }
 0x179   :  { %v822_v59 = vadd.f32 %v3950_v18, %v821_v56 }
 0x17b   :  { %3199 = vmatmul.msk.f32.gmra.mxu1 %vm602_vm2, %v545_v53  ;;  %v1007_v60 = vmax.f32 %v822_v59, 0.0  ;;  %v410_v53 = vadd.f32 %v3758_v10, %v409_v21 }
 0x17d   :  { %1113 = vmatmul.f32.gmra.mxu2 %v1007_v60  ;;  %v551_v55 = vmax.f32 %v410_v53, 0.0  ;;  %v418_v60 = vpop.f32.mrf.mxu0 }
 0x17e   :  { %v419_v21 = vadd.f32 %v3758_v10, %v418_v60 }
 0x180   :  { %v824_v4 = vpop.f32.mrf.mxu1 }
 0x181   :  { %v825_v5 = vadd.f32 %v3950_v18, %v824_v4 }
 0x183   :  { %3200 = vmatmul.msk.f32.gmra.mxu1 %vm602_vm2, %v546_v2  ;;  %v1008_v0 = vmax.f32 %v825_v5, 0.0  ;;  %v413_v2 = vadd.f32 %v3758_v10, %v412_v30 }
 0x185   :  { %1116 = vmatmul.f32.gmra.mxu2 %v1008_v0  ;;  %v552_v4 = vmax.f32 %v413_v2, 0.0 }
 0x188   :  { %v827_v13 = vpop.f32.mrf.mxu1 }
 0x189   :  { %v828_v16 = vadd.f32 %v3950_v18, %v827_v13  ;;  %v553_v13 = vmax.f32 %v416_v9, 0.0 }
 0x18b   :  { %3201 = vmatmul.msk.f32.gmra.mxu1 %vm602_vm2, %v547_v12  ;;  %v1009_v17 = vmax.f32 %v828_v16, 0.0  ;;  %v421_v12 = vpop.f32.mrf.mxu0 }
 0x18c   :  { %v422_v30 = vadd.f32 %v3758_v10, %v421_v12 }
 0x18d   :  { %1119 = vmatmul.f32.gmra.mxu2 %v1009_v17 }
 0x190   :  { %v830_v25 = vpop.f32.mrf.mxu1 }
 0x191   :  { %v831_v26 = vadd.f32 %v3950_v18, %v830_v25  ;;  %v554_v25 = vmax.f32 %v419_v21, 0.0 }
 0x193   :  { %3202 = vmatmul.msk.f32.gmra.mxu1 %vm602_vm2, %v548_v23  ;;  %v1010_v27 = vmax.f32 %v831_v26, 0.0  ;;  %v424_v23 = vpop.f32.mrf.mxu0 }
 0x195   :  { %1122 = vmatmul.f32.gmra.mxu2 %v1010_v27 }
 0x198   :  { %v833_v33 = vpop.f32.mrf.mxu1 }
 0x199   :  { %v834_v37 = vadd.f32 %v3950_v18, %v833_v33 }
 0x19b   :  { %3203 = vmatmul.msk.f32.gmra.mxu1 %vm602_vm2, %v549_v32  ;;  %v1011_v39 = vmax.f32 %v834_v37, 0.0  ;;  %v555_v32 = vmax.f32 %v422_v30, 0.0  ;;  %v427_v33 = vpop.f32.mrf.mxu0 }
 0x19d   :  { %1125 = vmatmul.f32.gmra.mxu2 %v1011_v39 }
 0x1a0   :  { %v836_v46 = vpop.f32.mrf.mxu1 }
 0x1a1   :  { %v837_v47 = vadd.f32 %v3950_v18, %v836_v46 }
 0x1a3   :  { %3204 = vmatmul.msk.f32.gmra.mxu1 %vm602_vm2, %v550_v42  ;;  %v1012_v49 = vmax.f32 %v837_v47, 0.0  ;;  %v425_v42 = vadd.f32 %v3758_v10, %v424_v23  ;;  %v4007_v23 = vld [vmem:[%s5151_s8] ss:$0 sm:$0xff] }
 0x1a5   :  { %1128 = vmatmul.f32.gmra.mxu2 %v1012_v49  ;;  %v556_v45 = vmax.f32 %v425_v42, 0.0  ;;  %v430_v49 = vpop.f32.mrf.mxu0 }
 0x1a6   :  { %v431_v2 = vadd.f32 %v3758_v10, %v430_v49 }
 0x1a8   :  { %v839_v56 = vpop.f32.mrf.mxu1 }
 0x1a9   :  { %v840_v59 = vadd.f32 %v3950_v18, %v839_v56 }
 0x1ab   :  { %3205 = vmatmul.msk.f32.gmra.mxu1 %vm602_vm2, %v551_v55  ;;  %v1013_v61 = vmax.f32 %v840_v59, 0.0  ;;  %v428_v55 = vadd.f32 %v3758_v10, %v427_v33 }
 0x1ad   :  { %1131 = vmatmul.f32.gmra.mxu2 %v1013_v61  ;;  %v557_v56 = vmax.f32 %v428_v55, 0.0 }
 0x1b0   :  { %v842_v5 = vpop.f32.mrf.mxu1 }
 0x1b1   :  { %v843_v6 = vadd.f32 %v3950_v18, %v842_v5  ;;  %v558_v5 = vmax.f32 %v431_v2, 0.0  ;;  %v443_v2 = vadd.f32 %v3758_v10, %v3631_v31 }
 0x1b3   :  { %3206 = vmatmul.msk.f32.gmra.mxu1 %vm602_vm2, %v552_v4  ;;  %v1014_v0 = vmax.f32 %v843_v6, 0.0  ;;  %v433_v4 = vpop.f32.mrf.mxu0 }
 0x1b4   :  { %v434_v12 = vadd.f32 %v3758_v10, %v433_v4 }
 0x1b5   :  { %1134 = vmatmul.f32.gmra.mxu2 %v1014_v0 }
 0x1b8   :  { %v845_v16 = vpop.f32.mrf.mxu1 }
 0x1b9   :  { %v846_v17 = vadd.f32 %v3950_v18, %v845_v16  ;;  %v559_v16 = vmax.f32 %v434_v12, 0.0 }
 0x1bb   :  { %3207 = vmatmul.msk.f32.gmra.mxu1 %vm602_vm2, %v553_v13  ;;  %v1015_v20 = vmax.f32 %v846_v17, 0.0  ;;  %v436_v13 = vpop.f32.mrf.mxu0 }
 0x1bd   :  { %1137 = vmatmul.f32.gmra.mxu2 %v1015_v20 }
 0x1c0   :  { %v848_v26 = vpop.f32.mrf.mxu1 }
 0x1c1   :  { %v849_v27 = vadd.f32 %v3950_v18, %v848_v26  ;;  %v437_v26 = vadd.f32 %v3758_v10, %v436_v13 }
 0x1c3   :  { %3208 = vmatmul.msk.f32.gmra.mxu1 %vm602_vm2, %v554_v25  ;;  %v1016_v28 = vmax.f32 %v849_v27, 0.0  ;;  %v439_v30 = vpop.f32.mrf.mxu0 }
 0x1c5   :  { %1140 = vmatmul.f32.gmra.mxu2 %v1016_v28  ;;  %v560_v28 = vmax.f32 %v437_v26, 0.0 }
 0x1c8   :  { %v851_v37 = vpop.f32.mrf.mxu1 }
 0x1c9   :  { %v852_v39 = vadd.f32 %v3950_v18, %v851_v37 }
 0x1cb   :  { %3209 = vmatmul.msk.f32.gmra.mxu1 %vm602_vm2, %v555_v32  ;;  %v1017_v40 = vmax.f32 %v852_v39, 0.0 }
 0x1cd   :  { %1143 = vmatmul.f32.gmra.mxu2 %v1017_v40 }
 0x1d0   :  { %v854_v46 = vpop.f32.mrf.mxu1 }
 0x1d1   :  { %v855_v47 = vadd.f32 %v3950_v18, %v854_v46  ;;  %v440_v46 = vadd.f32 %v3758_v10, %v439_v30 }
 0x1d3   :  { %3210 = vmatmul.msk.f32.gmra.mxu1 %vm602_vm2, %v556_v45  ;;  %v1018_v53 = vmax.f32 %v855_v47, 0.0  ;;  %v561_v49 = vmax.f32 %v440_v46, 0.0 }
 0x1d5   :  { %1146 = vmatmul.f32.gmra.mxu2 %v1018_v53 }
 0x1d8   :  { %v857_v59 = vpop.f32.mrf.mxu1 }
 0x1d9   :  { %v858_v60 = vadd.f32 %v3950_v18, %v857_v59 }
 0x1db   :  { %3211 = vmatmul.msk.f32.gmra.mxu1 %vm602_vm2, %v557_v56  ;;  %v1019_v61 = vmax.f32 %v858_v60, 0.0 }
 0x1dd   :  { %1149 = vmatmul.f32.gmra.mxu2 %v1019_v61 }
 0x1e0   :  { %v860_v6 = vpop.f32.mrf.mxu1 }
 0x1e1   :  { %v861_v0 = vadd.f32 %v3950_v18, %v860_v6 }
 0x1e3   :  { %3212 = vmatmul.msk.f32.gmra.mxu1 %vm602_vm2, %v558_v5  ;;  %v1020_v9 = vmax.f32 %v861_v0, 0.0  ;;  %v562_v0 = vmax.f32 %v443_v2, 0.0  ;;  %v455_v2 = vadd.f32 %v3758_v10, %v3674_v44 }
 0x1e5   :  { %1152 = vmatmul.f32.gmra.mxu2 %v1020_v9 }
 0x1e8   :  { %v863_v17 = vpop.f32.mrf.mxu1  ;;  %v1105_v20 = vpop.f32.mrf.mxu2 }
 0x1e9   :  { %v864_v21 = vadd.f32 %v3950_v18, %v863_v17  ;;  %v1106_v27 = vadd.f32 %v4007_v23, %v1105_v20  ;;  %v446_v17 = vadd.f32 %v3758_v10, %v3641_v34 }
 0x1eb   :  { %3213 = vmatmul.msk.f32.gmra.mxu1 %vm602_vm2, %v559_v16  ;;  %v1021_v25 = vmax.f32 %v864_v21, 0.0  ;;  %v1297_v40 = vmax.f32 %v1106_v27, 0.0 }
 0x1ed   :  { %1155 = vmatmul.f32.gmra.mxu2 %v1021_v25  ;;  %v563_v25 = vmax.f32 %v446_v17, 0.0 }
 0x1f0   :  { %v866_v32 = vpop.f32.mrf.mxu1  ;;  %v1108_v33 = vpop.f32.mrf.mxu2 }
 0x1f1   :  { %v867_v37 = vadd.f32 %v3950_v18, %v866_v32  ;;  %v1109_v39 = vadd.f32 %v4007_v23, %v1108_v33  ;;  %v449_v32 = vadd.f32 %v3758_v10, %v3654_v38 }
 0x1f3   :  { %v1298_v42 = vmax.f32 %v1109_v39, 0.0  ;;  %3214 = vmatmul.msk.f32.gmra.mxu1 %vm602_vm2, %v560_v28  ;;  %v1022_v45 = vmax.f32 %v867_v37, 0.0  ;;  %v564_v39 = vmax.f32 %v449_v32, 0.0 }
 0x1f5   :  { %v1361_v47 = vmax.f32 %v1297_v40, %v1298_v42  ;;  %1158 = vmatmul.f32.gmra.mxu2 %v1022_v45 }
 0x1f8   :  { %v869_v53 = vpop.f32.mrf.mxu1  ;;  %v1111_v55 = vpop.f32.mrf.mxu2 }
 0x1f9   :  { %v870_v56 = vadd.f32 %v3950_v18, %v869_v53  ;;  %v1112_v59 = vadd.f32 %v4007_v23, %v1111_v55 }
 0x1fb   :  { %v1299_v60 = vmax.f32 %v1112_v59, 0.0  ;;  %3215 = vmatmul.msk.f32.gmra.mxu1 %vm602_vm2, %v561_v49  ;;  %v1023_v61 = vmax.f32 %v870_v56, 0.0 }
 0x1fd   :  { %v1362_v4 = vmax.f32 %v1361_v47, %v1299_v60  ;;  %1161 = vmatmul.f32.gmra.mxu2 %v1023_v61  ;;  %v452_v47 = vadd.f32 %v3758_v10, %v3664_v41 }
 0x1ff   :  { %v565_v55 = vmax.f32 %v452_v47, 0.0 }
 0x200   :  { %v872_v5 = vpop.f32.mrf.mxu1  ;;  %v1114_v6 = vpop.f32.mrf.mxu2 }
 0x201   :  { %v873_v9 = vadd.f32 %v3950_v18, %v872_v5  ;;  %v1115_v12 = vadd.f32 %v4007_v23, %v1114_v6  ;;  %v566_v6 = vmax.f32 %v455_v2, 0.0 }
 0x203   :  { %v1300_v13 = vmax.f32 %v1115_v12, 0.0  ;;  %3216 = vmatmul.msk.f32.gmra.mxu1 %vm602_vm2, %v562_v0  ;;  %v1024_v16 = vmax.f32 %v873_v9, 0.0 }
 0x205   :  { %v1363_v20 = vmax.f32 %v1362_v4, %v1300_v13  ;;  %1164 = vmatmul.f32.gmra.mxu2 %v1024_v16  ;;  %v458_v16 = vadd.f32 %v3758_v10, %v3687_v48 }
 0x208   :  { %v875_v21 = vpop.f32.mrf.mxu1  ;;  %v1117_v31 = vpop.f32.mrf.mxu2 }
 0x209   :  { %v876_v26 = vadd.f32 %v3950_v18, %v875_v21  ;;  %v1118_v27 = vadd.f32 %v4007_v23, %v1117_v31  ;;  %v567_v21 = vmax.f32 %v458_v16, 0.0 }
 0x20b   :  { %v1301_v28 = vmax.f32 %v1118_v27, 0.0  ;;  %3217 = vmatmul.msk.f32.gmra.mxu1 %vm602_vm2, %v563_v25  ;;  %v1025_v30 = vmax.f32 %v876_v26, 0.0  ;;  %v461_v26 = vadd.f32 %v3758_v10, %v3697_v51 }
 0x20d   :  { %v1364_v33 = vmax.f32 %v1363_v20, %v1301_v28  ;;  %1167 = vmatmul.f32.gmra.mxu2 %v1025_v30  ;;  %v568_v48 = vmax.f32 %v461_v26, 0.0 }
 0x210   :  { %v878_v37 = vpop.f32.mrf.mxu1  ;;  %v1120_v34 = vpop.f32.mrf.mxu2 }
 0x211   :  { %v879_v40 = vadd.f32 %v3950_v18, %v878_v37  ;;  %v1121_v42 = vadd.f32 %v4007_v23, %v1120_v34 }
 0x213   :  { %v1302_v45 = vmax.f32 %v1121_v42, 0.0  ;;  %3218 = vmatmul.msk.f32.gmra.mxu1 %vm602_vm2, %v564_v39  ;;  %v1026_v46 = vmax.f32 %v879_v40, 0.0  ;;  %v464_v40 = vadd.f32 %v3758_v10, %v3707_v54 }
 0x215   :  { %v1365_v49 = vmax.f32 %v1364_v33, %v1302_v45  ;;  %1170 = vmatmul.f32.gmra.mxu2 %v1026_v46  ;;  %v569_v46 = vmax.f32 %v464_v40, 0.0 }
 0x218   :  { %v881_v53 = vpop.f32.mrf.mxu1  ;;  %v1123_v38 = vpop.f32.mrf.mxu2 }
 0x219   :  { %v882_v56 = vadd.f32 %v3950_v18, %v881_v53  ;;  %v1124_v59 = vadd.f32 %v4007_v23, %v1123_v38 }
 0x21b   :  { %v1303_v60 = vmax.f32 %v1124_v59, 0.0  ;;  %3219 = vmatmul.msk.f32.gmra.mxu1 %vm602_vm2, %v565_v55  ;;  %v1027_v61 = vmax.f32 %v882_v56, 0.0  ;;  %v467_v55 = vadd.f32 %v3758_v10, %v3717_v58 }
 0x21d   :  { %v1366_v4 = vmax.f32 %v1365_v49, %v1303_v60  ;;  %1173 = vmatmul.f32.gmra.mxu2 %v1027_v61  ;;  %v570_v60 = vmax.f32 %v467_v55, 0.0 }
 0x220   :  { %v884_v5 = vpop.f32.mrf.mxu1  ;;  %v1126_v41 = vpop.f32.mrf.mxu2 }
 0x221   :  { %v885_v0 = vadd.f32 %v3950_v18, %v884_v5  ;;  %v1127_v9 = vadd.f32 %v4007_v23, %v1126_v41  ;;  %v470_v41 = vadd.f32 %v3758_v10, %v3727_v62 }
 0x223   :  { %v1028_v12 = vmax.f32 %v885_v0, 0.0  ;;  %v1304_v13 = vmax.f32 %v1127_v9, 0.0  ;;  %3220 = vmatmul.msk.f32.gmra.mxu1 %vm602_vm2, %v566_v6  ;;  %v571_v9 = vmax.f32 %v470_v41, 0.0 }
 0x225   :  { %v4046_v17 = vmax.f32 %v1366_v4, %v1304_v13  ;;  %1176 = vmatmul.f32.gmra.mxu2 %v1028_v12 }
 0x228   :  { %v887_v44 = vpop.f32.mrf.mxu1  ;;  %v1129_v20 = vpop.f32.mrf.mxu2 }
 0x229   :  { %v888_v31 = vadd.f32 %v3950_v18, %v887_v44  ;;  %v1130_v27 = vadd.f32 %v4007_v23, %v1129_v20  ;;  %v473_v20 = vadd.f32 %v3758_v10, %v3737_v3 }
 0x22b   :  { %v1029_v25 = vmax.f32 %v888_v31, 0.0  ;;  %3221 = vmatmul.msk.f32.gmra.mxu1 %vm602_vm2, %v567_v21  ;;  %v1305_v37 = vmax.f32 %v1130_v27, 0.0 }
 0x22d   :  { %1179 = vmatmul.f32.gmra.mxu2 %v1029_v25  ;;  %v572_v25 = vmax.f32 %v473_v20, 0.0 }
 0x230   :  { %v890_v28 = vpop.f32.mrf.mxu1  ;;  %v1132_v30 = vpop.f32.mrf.mxu2 }
 0x231   :  { %v891_v32 = vadd.f32 %v3950_v18, %v890_v28  ;;  %v1133_v33 = vadd.f32 %v4007_v23, %v1132_v30 }
 0x233   :  { %v1030_v34 = vmax.f32 %v891_v32, 0.0  ;;  %v1306_v39 = vmax.f32 %v1133_v33, 0.0  ;;  %3222 = vmatmul.msk.f32.gmra.mxu1 %vm602_vm2, %v568_v48  ;;  %v476_v48 = vadd.f32 %v3758_v10, %v3747_v7 }
 0x235   :  { %v1374_v42 = vmax.f32 %v1305_v37, %v1306_v39  ;;  %1182 = vmatmul.f32.gmra.mxu2 %v1030_v34  ;;  %v573_v37 = vmax.f32 %v476_v48, 0.0  ;;  %v488_v48 = vadd.f32 %v3758_v10, %v3787_v29 }
 0x238   :  { %v893_v51 = vpop.f32.mrf.mxu1  ;;  %v1135_v45 = vpop.f32.mrf.mxu2 }
 0x239   :  { %v894_v47 = vadd.f32 %v3950_v18, %v893_v51  ;;  %v1136_v49 = vadd.f32 %v4007_v23, %v1135_v45  ;;  %v479_v51 = vadd.f32 %v3758_v10, %v3763_v14  ;;  %v1368_v45 = vrot.slane %v4046_v17, 4 }
 0x23a   :  { %v482_v14 = vadd.f32 %v3758_v10, %v3771_v19 }
 0x23b   :  { %v1031_v53 = vmax.f32 %v894_v47, 0.0  ;;  %v1307_v38 = vmax.f32 %v1136_v49, 0.0  ;;  %3223 = vmatmul.msk.f32.gmra.mxu1 %vm602_vm2, %v569_v46  ;;  %v574_v49 = vmax.f32 %v479_v51, 0.0  ;;  %v4109_v51 = vld [vmem:[%s5147_s4] ss:$0 sm:$0xff] }
 0x23d   :  { %v1375_v56 = vmax.f32 %v1374_v42, %v1307_v38  ;;  %1185 = vmatmul.f32.gmra.mxu2 %v1031_v53  ;;  %v1369_v53 = vmax.f32 %v4046_v17, %v1368_v45 }
 0x240   :  { %v896_v59 = vpop.f32.mrf.mxu1  ;;  %v1138_v54 = vpop.f32.mrf.mxu2 }
 0x241   :  { %v897_v61 = vadd.f32 %v3950_v18, %v896_v59  ;;  %v1139_v2 = vadd.f32 %v4007_v23, %v1138_v54  ;;  %v1370_v54 = vrot.slane %v1369_v53, 2 }
 0x243   :  { %v1032_v4 = vmax.f32 %v897_v61, 0.0  ;;  %v1308_v5 = vmax.f32 %v1139_v2, 0.0  ;;  %3224 = vmatmul.msk.f32.gmra.mxu1 %vm602_vm2, %v570_v60  ;;  %v1371_v41 = vmax.f32 %v1369_v53, %v1370_v54 }
 0x245   :  { %v1376_v6 = vmax.f32 %v1375_v56, %v1308_v5  ;;  %1188 = vmatmul.f32.gmra.mxu2 %v1032_v4  ;;  %v575_v5 = vmax.f32 %v482_v14, 0.0 }
 0x248   :  { %v899_v0 = vpop.f32.mrf.mxu1  ;;  %v1141_v58 = vpop.f32.mrf.mxu2 }
 0x249   :  { %v900_v12 = vadd.f32 %v3950_v18, %v899_v0  ;;  %v1142_v13 = vadd.f32 %v4007_v23, %v1141_v58 }
 0x24b   :  { %v1033_v16 = vmax.f32 %v900_v12, 0.0  ;;  %v1309_v44 = vmax.f32 %v1142_v13, 0.0  ;;  %3225 = vmatmul.msk.f32.gmra.mxu1 %vm602_vm2, %v571_v9  ;;  %v485_v9 = vadd.f32 %v3758_v10, %v3779_v24  ;;  %v1372_v12 = vrot.slane %v1371_v41, 1 }
 0x24c   :  { %v491_v10 = vadd.f32 %v4109_v51, %v3795_v36 }
 0x24d   :  { %v1377_v21 = vmax.f32 %v1376_v6, %v1309_v44  ;;  %1191 = vmatmul.f32.gmra.mxu2 %v1033_v16  ;;  %v576_v44 = vmax.f32 %v485_v9, 0.0 }
 0x250   :  { %v902_v31 = vpop.f32.mrf.mxu1  ;;  %v1144_v62 = vpop.f32.mrf.mxu2 }
 0x251   :  { %v903_v26 = vadd.f32 %v3950_v18, %v902_v31  ;;  %v1145_v27 = vadd.f32 %v4007_v23, %v1144_v62  ;;  %v1373_v31 = vmax.f32 %v1371_v41, %v1372_v12  ;;  %v500_v12 = vadd.f32 %v4109_v51, %v3819_v57 }
 0x253   :  { %v1034_v28 = vmax.f32 %v903_v26, 0.0  ;;  %v1310_v30 = vmax.f32 %v1145_v27, 0.0  ;;  %3226 = vmatmul.msk.f32.gmra.mxu1 %vm602_vm2, %v572_v25 }
 0x255   :  { %v1378_v32 = vmax.f32 %v1377_v21, %v1310_v30  ;;  %1194 = vmatmul.f32.gmra.mxu2 %v1034_v28 }
 0x258   :  { %v905_v33 = vpop.f32.mrf.mxu1  ;;  %v1147_v3 = vpop.f32.mrf.mxu2 }
 0x259   :  { %v906_v34 = vadd.f32 %v3950_v18, %v905_v33  ;;  %v1148_v39 = vadd.f32 %v4007_v23, %v1147_v3 }
 0x25b   :  { %v1035_v40 = vmax.f32 %v906_v34, 0.0  ;;  %v1311_v42 = vmax.f32 %v1148_v39, 0.0  ;;  %3227 = vmatmul.msk.f32.gmra.mxu1 %vm602_vm2, %v573_v37  ;;  %v577_v37 = vmax.f32 %v488_v48, 0.0 }
 0x25d   :  { %v1379_v46 = vmax.f32 %v1378_v32, %v1311_v42  ;;  %1197 = vmatmul.f32.gmra.mxu2 %v1035_v40 }
 0x260   :  { %v908_v7 = vpop.f32.mrf.mxu1  ;;  %v1150_v47 = vpop.f32.mrf.mxu2 }
 0x261   :  { %v909_v38 = vadd.f32 %v3950_v18, %v908_v7  ;;  %v1151_v55 = vadd.f32 %v4007_v23, %v1150_v47  ;;  %v578_v7 = vmax.f32 %v491_v10, 0.0 }
 0x263   :  { %v1036_v56 = vmax.f32 %v909_v38, 0.0  ;;  %v1312_v59 = vmax.f32 %v1151_v55, 0.0  ;;  %3228 = vmatmul.msk.f32.gmra.mxu1 %vm602_vm2, %v574_v49  ;;  %v494_v55 = vadd.f32 %v4109_v51, %v3803_v43 }
 0x265   :  { %v1380_v60 = vmax.f32 %v1379_v46, %v1312_v59  ;;  %1200 = vmatmul.f32.gmra.mxu2 %v1036_v56  ;;  %v579_v14 = vmax.f32 %v494_v55, 0.0 }
 0x267   :  { %v1381_v61 = vrot.slane %v1380_v60, 4 }
 0x268   :  { %v911_v2 = vpop.f32.mrf.mxu1  ;;  %v1153_v4 = vpop.f32.mrf.mxu2 }
 0x269   :  { %v1382_v17 = vmax.f32 %v1380_v60, %v1381_v61  ;;  %v912_v6 = vadd.f32 %v3950_v18, %v911_v2  ;;  %v1154_v16 = vadd.f32 %v4007_v23, %v1153_v4  ;;  %v497_v4 = vadd.f32 %v4109_v51, %v3811_v50 }
 0x26b   :  { %v1383_v0 = vrot.slane %v1382_v17, 2  ;;  %v1037_v58 = vmax.f32 %v912_v6, 0.0  ;;  %3229 = vmatmul.msk.f32.gmra.mxu1 %vm602_vm2, %v575_v5  ;;  %v1313_v24 = vmax.f32 %v1154_v16, 0.0  ;;  %v581_v16 = vmax.f32 %v500_v12, 0.0 }
 0x26d   :  { %v1384_v19 = vmax.f32 %v1382_v17, %v1383_v0  ;;  %1203 = vmatmul.f32.gmra.mxu2 %v1037_v58  ;;  %v580_v17 = vmax.f32 %v497_v4, 0.0 }
 0x26f   :  { %v1385_v13 = vrot.slane %v1384_v19, 1 }
 0x270   :  { %v914_v20 = vpop.f32.mrf.mxu1  ;;  %v1156_v21 = vpop.f32.mrf.mxu2 }
 0x271   :  { %v1386_v62 = vmax.f32 %v1384_v19, %v1385_v13  ;;  %v915_v25 = vadd.f32 %v3950_v18, %v914_v20  ;;  %v1157_v26 = vadd.f32 %v4007_v23, %v1156_v21 }
 0x273   :  { %v4098_v27 = vsel %vm2844_vm3, %v1386_v62, %v1373_v31  ;;  %v1038_v28 = vmax.f32 %v915_v25, 0.0  ;;  %v1314_v30 = vmax.f32 %v1157_v26, 0.0  ;;  %3230 = vmatmul.msk.f32.gmra.mxu1 %vm602_vm2, %v576_v44  ;;  %v503_v62 = vadd.f32 %v4109_v51, %v3827_v1 }
 0x275   :  { %v1387_v32 = vmax.f32 %v1313_v24, %v1314_v30  ;;  %1206 = vmatmul.f32.gmra.mxu2 %v1038_v28  ;;  %v582_v24 = vmax.f32 %v503_v62, 0.0 }
 0x278   :  { %v917_v33 = vpop.f32.mrf.mxu1  ;;  %v1159_v3 = vpop.f32.mrf.mxu2 }
 0x279   :  { %v918_v34 = vadd.f32 %v3950_v18, %v917_v33  ;;  %v1160_v39 = vadd.f32 %v4007_v23, %v1159_v3  ;;  %v506_v33 = vadd.f32 %v4109_v51, %v3843_v11 }
 0x27b   :  { %v1039_v40 = vmax.f32 %v918_v34, 0.0  ;;  %v1315_v42 = vmax.f32 %v1160_v39, 0.0  ;;  %3231 = vmatmul.msk.f32.gmra.mxu1 %vm602_vm2, %v577_v37  ;;  %v583_v39 = vmax.f32 %v506_v33, 0.0 }
 0x27d   :  { %v1388_v29 = vmax.f32 %v1387_v32, %v1315_v42  ;;  %1209 = vmatmul.f32.gmra.mxu2 %v1039_v40 }
 0x280   :  { %v920_v45 = vpop.f32.mrf.mxu1  ;;  %v1162_v46 = vpop.f32.mrf.mxu2 }
 0x281   :  { %v921_v47 = vadd.f32 %v3950_v18, %v920_v45  ;;  %v1163_v49 = vadd.f32 %v4007_v23, %v1162_v46  ;;  %v509_v45 = vadd.f32 %v4109_v51, %v3865_v22 }
 0x283   :  { %v1040_v53 = vmax.f32 %v921_v47, 0.0  ;;  %v1316_v38 = vmax.f32 %v1163_v49, 0.0  ;;  %3232 = vmatmul.msk.f32.gmra.mxu1 %vm602_vm2, %v578_v7 }
 0x285   :  { %v1389_v56 = vmax.f32 %v1388_v29, %v1316_v38  ;;  %1212 = vmatmul.f32.gmra.mxu2 %v1040_v53  ;;  %v584_v53 = vmax.f32 %v509_v45, 0.0 }
 0x288   :  { %v923_v59 = vpop.f32.mrf.mxu1  ;;  %v1165_v36 = vpop.f32.mrf.mxu2 }
 0x289   :  { %v924_v54 = vadd.f32 %v3950_v18, %v923_v59  ;;  %v1166_v60 = vadd.f32 %v4007_v23, %v1165_v36 }
 0x28b   :  { %v1041_v61 = vmax.f32 %v924_v54, 0.0  ;;  %v1317_v2 = vmax.f32 %v1166_v60, 0.0  ;;  %3233 = vmatmul.msk.f32.gmra.mxu1 %vm602_vm2, %v579_v14  ;;  %v512_v54 = vadd.f32 %v4109_v51, %v3885_v35 }
 0x28d   :  { %v1390_v5 = vmax.f32 %v1389_v56, %v1317_v2  ;;  %1215 = vmatmul.f32.gmra.mxu2 %v1041_v61  ;;  %v585_v4 = vmax.f32 %v512_v54, 0.0 }
 0x290   :  { %v926_v41 = vpop.f32.mrf.mxu1  ;;  %v1168_v43 = vpop.f32.mrf.mxu2 }
 0x291   :  { %v927_v6 = vadd.f32 %v3950_v18, %v926_v41  ;;  %v1169_v0 = vadd.f32 %v4007_v23, %v1168_v43 }
 0x293   :  { %v1042_v58 = vmax.f32 %v927_v6, 0.0  ;;  %v1318_v9 = vmax.f32 %v1169_v0, 0.0  ;;  %3234 = vmatmul.msk.f32.gmra.mxu1 %vm602_vm2, %v580_v17  ;;  %v515_v17 = vadd.f32 %v4109_v51, %v3905_v52 }
 0x295   :  { %v1391_v19 = vmax.f32 %v1390_v5, %v1318_v9  ;;  %1218 = vmatmul.f32.gmra.mxu2 %v1042_v58  ;;  %v586_v58 = vmax.f32 %v515_v17, 0.0 }
 0x298   :  { %v929_v13 = vpop.f32.mrf.mxu1  ;;  %v1171_v50 = vpop.f32.mrf.mxu2 }
 0x299   :  { %v930_v44 = vadd.f32 %v3950_v18, %v929_v13  ;;  %v1172_v20 = vadd.f32 %v4007_v23, %v1171_v50  ;;  %v518_v50 = vadd.f32 %v4109_v51, %v3922_v63 }
 0x29b   :  { %v1043_v21 = vmax.f32 %v930_v44, 0.0  ;;  %v1319_v31 = vmax.f32 %v1172_v20, 0.0  ;;  %3235 = vmatmul.msk.f32.gmra.mxu1 %vm602_vm2, %v581_v16  ;;  %v587_v20 = vmax.f32 %v518_v50, 0.0 }
 0x29d   :  { %v1392_v25 = vmax.f32 %v1391_v19, %v1319_v31  ;;  %1221 = vmatmul.f32.gmra.mxu2 %v1043_v21 }
 0x2a0   :  { %v932_v26 = vpop.f32.mrf.mxu1  ;;  %v1174_v57 = vpop.f32.mrf.mxu2 }
 0x2a1   :  { %v933_v28 = vadd.f32 %v3950_v18, %v932_v26  ;;  %v1175_v30 = vadd.f32 %v4007_v23, %v1174_v57  ;;  %v521_v26 = vadd.f32 %v4109_v51, %v3931_v8 }
 0x2a3   :  { %v1044_v48 = vmax.f32 %v933_v28, 0.0  ;;  %v1320_v32 = vmax.f32 %v1175_v30, 0.0  ;;  %3236 = vmatmul.msk.f32.gmra.mxu1 %vm602_vm2, %v582_v24  ;;  %v588_v28 = vmax.f32 %v521_v26, 0.0 }
 0x2a5   :  { %v1393_v3 = vmax.f32 %v1392_v25, %v1320_v32  ;;  %1224 = vmatmul.f32.gmra.mxu2 %v1044_v48 }
 0x2a7   :  { %v1394_v37 = vrot.slane %v1393_v3, 4 }
 0x2a8   :  { %v935_v1 = vpop.f32.mrf.mxu1  ;;  %v1177_v34 = vpop.f32.mrf.mxu2 }
 0x2a9   :  { %v1395_v40 = vmax.f32 %v1393_v3, %v1394_v37  ;;  %v936_v42 = vadd.f32 %v3950_v18, %v935_v1  ;;  %v1178_v11 = vadd.f32 %v4007_v23, %v1177_v34  ;;  %v524_v3 = vadd.f32 %v4109_v51, %v3939_v15 }
 0x2ab   :  { %v1396_v10 = vrot.slane %v1395_v40, 2  ;;  %v1045_v29 = vmax.f32 %v936_v42, 0.0  ;;  %3237 = vmatmul.msk.f32.gmra.mxu1 %vm602_vm2, %v583_v39  ;;  %v1321_v36 = vmax.f32 %v1178_v11, 0.0  ;;  %v589_v34 = vmax.f32 %v524_v3, 0.0 }
 0x2ad   :  { %v1397_v46 = vmax.f32 %v1395_v40, %v1396_v10  ;;  %1227 = vmatmul.f32.gmra.mxu2 %v1045_v29 }
 0x2af   :  { %v1398_v7 = vrot.slane %v1397_v46, 1 }
 0x2b0   :  { %v938_v47 = vpop.f32.mrf.mxu1  ;;  %v1180_v49 = vpop.f32.mrf.mxu2 }
 0x2b1   :  { %v1399_v38 = vmax.f32 %v1397_v46, %v1398_v7  ;;  %v939_v55 = vadd.f32 %v3950_v18, %v938_v47  ;;  %v1181_v56 = vadd.f32 %v4007_v23, %v1180_v49 }
 0x2b3   :  { %v4147_v59 = vsel %vm2846_vm4, %v1399_v38, %v4098_v27  ;;  %v1046_v22 = vmax.f32 %v939_v55, 0.0  ;;  %v1322_v14 = vmax.f32 %v1181_v56, 0.0  ;;  %3238 = vmatmul.msk.f32.gmra.mxu1 %vm602_vm2, %v584_v53 }
 0x2b5   :  { %v1400_v60 = vmax.f32 %v1321_v36, %v1322_v14  ;;  %1230 = vmatmul.f32.gmra.mxu2 %v1046_v22 }
 0x2b8   :  { %v941_v61 = vpop.f32.mrf.mxu1  ;;  %v1183_v2 = vpop.f32.mrf.mxu2 }
 0x2b9   :  { %v942_v5 = vadd.f32 %v3950_v18, %v941_v61  ;;  %v1184_v41 = vadd.f32 %v4007_v23, %v1183_v2 }
 0x2bb   :  { %v1047_v43 = vmax.f32 %v942_v5, 0.0  ;;  %v1323_v27 = vmax.f32 %v1184_v41, 0.0  ;;  %3239 = vmatmul.msk.f32.gmra.mxu1 %vm602_vm2, %v585_v4  ;;  %v4182_v41 = vld [vmem:[%s5149_s6] ss:$0 sm:$0xff] }
 0x2bd   :  { %v1401_v6 = vmax.f32 %v1400_v60, %v1323_v27  ;;  %1233 = vmatmul.f32.gmra.mxu2 %v1047_v43 }
 0x2c0   :  { %v944_v0 = vpop.f32.mrf.mxu1  ;;  %v1186_v35 = vpop.f32.mrf.mxu2 }
 0x2c1   :  { %v945_v9 = vadd.f32 %v3950_v18, %v944_v0  ;;  %v1187_v12 = vadd.f32 %v4007_v23, %v1186_v35 }
 0x2c3   :  { %v1048_v19 = vmax.f32 %v945_v9, 0.0  ;;  %v1324_v13 = vmax.f32 %v1187_v12, 0.0  ;;  %3240 = vmatmul.msk.f32.gmra.mxu1 %vm602_vm2, %v586_v58 }
 0x2c5   :  { %v1402_v16 = vmax.f32 %v1401_v6, %v1324_v13  ;;  %1236 = vmatmul.f32.gmra.mxu2 %v1048_v19 }
 0x2c8   :  { %v947_v44 = vpop.f32.mrf.mxu1  ;;  %v1189_v52 = vpop.f32.mrf.mxu2 }
 0x2c9   :  { %v948_v21 = vadd.f32 %v3950_v18, %v947_v44  ;;  %v1190_v31 = vadd.f32 %v4007_v23, %v1189_v52 }
 0x2cb   :  { %v1049_v62 = vmax.f32 %v948_v21, 0.0  ;;  %v1325_v25 = vmax.f32 %v1190_v31, 0.0  ;;  %3241 = vmatmul.msk.f32.gmra.mxu1 %vm602_vm2, %v587_v20 }
 0x2cd   :  { %v1403_v57 = vmax.f32 %v1402_v16, %v1325_v25  ;;  %1239 = vmatmul.f32.gmra.mxu2 %v1049_v62 }
 0x2d0   :  { %v950_v24 = vpop.f32.mrf.mxu1  ;;  %v1192_v63 = vpop.f32.mrf.mxu2 }
 0x2d1   :  { %v951_v30 = vadd.f32 %v3950_v18, %v950_v24  ;;  %v1193_v48 = vadd.f32 %v4007_v23, %v1192_v63 }
 0x2d3   :  { %v1050_v32 = vmax.f32 %v951_v30, 0.0  ;;  %v1326_v33 = vmax.f32 %v1193_v48, 0.0  ;;  %3242 = vmatmul.msk.f32.gmra.mxu1 %vm602_vm2, %v588_v28 }
 0x2d5   :  { %v1404_v37 = vmax.f32 %v1403_v57, %v1326_v33  ;;  %1242 = vmatmul.f32.gmra.mxu2 %v1050_v32 }
 0x2d8   :  { %v953_v1 = vpop.f32.mrf.mxu1  ;;  %v1195_v8 = vpop.f32.mrf.mxu2 }
 0x2d9   :  { %v954_v39 = vadd.f32 %v3950_v18, %v953_v1  ;;  %v1196_v40 = vadd.f32 %v4007_v23, %v1195_v8 }
 0x2db   :  { %v1051_v42 = vmax.f32 %v954_v39, 0.0  ;;  %v1327_v10 = vmax.f32 %v1196_v40, 0.0  ;;  %3243 = vmatmul.msk.f32.gmra.mxu1 %vm602_vm2, %v589_v34 }
 0x2dd   :  { %v1405_v29 = vmax.f32 %v1404_v37, %v1327_v10  ;;  %1245 = vmatmul.f32.gmra.mxu2 %v1051_v42 }
 0x2e0   :  { %v956_v45 = vpop.f32.mrf.mxu1  ;;  %v1198_v46 = vpop.f32.mrf.mxu2 }
 0x2e1   :  { %v957_v7 = vadd.f32 %v3950_v18, %v956_v45  ;;  %v1199_v15 = vadd.f32 %v4007_v23, %v1198_v46 }
 0x2e3   :  { %v1052_v11 = vmax.f32 %v957_v7, 0.0  ;;  %v1328_v47 = vmax.f32 %v1199_v15, 0.0 }
 0x2e5   :  { %v1406_v49 = vmax.f32 %v1405_v29, %v1328_v47  ;;  %1248 = vmatmul.f32.gmra.mxu2 %v1052_v11 }
 0x2e7   :  { %v1407_v53 = vrot.slane %v1406_v49, 4 }
 0x2e8   :  { %v959_v38 = vpop.f32.mrf.mxu1  ;;  %v1201_v55 = vpop.f32.mrf.mxu2 }
 0x2e9   :  { %v1408_v56 = vmax.f32 %v1406_v49, %v1407_v53  ;;  %v960_v36 = vadd.f32 %v3950_v18, %v959_v38  ;;  %v1202_v61 = vadd.f32 %v4007_v23, %v1201_v55 }
 0x2eb   :  { %v1409_v22 = vrot.slane %v1408_v56, 2  ;;  %v1053_v14 = vmax.f32 %v960_v36, 0.0  ;;  %v1329_v27 = vmax.f32 %v1202_v61, 0.0  ;;  %v1493_v61 = vld [vmem:[%s5144_s1 + $0xe0] sm:$0xff] }
 0x2ec   :  { %3273 = vmatmul.msk.f32.vlgmr.msra.gmra.mxu3 %vm120_vm1, %v1493_v61 }
 0x2ed   :  { %v1410_v54 = vmax.f32 %v1408_v56, %v1409_v22  ;;  %1251 = vmatmul.f32.gmra.mxu2 %v1053_v14 }
 0x2ef   :  { %v1411_v60 = vrot.slane %v1410_v54, 1 }
 0x2f0   :  { %v962_v2 = vpop.f32.mrf.mxu1  ;;  %v1204_v4 = vpop.f32.mrf.mxu2 }
 0x2f1   :  { %v1412_v5 = vmax.f32 %v1410_v54, %v1411_v60  ;;  %v963_v43 = vadd.f32 %v4182_v41, %v962_v2  ;;  %v1205_v18 = vadd.f32 %v4007_v23, %v1204_v4 }
 0x2f3   :  { %v1054_v17 = vmax.f32 %v963_v43, 0.0  ;;  %v1330_v6 = vmax.f32 %v1205_v18, 0.0  ;;  %v4188_v0 = vsel %vm2848_vm5, %v1412_v5, %v4147_v59 }
 0x2f5   :  { %v1413_v35 = vmax.f32 %v1329_v27, %v1330_v6  ;;  %1254 = vmatmul.f32.gmra.mxu2 %v1054_v17 }
 0x2f8   :  { %v965_v58 = vpop.f32.mrf.mxu1  ;;  %v1207_v9 = vpop.f32.mrf.mxu2 }
 0x2f9   :  { %v966_v12 = vadd.f32 %v4182_v41, %v965_v58  ;;  %v1208_v19 = vadd.f32 %v4007_v23, %v1207_v9 }
 0x2fb   :  { %v1055_v13 = vmax.f32 %v966_v12, 0.0  ;;  %v1331_v50 = vmax.f32 %v1208_v19, 0.0  ;;  %v1494_v19 = vld [vmem:[%s5144_s1 + $0xe8] sm:$0xff] }
 0x2fc   :  { %3274 = vmatmul.msk.f32.gmra.mxu3 %vm120_vm1, %v1494_v19 }
 0x2fd   :  { %v1414_v16 = vmax.f32 %v1413_v35, %v1331_v50  ;;  %1257 = vmatmul.f32.gmra.mxu2 %v1055_v13 }
 0x300   :  { %v968_v44 = vpop.f32.mrf.mxu1  ;;  %v1210_v52 = vpop.f32.mrf.mxu2 }
 0x301   :  { %v969_v20 = vadd.f32 %v4182_v41, %v968_v44  ;;  %v1211_v21 = vadd.f32 %v4007_v23, %v1210_v52 }
 0x303   :  { %v1056_v59 = vmax.f32 %v969_v20, 0.0  ;;  %v1332_v31 = vmax.f32 %v1211_v21, 0.0 }
 0x305   :  { %v1415_v62 = vmax.f32 %v1414_v16, %v1332_v31  ;;  %1260 = vmatmul.f32.gmra.mxu2 %v1056_v59 }
 0x308   :  { %v971_v25 = vpop.f32.mrf.mxu1  ;;  %v1213_v26 = vpop.f32.mrf.mxu2 }
 0x309   :  { %v972_v57 = vadd.f32 %v4182_v41, %v971_v25  ;;  %v1214_v24 = vadd.f32 %v4007_v23, %v1213_v26 }
 0x30b   :  { %v1057_v63 = vmax.f32 %v972_v57, 0.0  ;;  %v1333_v28 = vmax.f32 %v1214_v24, 0.0 }
 0x30d   :  { %v1416_v30 = vmax.f32 %v1415_v62, %v1333_v28  ;;  %1263 = vmatmul.f32.gmra.mxu2 %v1057_v63  ;;  %v1496_v63 = vld [vmem:[%s5144_s1 + $0xf8] sm:$0xff] }
 0x310   :  { %v974_v48 = vpop.f32.mrf.mxu1  ;;  %v1216_v32 = vpop.f32.mrf.mxu2 }
 0x311   :  { %v975_v33 = vadd.f32 %v4182_v41, %v974_v48  ;;  %v1217_v3 = vadd.f32 %v4007_v23, %v1216_v32 }
 0x313   :  { %v1058_v37 = vmax.f32 %v975_v33, 0.0  ;;  %v1334_v1 = vmax.f32 %v1217_v3, 0.0 }
 0x315   :  { %v1417_v8 = vmax.f32 %v1416_v30, %v1334_v1  ;;  %1266 = vmatmul.f32.gmra.mxu2 %v1058_v37  ;;  %v1497_v1 = vld [vmem:[%s5144_s1 + $0x100] sm:$0xff] }
 0x318   :  { %v977_v34 = vpop.f32.mrf.mxu1  ;;  %v1219_v39 = vpop.f32.mrf.mxu2 }
 0x319   :  { %v978_v40 = vadd.f32 %v4182_v41, %v977_v34  ;;  %v1220_v42 = vadd.f32 %v4007_v23, %v1219_v39 }
 0x31b   :  { %v1059_v10 = vmax.f32 %v978_v40, 0.0  ;;  %v1335_v29 = vmax.f32 %v1220_v42, 0.0 }
 0x31d   :  { %v1418_v45 = vmax.f32 %v1417_v8, %v1335_v29  ;;  %1269 = vmatmul.f32.gmra.mxu2 %v1059_v10 }
 0x320   :  { %v980_v46 = vpop.f32.mrf.mxu1  ;;  %v1222_v7 = vpop.f32.mrf.mxu2 }
 0x321   :  { %v981_v15 = vadd.f32 %v4182_v41, %v980_v46  ;;  %v1223_v11 = vadd.f32 %v4007_v23, %v1222_v7 }
 0x323   :  { %v1060_v47 = vmax.f32 %v981_v15, 0.0  ;;  %v1336_v49 = vmax.f32 %v1223_v11, 0.0 }
 0x325   :  { %v1419_v53 = vmax.f32 %v1418_v45, %v1336_v49  ;;  %1272 = vmatmul.f32.gmra.mxu2 %v1060_v47  ;;  %v1498_v45 = vld [vmem:[%s5144_s1 + $0x108] sm:$0xff] }
 0x327   :  { %v1420_v38 = vrot.slane %v1419_v53, 4 }
 0x328   :  { %v983_v55 = vpop.f32.mrf.mxu1  ;;  %v1225_v56 = vpop.f32.mrf.mxu2 }
 0x329   :  { %v1421_v36 = vmax.f32 %v1419_v53, %v1420_v38  ;;  %v984_v22 = vadd.f32 %v4182_v41, %v983_v55  ;;  %v1226_v4 = vadd.f32 %v4007_v23, %v1225_v56  ;;  %v1499_v38 = vld [vmem:[%s5144_s1 + $0x110] sm:$0xff]  ;;  %v4251_v56 = vld [vmem:[%s5151_s8] ss:$0 sm:$0xff] }
 0x32b   :  { %v1422_v14 = vrot.slane %v1421_v36, 2  ;;  %v1061_v54 = vmax.f32 %v984_v22, 0.0  ;;  %v1337_v6 = vmax.f32 %v1226_v4, 0.0  ;;  %v1466_v4 = vld [vmem:[%s5144_s1 + $0x8] sm:$0xff] }
 0x32d   :  { %v1423_v60 = vmax.f32 %v1421_v36, %v1422_v14  ;;  %1275 = vmatmul.f32.gmra.mxu2 %v1061_v54  ;;  %v1500_v54 = vld [vmem:[%s5144_s1 + $0x118] sm:$0xff] }
 0x32f   :  { %v1424_v2 = vrot.slane %v1423_v60, 1 }
 0x330   :  { %v986_v5 = vpop.f32.mrf.mxu1  ;;  %v1228_v43 = vpop.f32.mrf.mxu2 }
 0x331   :  { %v1425_v18 = vmax.f32 %v1423_v60, %v1424_v2  ;;  %v987_v27 = vadd.f32 %v4182_v41, %v986_v5  ;;  %v1229_v17 = vadd.f32 %v4007_v23, %v1228_v43 }
 0x333   :  { %v1062_v35 = vmax.f32 %v987_v27, 0.0  ;;  %v1338_v58 = vmax.f32 %v1229_v17, 0.0  ;;  %v4212_v9 = vsel %vm2850_vm6, %v1425_v18, %v4188_v0  ;;  %v1495_v0 = vld [vmem:[%s5144_s1 + $0xf0] sm:$0xff]  ;;  %v1501_v18 = vld [vmem:[%s5144_s1 + $0x120] sm:$0xff] }
 0x334   :  { %3275 = vmatmul.msk.f32.gmra.mxu3 %vm120_vm1, %v1495_v0 }
 0x335   :  { %v1426_v12 = vmax.f32 %v1337_v6, %v1338_v58  ;;  %1278 = vmatmul.f32.gmra.mxu2 %v1062_v35 }
 0x338   :  { %v989_v13 = vpop.f32.mrf.mxu1  ;;  %v1231_v50 = vpop.f32.mrf.mxu2 }
 0x339   :  { %v990_v16 = vadd.f32 %v4182_v41, %v989_v13  ;;  %v1232_v44 = vadd.f32 %v4007_v23, %v1231_v50 }
 0x33b   :  { %v1063_v52 = vmax.f32 %v990_v16, 0.0  ;;  %v1339_v20 = vmax.f32 %v1232_v44, 0.0  ;;  %v1502_v44 = vld [vmem:[%s5144_s1 + $0x128] sm:$0xff] }
 0x33c   :  { %3276 = vmatmul.msk.f32.gmra.mxu3 %vm120_vm1, %v1496_v63 }
 0x33d   :  { %v1427_v21 = vmax.f32 %v1426_v12, %v1339_v20  ;;  %1281 = vmatmul.f32.gmra.mxu2 %v1063_v52  ;;  %v1467_v12 = vld [vmem:[%s5144_s1 + $0x10] sm:$0xff] }
 0x340   :  { %v992_v59 = vpop.f32.mrf.mxu1  ;;  %v1234_v31 = vpop.f32.mrf.mxu2 }
 0x341   :  { %v993_v62 = vadd.f32 %v4182_v41, %v992_v59  ;;  %v1235_v25 = vadd.f32 %v4007_v23, %v1234_v31 }
 0x343   :  { %v1064_v26 = vmax.f32 %v993_v62, 0.0  ;;  %v1340_v57 = vmax.f32 %v1235_v25, 0.0  ;;  %v1469_v25 = vld [vmem:[%s5144_s1 + $0x20] sm:$0xff] }
 0x344   :  { %3277 = vmatmul.msk.f32.gmra.mxu3 %vm120_vm1, %v1497_v1  ;;  %v1471_v1 = vld [vmem:[%s5144_s1 + $0x30] sm:$0xff] }
 0x345   :  { %v1428_v24 = vmax.f32 %v1427_v21, %v1340_v57  ;;  %1284 = vmatmul.f32.gmra.mxu2 %v1064_v26  ;;  %v1468_v21 = vld [vmem:[%s5144_s1 + $0x18] sm:$0xff] }
 0x348   :  { %v995_v28 = vpop.f32.mrf.mxu1  ;;  %v1237_v30 = vpop.f32.mrf.mxu2 }
 0x349   :  { %v996_v48 = vadd.f32 %v4182_v41, %v995_v28  ;;  %v1238_v32 = vadd.f32 %v4007_v23, %v1237_v30  ;;  %v1470_v30 = vld [vmem:[%s5144_s1 + $0x28] sm:$0xff] }
 0x34b   :  { %v1065_v33 = vmax.f32 %v996_v48, 0.0  ;;  %v1341_v3 = vmax.f32 %v1238_v32, 0.0 }
 0x34c   :  { %3278 = vmatmul.msk.f32.gmra.mxu3 %vm120_vm1, %v1498_v45 }
 0x34d   :  { %v1429_v37 = vmax.f32 %v1428_v24, %v1341_v3  ;;  %1287 = vmatmul.f32.gmra.mxu2 %v1065_v33  ;;  %v1504_v24 = vld [vmem:[%s5144_s1 + $0x138] sm:$0xff]  ;;  %v1505_v33 = vld [vmem:[%s5144_s1 + $0x140] sm:$0xff] }
 0x350   :  { %v998_v8 = vpop.f32.mrf.mxu1  ;;  %v1240_v34 = vpop.f32.mrf.mxu2 }
 0x351   :  { %v999_v39 = vadd.f32 %v4182_v41, %v998_v8  ;;  %v1241_v40 = vadd.f32 %v4007_v23, %v1240_v34 }
 0x353   :  { %v1066_v42 = vmax.f32 %v999_v39, 0.0  ;;  %v1342_v10 = vmax.f32 %v1241_v40, 0.0  ;;  %v1506_v39 = vld [vmem:[%s5144_s1 + $0x148] sm:$0xff] }
 0x354   :  { %3279 = vmatmul.msk.f32.gmra.mxu3 %vm120_vm1, %v1499_v38 }
 0x355   :  { %v1430_v29 = vmax.f32 %v1429_v37, %v1342_v10  ;;  %1290 = vmatmul.f32.gmra.mxu2 %v1066_v42  ;;  %v1472_v10 = vld [vmem:[%s5144_s1 + $0x38] sm:$0xff] }
 0x358   :  { %v1001_v46 = vpop.f32.mrf.mxu1  ;;  %v1243_v7 = vpop.f32.mrf.mxu2 }
 0x359   :  { %v1002_v15 = vadd.f32 %v4182_v41, %v1001_v46  ;;  %v1244_v11 = vadd.f32 %v4007_v23, %v1243_v7  ;;  %v1465_v23 = vld [vmem:[%s5144_s1] sm:$0xff]  ;;  %v1507_v46 = vld [vmem:[%s5144_s1 + $0x150] sm:$0xff] }
 0x35b   :  { %v1067_v47 = vmax.f32 %v1002_v15, 0.0  ;;  %v1343_v49 = vmax.f32 %v1244_v11, 0.0  ;;  %v1473_v11 = vld [vmem:[%s5144_s1 + $0x40] sm:$0xff] }
 0x35c   :  { %3280 = vmatmul.msk.f32.gmra.mxu3 %vm120_vm1, %v1500_v54  ;;  %v1509_v54 = vld [vmem:[%s5144_s1 + $0x160] sm:$0xff] }
 0x35d   :  { %v1431_v53 = vmax.f32 %v1430_v29, %v1343_v49  ;;  %1293 = vmatmul.f32.gmra.mxu2 %v1067_v47 }
 0x360   :  { %v1246_v55 = vpop.f32.mrf.mxu2 }
 0x361   :  { %v1247_v36 = vadd.f32 %v4251_v56, %v1246_v55 }
 0x363   :  { %v1344_v22 = vmax.f32 %v1247_v36, 0.0 }
 0x364   :  { %3281 = vmatmul.msk.f32.gmra.mxu3 %vm120_vm1, %v1501_v18  ;;  %v2890_v18 = vld [vmem:[%s5152_s9 + $0x78] sm:$0xff] }
 0x365   :  { %v1432_v14 = vmax.f32 %v1431_v53, %v1344_v22  ;;  %3245 = vmatmul.msk.f32.vlgmr.msrb.gmra.mxu2 %vm120_vm1, %v1465_v23  ;;  %v1508_v53 = vld [vmem:[%s5144_s1 + $0x158] sm:$0xff]  ;;  %v1474_v23 = vld [vmem:[%s5144_s1 + $0x48] sm:$0xff]  ;;  %2911 = vmatpush.msra.mxu1 %v2890_v18 }
 0x367   :  { %v1433_v60 = vrot.slane %v1432_v14, 4 }
 0x368   :  { %v1249_v61 = vpop.f32.mrf.mxu2 }
 0x369   :  { %v1434_v2 = vmax.f32 %v1432_v14, %v1433_v60  ;;  %v1250_v17 = vadd.f32 %v4251_v56, %v1249_v61 }
 0x36b   :  { %v1435_v5 = vrot.slane %v1434_v2, 2  ;;  %v1345_v19 = vmax.f32 %v1250_v17, 0.0  ;;  %v2889_v17 = vld [vmem:[%s5152_s9 + $0x70] sm:$0xff] }
 0x36c   :  { %3282 = vmatmul.msk.f32.gmra.mxu3 %vm120_vm1, %v1502_v44  ;;  %2912 = vmatpush.msra.mxu1 %v2889_v17 }
 0x36d   :  { %v1436_v43 = vmax.f32 %v1434_v2, %v1435_v5  ;;  %3246 = vmatmul.msk.f32.gmra.mxu2 %vm120_vm1, %v1466_v4  ;;  %v1475_v4 = vld [vmem:[%s5144_s1 + $0x50] sm:$0xff] }
 0x36f   :  { %v1437_v27 = vrot.slane %v1436_v43, 1  ;;  %v4351_v5 = vpop.f32.mrf.mxu3 }
 0x370   :  { %v1252_v6 = vpop.f32.mrf.mxu2 }
 0x371   :  { %v1438_v35 = vmax.f32 %v1436_v43, %v1437_v27  ;;  %v1253_v58 = vadd.f32 %v4251_v56, %v1252_v6  ;;  %v1510_v27 = vld [vmem:[%s5144_s1 + $0x168] sm:$0xff] }
 0x373   :  { %v1346_v13 = vmax.f32 %v1253_v58, 0.0  ;;  %v4277_v50 = vsel %vm2852_vm7, %v1438_v35, %v4212_v9  ;;  %v1503_v9 = vld [vmem:[%s5144_s1 + $0x130] sm:$0xff]  ;;  %v2888_v35 = vld [vmem:[%s5152_s9 + $0x68] sm:$0xff]  ;;  %v1476_v58 = vld [vmem:[%s5144_s1 + $0x58] sm:$0xff] }
 0x374   :  { %3283 = vmatmul.msk.f32.gmra.mxu3 %vm120_vm1, %v1503_v9  ;;  %2913 = vmatpush.msra.mxu1 %v2888_v35  ;;  %v1512_v9 = vld [vmem:[%s5144_s1 + $0x178] sm:$0xff] }
 0x375   :  { %v1439_v16 = vmax.f32 %v1345_v19, %v1346_v13  ;;  %3247 = vmatmul.msk.f32.gmra.mxu2 %vm120_vm1, %v1467_v12  ;;  %v2887_v19 = vld [vmem:[%s5152_s9 + $0x60] sm:$0xff]  ;;  %v2886_v13 = vld [vmem:[%s5152_s9 + $0x58] sm:$0xff] }
 0x376   :  { %2914 = vmatpush.msra.mxu1 %v2887_v19  ;;  %v1516_v35 = vld [vmem:[%s5144_s1 + $0x198] sm:$0xff] }
 0x378   :  { %v1255_v52 = vpop.f32.mrf.mxu2  ;;  %2915 = vmatpush.msra.mxu1 %v2886_v13 }
 0x379   :  { %v1256_v20 = vadd.f32 %v4251_v56, %v1255_v52  ;;  %v2884_v52 = vld [vmem:[%s5152_s9 + $0x48] sm:$0xff] }
 0x37b   :  { %v1347_v0 = vmax.f32 %v1256_v20, 0.0  ;;  %v1477_v20 = vld [vmem:[%s5144_s1 + $0x60] sm:$0xff] }
 0x37c   :  { %3284 = vmatmul.msk.f32.gmra.mxu3 %vm120_vm1, %v1504_v24  ;;  %v2879_v24 = vld [vmem:[%s5152_s9 + $0x20] sm:$0xff] }
 0x37d   :  { %v1440_v59 = vmax.f32 %v1439_v16, %v1347_v0  ;;  %3248 = vmatmul.msk.f32.gmra.mxu2 %vm120_vm1, %v1468_v21  ;;  %v2885_v16 = vld [vmem:[%s5152_s9 + $0x50] sm:$0xff]  ;;  %v2883_v0 = vld [vmem:[%s5152_s9 + $0x40] sm:$0xff] }
 0x37e   :  { %2916 = vmatpush.msra.mxu1 %v2885_v16  ;;  %v1482_v16 = vld [vmem:[%s5144_s1 + $0x88] sm:$0xff] }
 0x37f   :  { %v4374_v12 = vpop.f32.mrf.mxu3 }
 0x380   :  { %v1258_v31 = vpop.f32.mrf.mxu2  ;;  %2917 = vmatpush.msra.mxu1 %v2884_v52 }
 0x381   :  { %v1259_v62 = vadd.f32 %v4251_v56, %v1258_v31  ;;  %v2881_v31 = vld [vmem:[%s5152_s9 + $0x30] sm:$0xff] }
 0x382   :  { %2918 = vmatpush.msra.mxu1 %v2883_v0 }
 0x383   :  { %v1348_v26 = vmax.f32 %v1259_v62, 0.0 }
 0x384   :  { %3285 = vmatmul.msk.f32.gmra.mxu3 %vm120_vm1, %v1505_v33 }
 0x385   :  { %v1441_v57 = vmax.f32 %v1440_v59, %v1348_v26  ;;  %3249 = vmatmul.msk.f32.gmra.mxu2 %vm120_vm1, %v1469_v25  ;;  %v2882_v59 = vld [vmem:[%s5152_s9 + $0x38] sm:$0xff]  ;;  %v2880_v25 = vld [vmem:[%s5152_s9 + $0x28] sm:$0xff] }
 0x386   :  { %2919 = vmatpush.msra.mxu1 %v2882_v59  ;;  %v1478_v26 = vld [vmem:[%s5144_s1 + $0x68] sm:$0xff]  ;;  %v1517_v59 = vld [vmem:[%s5144_s1 + $0x1a0] sm:$0xff] }
 0x388   :  { %v1261_v63 = vpop.f32.mrf.mxu2  ;;  %2920 = vmatpush.msra.mxu1 %v2881_v31 }
 0x389   :  { %v1262_v28 = vadd.f32 %v4251_v56, %v1261_v63  ;;  %v2878_v63 = vld [vmem:[%s5152_s9 + $0x18] sm:$0xff] }
 0x38a   :  { %2921 = vmatpush.msra.mxu1 %v2880_v25 }
 0x38b   :  { %v1349_v48 = vmax.f32 %v1262_v28, 0.0  ;;  %v1513_v28 = vld [vmem:[%s5144_s1 + $0x180] sm:$0xff] }
 0x38c   :  { %3286 = vmatmul.msk.f32.gmra.mxu3 %vm120_vm1, %v1506_v39  ;;  %2922 = vmatpush.msra.mxu1 %v2879_v24 }
 0x38d   :  { %v1442_v32 = vmax.f32 %v1441_v57, %v1349_v48  ;;  %3250 = vmatmul.msk.f32.gmra.mxu2 %vm120_vm1, %v1470_v30  ;;  %v2877_v30 = vld [vmem:[%s5152_s9 + $0x10] sm:$0xff] }
 0x38e   :  { %2923 = vmatpush.msra.mxu1 %v2878_v63 }
 0x390   :  { %v1264_v3 = vpop.f32.mrf.mxu2  ;;  %2924 = vmatpush.msra.mxu1 %v2877_v30 }
 0x391   :  { %v1265_v37 = vadd.f32 %v4251_v56, %v1264_v3  ;;  %v1479_v3 = vld [vmem:[%s5144_s1 + $0x70] sm:$0xff] }
 0x393   :  { %v1350_v8 = vmax.f32 %v1265_v37, 0.0 }
 0x394   :  { %3287 = vmatmul.msk.f32.gmra.mxu3 %vm120_vm1, %v1507_v46 }
 0x395   :  { %v1443_v34 = vmax.f32 %v1442_v32, %v1350_v8  ;;  %3251 = vmatmul.msk.f32.gmra.mxu2 %vm120_vm1, %v1471_v1  ;;  %v2876_v32 = vld [vmem:[%s5152_s9 + $0x8] sm:$0xff]  ;;  %v2875_v1 = vld [vmem:[%s5152_s9] sm:$0xff] }
 0x396   :  { %2925 = vmatpush.msra.mxu1 %v2876_v32 }
 0x398   :  { %v1267_v40 = vpop.f32.mrf.mxu2  ;;  %2926 = vmatpush.msra.mxu1 %v2875_v1  ;;  %v1519_v1 = vld [vmem:[%s5144_s1 + $0x1b0] sm:$0xff] }
 0x399   :  { %v1268_v42 = vadd.f32 %v4251_v56, %v1267_v40 }
 0x39b   :  { %v1351_v29 = vmax.f32 %v1268_v42, 0.0  ;;  %v1514_v42 = vld [vmem:[%s5144_s1 + $0x188] sm:$0xff] }
 0x39c   :  { %3288 = vmatmul.msk.f32.gmra.mxu3 %vm120_vm1, %v1508_v53 }
 0x39d   :  { %v1444_v45 = vmax.f32 %v1443_v34, %v1351_v29  ;;  %3252 = vmatmul.msk.f32.gmra.mxu2 %vm120_vm1, %v1472_v10 }
 0x3a0   :  { %v1270_v7 = vpop.f32.mrf.mxu2 }
 0x3a1   :  { %v1271_v15 = vadd.f32 %v4251_v56, %v1270_v7 }
 0x3a3   :  { %v1352_v47 = vmax.f32 %v1271_v15, 0.0 }
 0x3a4   :  { %3289 = vmatmul.msk.f32.gmra.mxu3 %vm120_vm1, %v1509_v54 }
 0x3a5   :  { %v1445_v49 = vmax.f32 %v1444_v45, %v1352_v47  ;;  %3253 = vmatmul.msk.f32.gmra.mxu2 %vm120_vm1, %v1473_v11  ;;  %v1480_v47 = vld [vmem:[%s5144_s1 + $0x78] sm:$0xff] }
 0x3a7   :  { %v1446_v38 = vrot.slane %v1445_v49, 4 }
 0x3a8   :  { %v4338_v55 = vpop.f32.mrf.mxu2 }
 0x3a9   :  { %v1447_v36 = vmax.f32 %v1445_v49, %v1446_v38  ;;  %v1274_v8 = vadd.f32 %v4251_v56, %v4338_v55 }
 0x3ab   :  { %v1448_v22 = vrot.slane %v1447_v36, 2  ;;  %v1353_v10 = vmax.f32 %v1274_v8, 0.0 }
 0x3ac   :  { %3290 = vmatmul.msk.f32.gmra.mxu3 %vm120_vm1, %v1510_v27 }
 0x3ad   :  { %v1449_v14 = vmax.f32 %v1447_v36, %v1448_v22  ;;  %3254 = vmatmul.msk.f32.gmra.mxu2 %vm120_vm1, %v1474_v23  ;;  %v1515_v22 = vld [vmem:[%s5144_s1 + $0x190] sm:$0xff] }
 0x3af   :  { %v1450_v60 = vrot.slane %v1449_v14, 1 }
 0x3b0   :  { %v1276_v61 = vpop.f32.mrf.mxu2 }
 0x3b1   :  { %v1451_v2 = vmax.f32 %v1449_v14, %v1450_v60  ;;  %v1277_v33 = vadd.f32 %v4251_v56, %v1276_v61 }
 0x3b3   :  { %v4355_v43 = vsel %vm2854_vm8, %v1451_v2, %v4277_v50  ;;  %v1511_v50 = vld [vmem:[%s5144_s1 + $0x170] sm:$0xff]  ;;  %v1354_v39 = vmax.f32 %v1277_v33, 0.0 }
 0x3b4   :  { %3291 = vmatmul.msk.f32.gmra.mxu3 %vm120_vm1, %v1511_v50 }
 0x3b5   :  { %3255 = vmatmul.msk.f32.gmra.mxu2 %vm120_vm1, %v1475_v4  ;;  %v1452_v7 = vmax.f32 %v1353_v10, %v1354_v39  ;;  %v1481_v4 = vld [vmem:[%s5144_s1 + $0x80] sm:$0xff]  ;;  %v1520_v10 = vld [vmem:[%s5144_s1 + $0x1b8] sm:$0xff] }
 0x3b6   :  { %v1485_v39 = vld [vmem:[%s5144_s1 + $0xa0] sm:$0xff] }
 0x3b7   :  { %v4396_v21 = vpop.f32.mrf.mxu3 }
 0x3b8   :  { %v1279_v6 = vpop.f32.mrf.mxu2 }
 0x3b9   :  { %v1280_v34 = vadd.f32 %v4251_v56, %v1279_v6 }
 0x3bb   :  { %v1355_v29 = vmax.f32 %v1280_v34, 0.0 }
 0x3bc   :  { %3292 = vmatmul.msk.f32.gmra.mxu3 %vm120_vm1, %v1512_v9 }
 0x3bd   :  { %3256 = vmatmul.msk.f32.gmra.mxu2 %vm120_vm1, %v1476_v58  ;;  %v1453_v53 = vmax.f32 %v1452_v7, %v1355_v29 }
 0x3bf   :  { %v4418_v57 = vpop.f32.mrf.mxu3 }
 0x3c0   :  { %v1282_v44 = vpop.f32.mrf.mxu2 }
 0x3c1   :  { %v1283_v40 = vadd.f32 %v4251_v56, %v1282_v44 }
 0x3c3   :  { %v1356_v15 = vmax.f32 %v1283_v40, 0.0 }
 0x3c4   :  { %3293 = vmatmul.msk.f32.gmra.mxu3 %vm120_vm1, %v1513_v28 }
 0x3c5   :  { %3257 = vmatmul.msk.f32.gmra.mxu2 %vm120_vm1, %v1477_v20  ;;  %v1454_v36 = vmax.f32 %v1453_v53, %v1356_v15 }
 0x3c7   :  { %v4441_v37 = vpop.f32.mrf.mxu3 }
 0x3c8   :  { %v1285_v62 = vpop.f32.mrf.mxu2 }
 0x3c9   :  { %v1286_v45 = vadd.f32 %v4251_v56, %v1285_v62 }
 0x3cb   :  { %v1357_v38 = vmax.f32 %v1286_v45, 0.0 }
 0x3cc   :  { %3294 = vmatmul.msk.f32.gmra.mxu3 %vm120_vm1, %v1514_v42 }
 0x3cd   :  { %3258 = vmatmul.msk.f32.gmra.mxu2 %vm120_vm1, %v1478_v26  ;;  %v1455_v14 = vmax.f32 %v1454_v36, %v1357_v38  ;;  %v1483_v26 = vld [vmem:[%s5144_s1 + $0x90] sm:$0xff] }
 0x3ce   :  { %v1487_v38 = vld [vmem:[%s5144_s1 + $0xb0] sm:$0xff] }
 0x3cf   :  { %v4460_v49 = vpop.f32.mrf.mxu3 }
 0x3d0   :  { %v1288_v48 = vpop.f32.mrf.mxu2 }
 0x3d1   :  { %v1289_v11 = vadd.f32 %v4251_v56, %v1288_v48  ;;  %v4508_v48 = vld [vmem:[%s5147_s4] ss:$0 sm:$0xff] }
 0x3d3   :  { %v1358_v23 = vmax.f32 %v1289_v11, 0.0  ;;  %v1521_v11 = vld [vmem:[%s5144_s1 + $0x1c0] sm:$0xff] }
 0x3d4   :  { %3295 = vmatmul.msk.f32.gmra.mxu3 %vm120_vm1, %v1515_v22 }
 0x3d5   :  { %3259 = vmatmul.msk.f32.gmra.mxu2 %vm120_vm1, %v1479_v3  ;;  %v1456_v61 = vmax.f32 %v1455_v14, %v1358_v23  ;;  %v1522_v23 = vld [vmem:[%s5144_s1 + $0x1c8] sm:$0xff] }
 0x3d7   :  { %v4472_v18 = vpop.f32.mrf.mxu3 }
 0x3d8   :  { %v1291_v46 = vpop.f32.mrf.mxu2 }
 0x3d9   :  { %v1292_v55 = vadd.f32 %v4251_v56, %v1291_v46  ;;  %v1486_v46 = vld [vmem:[%s5144_s1 + $0xa8] sm:$0xff] }
 0x3db   :  { %v1359_v54 = vmax.f32 %v1292_v55, 0.0 }
 0x3dc   :  { %3296 = vmatmul.msk.f32.gmra.mxu3 %vm120_vm1, %v1516_v35 }
 0x3dd   :  { %3260 = vmatmul.msk.f32.gmra.mxu2 %vm120_vm1, %v1480_v47  ;;  %v1457_v27 = vmax.f32 %v1456_v61, %v1359_v54  ;;  %v1488_v54 = vld [vmem:[%s5144_s1 + $0xb8] sm:$0xff] }
 0x3df   :  { %v4483_v44 = vpop.f32.mrf.mxu3 }
 0x3e0   :  { %v1294_v60 = vpop.f32.mrf.mxu2 }
 0x3e1   :  { %v1295_v2 = vadd.f32 %v4251_v56, %v1294_v60 }
 0x3e3   :  { %v1360_v17 = vmax.f32 %v1295_v2, 0.0  ;;  %v1523_v2 = vld [vmem:[%s5144_s1 + $0x1d0] sm:$0xff] }
 0x3e4   :  { %3297 = vmatmul.msk.f32.gmra.mxu3 %vm120_vm1, %v1517_v59 }
 0x3e5   :  { %v1458_v6 = vmax.f32 %v1457_v27, %v1360_v17  ;;  %3261 = vmatmul.msk.f32.gmra.mxu2 %vm120_vm1, %v1481_v4  ;;  %v1489_v17 = vld [vmem:[%s5144_s1 + $0xc0] sm:$0xff] }
 0x3e7   :  { %v1459_v58 = vrot.slane %v1458_v6, 4  ;;  %v4495_v24 = vpop.f32.mrf.mxu3 }
 0x3e8   :  { %v1738_v19 = vpop.f32.mrf.mxu2 }
 0x3e9   :  { %v1460_v13 = vmax.f32 %v1458_v6, %v1459_v58  ;;  %v1739_v50 = vadd.f32 %v4109_v51, %v1738_v19  ;;  %v1524_v58 = vld [vmem:[%s5144_s1 + $0x1d8] sm:$0xff] }
 0x3eb   :  { %v1461_v52 = vrot.slane %v1460_v13, 2  ;;  %v1930_v20 = vmax.f32 %v1739_v50, 0.0  ;;  %v1490_v50 = vld [vmem:[%s5144_s1 + $0xc8] sm:$0xff] }
 0x3ed   :  { %v1462_v0 = vmax.f32 %v1460_v13, %v1461_v52  ;;  %3262 = vmatmul.msk.f32.gmra.mxu2 %vm120_vm1, %v1482_v16  ;;  %3309 = vmatmul.msk.f32.vlgmr.msrb.gmra.mxu0 %vm602_vm2, %v1930_v20  ;;  %v1525_v20 = vld [vmem:[%s5144_s1 + $0x1e0] sm:$0xff] }
 0x3ef   :  { %v1463_v9 = vrot.slane %v1462_v0, 1  ;;  %v4514_v33 = vpop.f32.mrf.mxu3 }
 0x3f0   :  { %v1741_v31 = vpop.f32.mrf.mxu2 }
 0x3f1   :  { %v1742_v62 = vadd.f32 %v4109_v51, %v1741_v31  ;;  %v1464_v25 = vmax.f32 %v1462_v0, %v1463_v9  ;;  %v1518_v51 = vld [vmem:[%s5144_s1 + $0x1a8] sm:$0xff]  ;;  %v1491_v9 = vld [vmem:[%s5144_s1 + $0xd0] sm:$0xff] }
 0x3f2   :  { %3298 = vmatmul.msk.f32.gmra.mxu3 %vm120_vm1, %v1518_v51 }
 0x3f3   :  { %v1931_v63 = vmax.f32 %v1742_v62, 0.0  ;;  %v2857_v28 = vsel %vm2856_vm9, %v1464_v25, %v4355_v43  ;;  %v1484_v43 = vld [vmem:[%s5144_s1 + $0x98] sm:$0xff]  ;;  %v1526_v25 = vld [vmem:[%s5144_s1 + $0x1e8] sm:$0xff] }
 0x3f4   :  { %2927 = vmatmul.f32.vlgmr.msra.gmra.mxu1 %v2857_v28  ;;  %v1492_v28 = vld [vmem:[%s5144_s1 + $0xd8] sm:$0xff] }
 0x3f5   :  { %3263 = vmatmul.msk.f32.gmra.mxu2 %vm120_vm1, %v1483_v26  ;;  %3310 = vmatmul.msk.f32.gmra.mxu0 %vm602_vm2, %v1931_v63 }
 0x3f7   :  { %v4526_v40 = vpop.f32.mrf.mxu3 }
 0x3f8   :  { %v1744_v30 = vpop.f32.mrf.mxu2 }
 0x3f9   :  { %v1745_v32 = vadd.f32 %v4508_v48, %v1744_v30 }
 0x3fa   :  { %3299 = vmatmul.msk.f32.gmra.mxu3 %vm120_vm1, %v1519_v1 }
 0x3fb   :  { %v1932_v3 = vmax.f32 %v1745_v32, 0.0  ;;  %v1527_v32 = vld [vmem:[%s5144_s1 + $0x1f0] sm:$0xff] }
 0x3fd   :  { %3264 = vmatmul.msk.f32.gmra.mxu2 %vm120_vm1, %v1484_v43  ;;  %3311 = vmatmul.msk.f32.gmra.mxu0 %vm602_vm2, %v1932_v3 }
 0x3ff   :  { %v4538_v7 = vpop.f32.mrf.mxu3 }
 0x400   :  { %v1747_v8 = vpop.f32.mrf.mxu2 }
 0x401   :  { %v1748_v34 = vadd.f32 %v4508_v48, %v1747_v8 }
 0x402   :  { %3300 = vmatmul.msk.f32.gmra.mxu3 %vm120_vm1, %v1520_v10 }
 0x403   :  { %v1933_v42 = vmax.f32 %v1748_v34, 0.0  ;;  %v1528_v34 = vld [vmem:[%s5144_s1 + $0x1f8] sm:$0xff] }
 0x405   :  { %3265 = vmatmul.msk.f32.gmra.mxu2 %vm120_vm1, %v1485_v39  ;;  %3312 = vmatmul.msk.f32.gmra.mxu0 %vm602_vm2, %v1933_v42 }
 0x407   :  { %v4550_v55 = vpop.f32.mrf.mxu3 }
 0x408   :  { %v1750_v29 = vpop.f32.mrf.mxu2 }
 0x409   :  { %v1751_v45 = vadd.f32 %v4508_v48, %v1750_v29 }
 0x40a   :  { %3301 = vmatmul.msk.f32.gmra.mxu3 %vm120_vm1, %v1521_v11 }
 0x40b   :  { %v1934_v15 = vmax.f32 %v1751_v45, 0.0 }
 0x40d   :  { %3266 = vmatmul.msk.f32.gmra.mxu2 %vm120_vm1, %v1486_v46  ;;  %3313 = vmatmul.msk.f32.gmra.mxu0 %vm602_vm2, %v1934_v15 }
 0x40f   :  { %v4562_v60 = vpop.f32.mrf.mxu3 }
 0x410   :  { %v1753_v47 = vpop.f32.mrf.mxu2 }
 0x411   :  { %v1754_v53 = vadd.f32 %v4508_v48, %v1753_v47 }
 0x412   :  { %3302 = vmatmul.msk.f32.gmra.mxu3 %vm120_vm1, %v1522_v23 }
 0x413   :  { %v1935_v36 = vmax.f32 %v1754_v53, 0.0 }
 0x415   :  { %3267 = vmatmul.msk.f32.gmra.mxu2 %vm120_vm1, %v1487_v38  ;;  %3314 = vmatmul.msk.f32.gmra.mxu0 %vm602_vm2, %v1935_v36 }
 0x417   :  { %v4574_v6 = vpop.f32.mrf.mxu3 }
 0x418   :  { %v1756_v22 = vpop.f32.mrf.mxu2 }
 0x419   :  { %v1757_v14 = vadd.f32 %v4508_v48, %v1756_v22 }
 0x41a   :  { %3303 = vmatmul.msk.f32.gmra.mxu3 %vm120_vm1, %v1523_v2 }
 0x41b   :  { %v1936_v61 = vmax.f32 %v1757_v14, 0.0 }
 0x41d   :  { %3268 = vmatmul.msk.f32.gmra.mxu2 %vm120_vm1, %v1488_v54  ;;  %3315 = vmatmul.msk.f32.gmra.mxu0 %vm602_vm2, %v1936_v61 }
 0x41f   :  { %v4586_v16 = vpop.f32.mrf.mxu3 }
 0x420   :  { %v1759_v4 = vpop.f32.mrf.mxu2 }
 0x421   :  { %v1760_v27 = vadd.f32 %v4508_v48, %v1759_v4 }
 0x422   :  { %3304 = vmatmul.msk.f32.gmra.mxu3 %vm120_vm1, %v1524_v58 }
 0x423   :  { %v1937_v35 = vmax.f32 %v1760_v27, 0.0 }
 0x425   :  { %3269 = vmatmul.msk.f32.gmra.mxu2 %vm120_vm1, %v1489_v17  ;;  %3316 = vmatmul.msk.f32.gmra.mxu0 %vm602_vm2, %v1937_v35 }
 0x427   :  { %v4598_v31 = vpop.f32.mrf.mxu3 }
 0x428   :  { %v1762_v19 = vpop.f32.mrf.mxu2 }
 0x429   :  { %v1763_v13 = vadd.f32 %v4508_v48, %v1762_v19 }
 0x42a   :  { %3305 = vmatmul.msk.f32.gmra.mxu3 %vm120_vm1, %v1525_v20 }
 0x42b   :  { %v1938_v52 = vmax.f32 %v1763_v13, 0.0 }
 0x42d   :  { %3270 = vmatmul.msk.f32.gmra.mxu2 %vm120_vm1, %v1490_v50  ;;  %3317 = vmatmul.msk.f32.gmra.mxu0 %vm602_vm2, %v1938_v52 }
 0x42f   :  { %v4610_v51 = vpop.f32.mrf.mxu3 }
 0x430   :  { %v1765_v0 = vpop.f32.mrf.mxu2 }
 0x431   :  { %v1766_v59 = vadd.f32 %v4508_v48, %v1765_v0 }
 0x432   :  { %3306 = vmatmul.msk.f32.gmra.mxu3 %vm120_vm1, %v1526_v25 }
 0x433   :  { %v1939_v62 = vmax.f32 %v1766_v59, 0.0 }
 0x435   :  { %3271 = vmatmul.msk.f32.gmra.mxu2 %vm120_vm1, %v1491_v9  ;;  %3318 = vmatmul.msk.f32.gmra.mxu0 %vm602_vm2, %v1939_v62 }
 0x437   :  { %v4619_v1 = vpop.f32.mrf.mxu3 }
 0x438   :  { %v1768_v26 = vpop.f32.mrf.mxu2 }
 0x439   :  { %v1769_v63 = vadd.f32 %v4508_v48, %v1768_v26 }
 0x43a   :  { %3307 = vmatmul.msk.f32.gmra.mxu3 %vm120_vm1, %v1527_v32 }
 0x43b   :  { %v1940_v30 = vmax.f32 %v1769_v63, 0.0 }
 0x43d   :  { %3272 = vmatmul.msk.f32.gmra.mxu2 %vm120_vm1, %v1492_v28  ;;  %3319 = vmatmul.msk.f32.gmra.mxu0 %vm602_vm2, %v1940_v30 }
 0x43f   :  { %v4627_v10 = vpop.f32.mrf.mxu3 }
 0x440   :  { %v1771_v43 = vpop.f32.mrf.mxu2 }
 0x441   :  { %v1772_v3 = vadd.f32 %v4508_v48, %v1771_v43 }
 0x442   :  { %3308 = vmatmul.msk.f32.gmra.mxu3 %vm120_vm1, %v1528_v34 }
 0x443   :  { %v1941_v8 = vmax.f32 %v1772_v3, 0.0 }
 0x445   :  { %3320 = vmatmul.msk.f32.gmra.mxu0 %vm602_vm2, %v1941_v8 }
 0x447   :  { %v4631_v15 = vpop.f32.mrf.mxu3 }
 0x448   :  { %v1774_v39 = vpop.f32.mrf.mxu2 }
 0x449   :  { %v1775_v42 = vadd.f32 %v4508_v48, %v1774_v39 }
 0x44b   :  { %v1942_v29 = vmax.f32 %v1775_v42, 0.0 }
 0x44d   :  { %3321 = vmatmul.msk.f32.gmra.mxu0 %vm602_vm2, %v1942_v29 }
 0x44f   :  { %v4635_v36 = vpop.f32.mrf.mxu3 }
 0x450   :  { %v1777_v45 = vpop.f32.mrf.mxu2 }
 0x451   :  { %v1778_v46 = vadd.f32 %v4508_v48, %v1777_v45 }
 0x453   :  { %v1943_v11 = vmax.f32 %v1778_v46, 0.0 }
 0x455   :  { %3322 = vmatmul.msk.f32.gmra.mxu0 %vm602_vm2, %v1943_v11 }
 0x457   :  { %v4640_v54 = vpop.f32.mrf.mxu3 }
 0x458   :  { %v1780_v47 = vpop.f32.mrf.mxu2 }
 0x459   :  { %v1781_v53 = vadd.f32 %v4508_v48, %v1780_v47 }
 0x45b   :  { %v1944_v38 = vmax.f32 %v1781_v53, 0.0 }
 0x45d   :  { %3323 = vmatmul.msk.f32.gmra.mxu0 %vm602_vm2, %v1944_v38 }
 0x45f   :  { %v4645_v19 = vpop.f32.mrf.mxu3 }
 0x460   :  { %v1783_v23 = vpop.f32.mrf.mxu2 }
 0x461   :  { %v1784_v22 = vadd.f32 %v4508_v48, %v1783_v23 }
 0x463   :  { %v1945_v14 = vmax.f32 %v1784_v22, 0.0 }
 0x465   :  { %3324 = vmatmul.msk.f32.gmra.mxu0 %vm602_vm2, %v1945_v14 }
 0x467   :  { %v4651_v25 = vpop.f32.mrf.mxu3 }
 0x468   :  { %v1786_v61 = vpop.f32.mrf.mxu2 }
 0x469   :  { %v1787_v2 = vadd.f32 %v4508_v48, %v1786_v61 }
 0x46a   :  { %v2203_v4 = vpop.f32.mrf.mxu0 }
 0x46b   :  { %v1946_v27 = vmax.f32 %v1787_v2, 0.0  ;;  %v2204_v17 = vadd.f32 %v4182_v41, %v2203_v4 }
 0x46d   :  { %v2395_v35 = vmax.f32 %v2204_v17, 0.0  ;;  %3325 = vmatmul.msk.f32.gmra.mxu0 %vm602_vm2, %v1946_v27 }
 0x46f   :  { %2475 = vmatmul.f32.vlgmr.msrb.gmra.mxu3 %v2395_v35 }
 0x470   :  { %v1789_v58 = vpop.f32.mrf.mxu2 }
 0x471   :  { %v1790_v13 = vadd.f32 %v4508_v48, %v1789_v58 }
 0x472   :  { %v2206_v50 = vpop.f32.mrf.mxu0 }
 0x473   :  { %v1947_v52 = vmax.f32 %v1790_v13, 0.0  ;;  %v2207_v20 = vadd.f32 %v4182_v41, %v2206_v50  ;;  %v4674_v13 = vld [vmem:[%s5149_s6] ss:$0 sm:$0xff] }
 0x475   :  { %v2396_v0 = vmax.f32 %v2207_v20, 0.0  ;;  %3326 = vmatmul.msk.f32.gmra.mxu0 %vm602_vm2, %v1947_v52  ;;  %v4657_v34 = vpop.f32.mrf.mxu3 }
 0x477   :  { %2478 = vmatmul.f32.gmra.mxu3 %v2396_v0 }
 0x478   :  { %v1792_v59 = vpop.f32.mrf.mxu2 }
 0x479   :  { %v1793_v9 = vadd.f32 %v4508_v48, %v1792_v59 }
 0x47a   :  { %v2209_v62 = vpop.f32.mrf.mxu0 }
 0x47b   :  { %v1948_v26 = vmax.f32 %v1793_v9, 0.0  ;;  %v2210_v63 = vadd.f32 %v4182_v41, %v2209_v62 }
 0x47d   :  { %v2397_v28 = vmax.f32 %v2210_v63, 0.0  ;;  %3327 = vmatmul.msk.f32.gmra.mxu0 %vm602_vm2, %v1948_v26  ;;  %v4663_v53 = vpop.f32.mrf.mxu3 }
 0x47f   :  { %2481 = vmatmul.f32.gmra.mxu3 %v2397_v28 }
 0x480   :  { %v1795_v30 = vpop.f32.mrf.mxu2 }
 0x481   :  { %v1796_v32 = vadd.f32 %v4508_v48, %v1795_v30 }
 0x482   :  { %v2212_v43 = vpop.f32.mrf.mxu0 }
 0x483   :  { %v1949_v3 = vmax.f32 %v1796_v32, 0.0  ;;  %v2213_v8 = vadd.f32 %v4182_v41, %v2212_v43 }
 0x485   :  { %v2398_v39 = vmax.f32 %v2213_v8, 0.0  ;;  %3328 = vmatmul.msk.f32.gmra.mxu0 %vm602_vm2, %v1949_v3  ;;  %v4668_v27 = vpop.f32.mrf.mxu3 }
 0x487   :  { %2484 = vmatmul.f32.gmra.mxu3 %v2398_v39 }
 0x488   :  { %v1798_v42 = vpop.f32.mrf.mxu2 }
 0x489   :  { %v1799_v29 = vadd.f32 %v4508_v48, %v1798_v42 }
 0x48a   :  { %v2215_v45 = vpop.f32.mrf.mxu0 }
 0x48b   :  { %v1950_v46 = vmax.f32 %v1799_v29, 0.0  ;;  %v2216_v11 = vadd.f32 %v4182_v41, %v2215_v45 }
 0x48d   :  { %v2399_v47 = vmax.f32 %v2216_v11, 0.0  ;;  %3329 = vmatmul.msk.f32.gmra.mxu0 %vm602_vm2, %v1950_v46  ;;  %v4679_v59 = vpop.f32.mrf.mxu3 }
 0x48f   :  { %2487 = vmatmul.f32.gmra.mxu3 %v2399_v47 }
 0x490   :  { %v1801_v38 = vpop.f32.mrf.mxu2 }
 0x491   :  { %v1802_v23 = vadd.f32 %v4508_v48, %v1801_v38 }
 0x492   :  { %v2218_v22 = vpop.f32.mrf.mxu0 }
 0x493   :  { %v1951_v14 = vmax.f32 %v1802_v23, 0.0  ;;  %v2219_v61 = vadd.f32 %v4182_v41, %v2218_v22 }
 0x495   :  { %v2400_v2 = vmax.f32 %v2219_v61, 0.0  ;;  %3330 = vmatmul.msk.f32.gmra.mxu0 %vm602_vm2, %v1951_v14  ;;  %v4685_v3 = vpop.f32.mrf.mxu3 }
 0x497   :  { %2490 = vmatmul.f32.gmra.mxu3 %v2400_v2 }
 0x498   :  { %v1804_v4 = vpop.f32.mrf.mxu2 }
 0x499   :  { %v1805_v17 = vadd.f32 %v4508_v48, %v1804_v4 }
 0x49a   :  { %v2221_v35 = vpop.f32.mrf.mxu0 }
 0x49b   :  { %v1952_v58 = vmax.f32 %v1805_v17, 0.0  ;;  %v2222_v50 = vadd.f32 %v4674_v13, %v2221_v35 }
 0x49d   :  { %v2401_v52 = vmax.f32 %v2222_v50, 0.0  ;;  %3331 = vmatmul.msk.f32.gmra.mxu0 %vm602_vm2, %v1952_v58  ;;  %v4691_v47 = vpop.f32.mrf.mxu3 }
 0x49f   :  { %2493 = vmatmul.f32.gmra.mxu3 %v2401_v52 }
 0x4a0   :  { %v1807_v41 = vpop.f32.mrf.mxu2 }
 0x4a1   :  { %v1808_v20 = vadd.f32 %v4508_v48, %v1807_v41 }
 0x4a2   :  { %v2224_v0 = vpop.f32.mrf.mxu0 }
 0x4a3   :  { %v1953_v9 = vmax.f32 %v1808_v20, 0.0  ;;  %v2225_v62 = vadd.f32 %v4674_v13, %v2224_v0  ;;  %v1823_v20 = vadd.f32 %v4508_v48, %v4351_v5 }
 0x4a5   :  { %v2402_v26 = vmax.f32 %v2225_v62, 0.0  ;;  %3332 = vmatmul.msk.f32.gmra.mxu0 %vm602_vm2, %v1953_v9  ;;  %v4696_v17 = vpop.f32.mrf.mxu3  ;;  %v1958_v62 = vmax.f32 %v1823_v20, 0.0 }
 0x4a7   :  { %2496 = vmatmul.f32.gmra.mxu3 %v2402_v26 }
 0x4a8   :  { %v1810_v63 = vpop.f32.mrf.mxu2 }
 0x4a9   :  { %v1811_v28 = vadd.f32 %v4508_v48, %v1810_v63 }
 0x4aa   :  { %v2227_v30 = vpop.f32.mrf.mxu0 }
 0x4ab   :  { %v1954_v32 = vmax.f32 %v1811_v28, 0.0  ;;  %v2228_v43 = vadd.f32 %v4674_v13, %v2227_v30  ;;  %v1826_v28 = vadd.f32 %v4508_v48, %v4374_v12 }
 0x4ad   :  { %v2403_v8 = vmax.f32 %v2228_v43, 0.0  ;;  %3333 = vmatmul.msk.f32.gmra.mxu0 %vm602_vm2, %v1954_v32  ;;  %v4703_v9 = vpop.f32.mrf.mxu3  ;;  %v1959_v32 = vmax.f32 %v1826_v28, 0.0 }
 0x4af   :  { %2499 = vmatmul.f32.gmra.mxu3 %v2403_v8 }
 0x4b0   :  { %v1813_v39 = vpop.f32.mrf.mxu2 }
 0x4b1   :  { %v1814_v42 = vadd.f32 %v4508_v48, %v1813_v39  ;;  %v1829_v39 = vadd.f32 %v4508_v48, %v4396_v21  ;;  %v1835_v21 = vadd.f32 %v4508_v48, %v4441_v37 }
 0x4b2   :  { %v2230_v29 = vpop.f32.mrf.mxu0 }
 0x4b3   :  { %v1955_v45 = vmax.f32 %v1814_v42, 0.0  ;;  %v2231_v46 = vadd.f32 %v4674_v13, %v2230_v29  ;;  %v1960_v29 = vmax.f32 %v1829_v39, 0.0  ;;  %v1844_v39 = vadd.f32 %v4508_v48, %v4483_v44 }
 0x4b5   :  { %v2404_v11 = vmax.f32 %v2231_v46, 0.0  ;;  %3334 = vmatmul.msk.f32.gmra.mxu0 %vm602_vm2, %v1955_v45  ;;  %v4710_v8 = vpop.f32.mrf.mxu3 }
 0x4b7   :  { %2502 = vmatmul.f32.gmra.mxu3 %v2404_v11  ;;  %v1832_v11 = vadd.f32 %v4508_v48, %v4418_v57  ;;  %v1838_v57 = vadd.f32 %v4508_v48, %v4460_v49 }
 0x4b8   :  { %v1816_v38 = vpop.f32.mrf.mxu2 }
 0x4b9   :  { %v1817_v23 = vadd.f32 %v4508_v48, %v1816_v38 }
 0x4ba   :  { %v2233_v22 = vpop.f32.mrf.mxu0 }
 0x4bb   :  { %v1956_v14 = vmax.f32 %v1817_v23, 0.0  ;;  %v2234_v61 = vadd.f32 %v4674_v13, %v2233_v22  ;;  %v1961_v23 = vmax.f32 %v1832_v11, 0.0 }
 0x4bd   :  { %v2405_v2 = vmax.f32 %v2234_v61, 0.0  ;;  %3335 = vmatmul.msk.f32.gmra.mxu0 %vm602_vm2, %v1956_v14  ;;  %v4717_v12 = vpop.f32.mrf.mxu3 }
 0x4bf   :  { %2505 = vmatmul.f32.gmra.mxu3 %v2405_v2 }
 0x4c0   :  { %v1819_v4 = vpop.f32.mrf.mxu2 }
 0x4c1   :  { %v1820_v35 = vadd.f32 %v4508_v48, %v1819_v4  ;;  %v1962_v4 = vmax.f32 %v1835_v21, 0.0 }
 0x4c2   :  { %v2236_v58 = vpop.f32.mrf.mxu0 }
 0x4c3   :  { %v1957_v50 = vmax.f32 %v1820_v35, 0.0  ;;  %v2237_v52 = vadd.f32 %v4674_v13, %v2236_v58 }
 0x4c5   :  { %v2406_v41 = vmax.f32 %v2237_v52, 0.0  ;;  %3336 = vmatmul.msk.f32.gmra.mxu0 %vm602_vm2, %v1957_v50  ;;  %v4725_v61 = vpop.f32.mrf.mxu3 }
 0x4c7   :  { %2508 = vmatmul.f32.gmra.mxu3 %v2406_v41  ;;  %v1963_v41 = vmax.f32 %v1838_v57, 0.0 }
 0x4ca   :  { %v2239_v0 = vpop.f32.mrf.mxu0 }
 0x4cb   :  { %v2240_v26 = vadd.f32 %v4674_v13, %v2239_v0  ;;  %v1841_v0 = vadd.f32 %v4508_v48, %v4472_v18 }
 0x4cd   :  { %v2407_v63 = vmax.f32 %v2240_v26, 0.0  ;;  %3337 = vmatmul.msk.f32.gmra.mxu0 %vm602_vm2, %v1958_v62  ;;  %v1964_v28 = vmax.f32 %v1841_v0, 0.0  ;;  %v4755_v0 = vld [vmem:[%s5151_s8] ss:$0 sm:$0xff] }
 0x4cf   :  { %2511 = vmatmul.f32.gmra.mxu3 %v2407_v63 }
 0x4d2   :  { %v2242_v30 = vpop.f32.mrf.mxu0 }
 0x4d3   :  { %v2243_v43 = vadd.f32 %v4674_v13, %v2242_v30 }
 0x4d5   :  { %v2408_v5 = vmax.f32 %v2243_v43, 0.0  ;;  %3338 = vmatmul.msk.f32.gmra.mxu0 %vm602_vm2, %v1959_v32 }
 0x4d7   :  { %2514 = vmatmul.f32.gmra.mxu3 %v2408_v5 }
 0x4da   :  { %v2245_v42 = vpop.f32.mrf.mxu0 }
 0x4db   :  { %v2246_v45 = vadd.f32 %v4674_v13, %v2245_v42 }
 0x4dd   :  { %v2409_v46 = vmax.f32 %v2246_v45, 0.0  ;;  %3339 = vmatmul.msk.f32.gmra.mxu0 %vm602_vm2, %v1960_v29  ;;  %v1965_v45 = vmax.f32 %v1844_v39, 0.0 }
 0x4df   :  { %2517 = vmatmul.f32.gmra.mxu3 %v2409_v46 }
 0x4e2   :  { %v2248_v38 = vpop.f32.mrf.mxu0 }
 0x4e3   :  { %v2249_v22 = vadd.f32 %v4674_v13, %v2248_v38 }
 0x4e5   :  { %v2410_v14 = vmax.f32 %v2249_v22, 0.0  ;;  %3340 = vmatmul.msk.f32.gmra.mxu0 %vm602_vm2, %v1961_v23  ;;  %v1847_v22 = vadd.f32 %v4508_v48, %v4495_v24 }
 0x4e7   :  { %2520 = vmatmul.f32.gmra.mxu3 %v2410_v14 }
 0x4ea   :  { %v2251_v2 = vpop.f32.mrf.mxu0 }
 0x4eb   :  { %v2252_v35 = vadd.f32 %v4674_v13, %v2251_v2  ;;  %v1966_v2 = vmax.f32 %v1847_v22, 0.0  ;;  %v1859_v22 = vadd.f32 %v4508_v48, %v4550_v55 }
 0x4ed   :  { %v2411_v58 = vmax.f32 %v2252_v35, 0.0  ;;  %3341 = vmatmul.msk.f32.gmra.mxu0 %vm602_vm2, %v1962_v4 }
 0x4ef   :  { %2523 = vmatmul.f32.gmra.mxu3 %v2411_v58 }
 0x4f2   :  { %v2254_v50 = vpop.f32.mrf.mxu0  ;;  %v2476_v52 = vpop.f32.mrf.mxu3 }
 0x4f3   :  { %v2255_v20 = vadd.f32 %v4674_v13, %v2254_v50  ;;  %v2477_v62 = vadd.f32 %v4251_v56, %v2476_v52  ;;  %v1850_v50 = vadd.f32 %v4508_v48, %v4514_v33  ;;  %v1853_v33 = vadd.f32 %v4508_v48, %v4526_v40 }
 0x4f5   :  { %v2412_v37 = vmax.f32 %v2255_v20, 0.0  ;;  %3342 = vmatmul.msk.f32.gmra.mxu0 %vm602_vm2, %v1963_v41  ;;  %v2668_v32 = vmax.f32 %v2477_v62, 0.0  ;;  %v1967_v20 = vmax.f32 %v1850_v50, 0.0 }
 0x4f7   :  { %2526 = vmatmul.f32.gmra.mxu3 %v2412_v37 }
 0x4fa   :  { %v2257_v26 = vpop.f32.mrf.mxu0  ;;  %v2479_v63 = vpop.f32.mrf.mxu3 }
 0x4fb   :  { %v2258_v49 = vadd.f32 %v4674_v13, %v2257_v26  ;;  %v2480_v30 = vadd.f32 %v4251_v56, %v2479_v63 }
 0x4fd   :  { %v2413_v43 = vmax.f32 %v2258_v49, 0.0  ;;  %v2669_v5 = vmax.f32 %v2480_v30, 0.0  ;;  %3343 = vmatmul.msk.f32.gmra.mxu0 %vm602_vm2, %v1964_v28  ;;  %v1968_v30 = vmax.f32 %v1853_v33, 0.0 }
 0x4ff   :  { %v2732_v42 = vmax.f32 %v2668_v32, %v2669_v5  ;;  %2529 = vmatmul.f32.gmra.mxu3 %v2413_v43 }
 0x502   :  { %v2260_v18 = vpop.f32.mrf.mxu0  ;;  %v2482_v29 = vpop.f32.mrf.mxu3 }
 0x503   :  { %v2261_v46 = vadd.f32 %v4674_v13, %v2260_v18  ;;  %v2483_v11 = vadd.f32 %v4251_v56, %v2482_v29 }
 0x505   :  { %v2414_v38 = vmax.f32 %v2261_v46, 0.0  ;;  %v2670_v23 = vmax.f32 %v2483_v11, 0.0  ;;  %3344 = vmatmul.msk.f32.gmra.mxu0 %vm602_vm2, %v1965_v45 }
 0x507   :  { %v2733_v14 = vmax.f32 %v2732_v42, %v2670_v23  ;;  %2532 = vmatmul.f32.gmra.mxu3 %v2414_v38  ;;  %v1856_v42 = vadd.f32 %v4508_v48, %v4538_v7 }
 0x509   :  { %v1969_v45 = vmax.f32 %v1856_v42, 0.0 }
 0x50a   :  { %v2263_v21 = vpop.f32.mrf.mxu0  ;;  %v2485_v44 = vpop.f32.mrf.mxu3 }
 0x50b   :  { %v2264_v4 = vadd.f32 %v4674_v13, %v2263_v21  ;;  %v2486_v35 = vadd.f32 %v4251_v56, %v2485_v44  ;;  %v1970_v44 = vmax.f32 %v1859_v22, 0.0 }
 0x50d   :  { %v2415_v58 = vmax.f32 %v2264_v4, 0.0  ;;  %v2671_v57 = vmax.f32 %v2486_v35, 0.0  ;;  %3345 = vmatmul.msk.f32.gmra.mxu0 %vm602_vm2, %v1966_v2 }
 0x50f   :  { %v2734_v52 = vmax.f32 %v2733_v14, %v2671_v57  ;;  %2535 = vmatmul.f32.gmra.mxu3 %v2415_v58  ;;  %v1862_v57 = vadd.f32 %v4508_v48, %v4562_v60 }
 0x512   :  { %v2266_v41 = vpop.f32.mrf.mxu0  ;;  %v2488_v24 = vpop.f32.mrf.mxu3 }
 0x513   :  { %v2267_v37 = vadd.f32 %v4674_v13, %v2266_v41  ;;  %v2489_v56 = vadd.f32 %v4755_v0, %v2488_v24  ;;  %v1971_v41 = vmax.f32 %v1862_v57, 0.0 }
 0x515   :  { %v2416_v62 = vmax.f32 %v2267_v37, 0.0  ;;  %v2672_v26 = vmax.f32 %v2489_v56, 0.0  ;;  %3346 = vmatmul.msk.f32.gmra.mxu0 %vm602_vm2, %v1967_v20  ;;  %v1865_v37 = vadd.f32 %v4508_v48, %v4574_v6 }
 0x517   :  { %v2735_v63 = vmax.f32 %v2734_v52, %v2672_v26  ;;  %2538 = vmatmul.f32.gmra.mxu3 %v2416_v62  ;;  %v1972_v60 = vmax.f32 %v1865_v37, 0.0 }
 0x51a   :  { %v2269_v28 = vpop.f32.mrf.mxu0  ;;  %v2491_v49 = vpop.f32.mrf.mxu3 }
 0x51b   :  { %v2270_v32 = vadd.f32 %v4674_v13, %v2269_v28  ;;  %v2492_v43 = vadd.f32 %v4755_v0, %v2491_v49 }
 0x51d   :  { %v2417_v5 = vmax.f32 %v2270_v32, 0.0  ;;  %v2673_v39 = vmax.f32 %v2492_v43, 0.0  ;;  %3347 = vmatmul.msk.f32.gmra.mxu0 %vm602_vm2, %v1968_v30  ;;  %v1868_v32 = vadd.f32 %v4508_v48, %v4586_v16 }
 0x51f   :  { %v2736_v18 = vmax.f32 %v2735_v63, %v2673_v39  ;;  %2541 = vmatmul.f32.gmra.mxu3 %v2417_v5  ;;  %v1973_v39 = vmax.f32 %v1868_v32, 0.0 }
 0x522   :  { %v2272_v29 = vpop.f32.mrf.mxu0  ;;  %v2494_v40 = vpop.f32.mrf.mxu3 }
 0x523   :  { %v2273_v46 = vadd.f32 %v4674_v13, %v2272_v29  ;;  %v2495_v11 = vadd.f32 %v4755_v0, %v2494_v40 }
 0x525   :  { %v2418_v38 = vmax.f32 %v2273_v46, 0.0  ;;  %v2674_v23 = vmax.f32 %v2495_v11, 0.0  ;;  %3348 = vmatmul.msk.f32.gmra.mxu0 %vm602_vm2, %v1969_v45  ;;  %v1871_v45 = vadd.f32 %v4508_v48, %v4598_v31 }
 0x527   :  { %v2737_v14 = vmax.f32 %v2736_v18, %v2674_v23  ;;  %2544 = vmatmul.f32.gmra.mxu3 %v2418_v38  ;;  %v1974_v38 = vmax.f32 %v1871_v45, 0.0 }
 0x52a   :  { %v2275_v21 = vpop.f32.mrf.mxu0  ;;  %v2497_v7 = vpop.f32.mrf.mxu3 }
 0x52b   :  { %v2276_v2 = vadd.f32 %v4674_v13, %v2275_v21  ;;  %v2498_v4 = vadd.f32 %v4755_v0, %v2497_v7  ;;  %v1874_v7 = vadd.f32 %v4508_v48, %v4610_v51 }
 0x52d   :  { %v2419_v35 = vmax.f32 %v2276_v2, 0.0  ;;  %v2675_v58 = vmax.f32 %v2498_v4, 0.0  ;;  %3349 = vmatmul.msk.f32.gmra.mxu0 %vm602_vm2, %v1970_v44  ;;  %v1975_v4 = vmax.f32 %v1874_v7, 0.0 }
 0x52f   :  { %v4776_v50 = vmax.f32 %v2737_v14, %v2675_v58  ;;  %2547 = vmatmul.f32.gmra.mxu3 %v2419_v35 }
 0x532   :  { %v2278_v55 = vpop.f32.mrf.mxu0  ;;  %v2500_v52 = vpop.f32.mrf.mxu3 }
 0x533   :  { %v2279_v24 = vadd.f32 %v4674_v13, %v2278_v55  ;;  %v2501_v56 = vadd.f32 %v4755_v0, %v2500_v52  ;;  %v1877_v52 = vadd.f32 %v4508_v48, %v4619_v1 }
 0x535   :  { %v2420_v20 = vmax.f32 %v2279_v24, 0.0  ;;  %3350 = vmatmul.msk.f32.gmra.mxu0 %vm602_vm2, %v1971_v41  ;;  %v2676_v28 = vmax.f32 %v2501_v56, 0.0 }
 0x537   :  { %2550 = vmatmul.f32.gmra.mxu3 %v2420_v20  ;;  %v1976_v20 = vmax.f32 %v1877_v52, 0.0 }
 0x53a   :  { %v2281_v62 = vpop.f32.mrf.mxu0  ;;  %v2503_v26 = vpop.f32.mrf.mxu3 }
 0x53b   :  { %v2282_v33 = vadd.f32 %v4674_v13, %v2281_v62  ;;  %v2504_v63 = vadd.f32 %v4755_v0, %v2503_v26 }
 0x53d   :  { %v2421_v49 = vmax.f32 %v2282_v33, 0.0  ;;  %v2677_v30 = vmax.f32 %v2504_v63, 0.0  ;;  %3351 = vmatmul.msk.f32.gmra.mxu0 %vm602_vm2, %v1972_v60  ;;  %v1880_v60 = vadd.f32 %v4508_v48, %v4627_v10 }
 0x53f   :  { %v2745_v43 = vmax.f32 %v2676_v28, %v2677_v30  ;;  %2553 = vmatmul.f32.gmra.mxu3 %v2421_v49  ;;  %v1977_v28 = vmax.f32 %v1880_v60, 0.0  ;;  %v1892_v60 = vadd.f32 %v4508_v48, %v4645_v19 }
 0x542   :  { %v2284_v6 = vpop.f32.mrf.mxu0  ;;  %v2506_v5 = vpop.f32.mrf.mxu3 }
 0x543   :  { %v2285_v42 = vadd.f32 %v4674_v13, %v2284_v6  ;;  %v2507_v18 = vadd.f32 %v4755_v0, %v2506_v5  ;;  %v1883_v6 = vadd.f32 %v4508_v48, %v4631_v15  ;;  %v2739_v5 = vrot.slane %v4776_v50, 4 }
 0x544   :  { %v1886_v15 = vadd.f32 %v4508_v48, %v4635_v36 }
 0x545   :  { %v2422_v29 = vmax.f32 %v2285_v42, 0.0  ;;  %v2678_v40 = vmax.f32 %v2507_v18, 0.0  ;;  %3352 = vmatmul.msk.f32.gmra.mxu0 %vm602_vm2, %v1973_v39  ;;  %v1978_v18 = vmax.f32 %v1883_v6, 0.0  ;;  %v1895_v6 = vadd.f32 %v4508_v48, %v4651_v25 }
 0x547   :  { %v2746_v46 = vmax.f32 %v2745_v43, %v2678_v40  ;;  %2556 = vmatmul.f32.gmra.mxu3 %v2422_v29  ;;  %v2740_v29 = vmax.f32 %v4776_v50, %v2739_v5 }
 0x54a   :  { %v2287_v11 = vpop.f32.mrf.mxu0  ;;  %v2509_v16 = vpop.f32.mrf.mxu3 }
 0x54b   :  { %v2288_v23 = vadd.f32 %v4674_v13, %v2287_v11  ;;  %v2510_v22 = vadd.f32 %v4755_v0, %v2509_v16  ;;  %v2741_v16 = vrot.slane %v2740_v29, 2 }
 0x54d   :  { %v2423_v14 = vmax.f32 %v2288_v23, 0.0  ;;  %v2679_v21 = vmax.f32 %v2510_v22, 0.0  ;;  %3353 = vmatmul.msk.f32.gmra.mxu0 %vm602_vm2, %v1974_v38  ;;  %v2742_v7 = vmax.f32 %v2740_v29, %v2741_v16 }
 0x54f   :  { %v2747_v44 = vmax.f32 %v2746_v46, %v2679_v21  ;;  %2559 = vmatmul.f32.gmra.mxu3 %v2423_v14  ;;  %v1979_v21 = vmax.f32 %v1886_v15, 0.0 }
 0x552   :  { %v2290_v2 = vpop.f32.mrf.mxu0  ;;  %v2512_v31 = vpop.f32.mrf.mxu3 }
 0x553   :  { %v2291_v35 = vadd.f32 %v4674_v13, %v2290_v2  ;;  %v2513_v58 = vadd.f32 %v4755_v0, %v2512_v31 }
 0x555   :  { %v2424_v57 = vmax.f32 %v2291_v35, 0.0  ;;  %v2680_v55 = vmax.f32 %v2513_v58, 0.0  ;;  %3354 = vmatmul.msk.f32.gmra.mxu0 %vm602_vm2, %v1975_v4  ;;  %v1889_v4 = vadd.f32 %v4508_v48, %v4640_v54  ;;  %v2743_v35 = vrot.slane %v2742_v7, 1 }
 0x557   :  { %v2748_v41 = vmax.f32 %v2747_v44, %v2680_v55  ;;  %2562 = vmatmul.f32.gmra.mxu3 %v2424_v57  ;;  %v1980_v55 = vmax.f32 %v1889_v4, 0.0 }
 0x55a   :  { %v2293_v24 = vpop.f32.mrf.mxu0  ;;  %v2515_v51 = vpop.f32.mrf.mxu3 }
 0x55b   :  { %v2294_v37 = vadd.f32 %v4674_v13, %v2293_v24  ;;  %v2516_v56 = vadd.f32 %v4755_v0, %v2515_v51  ;;  %v2744_v24 = vmax.f32 %v2742_v7, %v2743_v35  ;;  %v1904_v35 = vadd.f32 %v4508_v48, %v4668_v27 }
 0x55d   :  { %v2425_v62 = vmax.f32 %v2294_v37, 0.0  ;;  %v2681_v26 = vmax.f32 %v2516_v56, 0.0  ;;  %3355 = vmatmul.msk.f32.gmra.mxu0 %vm602_vm2, %v1976_v20 }
 0x55f   :  { %v2749_v33 = vmax.f32 %v2748_v41, %v2681_v26  ;;  %2565 = vmatmul.f32.gmra.mxu3 %v2425_v62 }
 0x562   :  { %v2296_v63 = vpop.f32.mrf.mxu0  ;;  %v2518_v1 = vpop.f32.mrf.mxu3 }
 0x563   :  { %v2297_v49 = vadd.f32 %v4674_v13, %v2296_v63  ;;  %v2519_v30 = vadd.f32 %v4755_v0, %v2518_v1 }
 0x565   :  { %v2426_v32 = vmax.f32 %v2297_v49, 0.0  ;;  %v2682_v43 = vmax.f32 %v2519_v30, 0.0  ;;  %3356 = vmatmul.msk.f32.gmra.mxu0 %vm602_vm2, %v1977_v28  ;;  %v1981_v28 = vmax.f32 %v1892_v60, 0.0 }
 0x567   :  { %v2750_v39 = vmax.f32 %v2749_v33, %v2682_v43  ;;  %2568 = vmatmul.f32.gmra.mxu3 %v2426_v32 }
 0x56a   :  { %v2299_v10 = vpop.f32.mrf.mxu0  ;;  %v2521_v42 = vpop.f32.mrf.mxu3 }
 0x56b   :  { %v2300_v40 = vadd.f32 %v4674_v13, %v2299_v10  ;;  %v2522_v45 = vadd.f32 %v4755_v0, %v2521_v42  ;;  %v1982_v10 = vmax.f32 %v1895_v6, 0.0 }
 0x56d   :  { %v2427_v46 = vmax.f32 %v2300_v40, 0.0  ;;  %v2683_v11 = vmax.f32 %v2522_v45, 0.0  ;;  %3357 = vmatmul.msk.f32.gmra.mxu0 %vm602_vm2, %v1978_v18  ;;  %v1898_v45 = vadd.f32 %v4508_v48, %v4657_v34 }
 0x56f   :  { %v2751_v38 = vmax.f32 %v2750_v39, %v2683_v11  ;;  %2571 = vmatmul.f32.gmra.mxu3 %v2427_v46  ;;  %v1983_v15 = vmax.f32 %v1898_v45, 0.0 }
 0x571   :  { %v2752_v23 = vrot.slane %v2751_v38, 4 }
 0x572   :  { %v2302_v22 = vpop.f32.mrf.mxu0  ;;  %v2524_v14 = vpop.f32.mrf.mxu3 }
 0x573   :  { %v2753_v50 = vmax.f32 %v2751_v38, %v2752_v23  ;;  %v2303_v44 = vadd.f32 %v4674_v13, %v2302_v22  ;;  %v2525_v57 = vadd.f32 %v4755_v0, %v2524_v14  ;;  %v1901_v14 = vadd.f32 %v4508_v48, %v4663_v53 }
 0x575   :  { %v2754_v2 = vrot.slane %v2753_v50, 2  ;;  %v2428_v31 = vmax.f32 %v2303_v44, 0.0  ;;  %3358 = vmatmul.msk.f32.gmra.mxu0 %vm602_vm2, %v1979_v21  ;;  %v2684_v62 = vmax.f32 %v2525_v57, 0.0  ;;  %v1985_v57 = vmax.f32 %v1904_v35, 0.0 }
 0x577   :  { %v2755_v36 = vmax.f32 %v2753_v50, %v2754_v2  ;;  %2574 = vmatmul.f32.gmra.mxu3 %v2428_v31  ;;  %v1984_v50 = vmax.f32 %v1901_v14, 0.0 }
 0x579   :  { %v2756_v58 = vrot.slane %v2755_v36, 1 }
 0x57a   :  { %v2305_v52 = vpop.f32.mrf.mxu0  ;;  %v2527_v41 = vpop.f32.mrf.mxu3 }
 0x57b   :  { %v2757_v51 = vmax.f32 %v2755_v36, %v2756_v58  ;;  %v2306_v20 = vadd.f32 %v4674_v13, %v2305_v52  ;;  %v2528_v37 = vadd.f32 %v4755_v0, %v2527_v41 }
 0x57d   :  { %v4828_v56 = vsel %vm2844_vm3, %v2757_v51, %v2744_v24  ;;  %v2429_v54 = vmax.f32 %v2306_v20, 0.0  ;;  %v2685_v26 = vmax.f32 %v2528_v37, 0.0  ;;  %3359 = vmatmul.msk.f32.gmra.mxu0 %vm602_vm2, %v1980_v55  ;;  %v4859_v51 = vld [vmem:[%s5147_s4] ss:$0 sm:$0xff] }
 0x57e   :  { %v1907_v48 = vadd.f32 %v4859_v51, %v4679_v59 }
 0x57f   :  { %v2758_v33 = vmax.f32 %v2684_v62, %v2685_v26  ;;  %2577 = vmatmul.f32.gmra.mxu3 %v2429_v54 }
 0x580   :  { %v1986_v62 = vmax.f32 %v1907_v48, 0.0 }
 0x582   :  { %v2308_v63 = vpop.f32.mrf.mxu0  ;;  %v2530_v1 = vpop.f32.mrf.mxu3 }
 0x583   :  { %v2309_v49 = vadd.f32 %v4674_v13, %v2308_v63  ;;  %v2531_v30 = vadd.f32 %v4755_v0, %v2530_v1  ;;  %v1910_v63 = vadd.f32 %v4859_v51, %v4685_v3 }
 0x585   :  { %v2430_v32 = vmax.f32 %v2309_v49, 0.0  ;;  %v2686_v43 = vmax.f32 %v2531_v30, 0.0  ;;  %3360 = vmatmul.msk.f32.gmra.mxu0 %vm602_vm2, %v1981_v28  ;;  %v1987_v30 = vmax.f32 %v1910_v63, 0.0 }
 0x587   :  { %v2759_v5 = vmax.f32 %v2758_v33, %v2686_v43  ;;  %2580 = vmatmul.f32.gmra.mxu3 %v2430_v32 }
 0x58a   :  { %v2311_v39 = vpop.f32.mrf.mxu0  ;;  %v2533_v19 = vpop.f32.mrf.mxu3 }
 0x58b   :  { %v2312_v42 = vadd.f32 %v4674_v13, %v2311_v39  ;;  %v2534_v18 = vadd.f32 %v4755_v0, %v2533_v19  ;;  %v1913_v39 = vadd.f32 %v4859_v51, %v4691_v47 }
 0x58d   :  { %v2431_v29 = vmax.f32 %v2312_v42, 0.0  ;;  %v2687_v40 = vmax.f32 %v2534_v18, 0.0  ;;  %3361 = vmatmul.msk.f32.gmra.mxu0 %vm602_vm2, %v1982_v10 }
 0x58f   :  { %v2760_v46 = vmax.f32 %v2759_v5, %v2687_v40  ;;  %2583 = vmatmul.f32.gmra.mxu3 %v2431_v29  ;;  %v1988_v29 = vmax.f32 %v1913_v39, 0.0 }
 0x592   :  { %v2314_v11 = vpop.f32.mrf.mxu0  ;;  %v2536_v25 = vpop.f32.mrf.mxu3 }
 0x593   :  { %v2315_v16 = vadd.f32 %v4674_v13, %v2314_v11  ;;  %v2537_v38 = vadd.f32 %v4755_v0, %v2536_v25 }
 0x595   :  { %v2432_v23 = vmax.f32 %v2315_v16, 0.0  ;;  %v2688_v22 = vmax.f32 %v2537_v38, 0.0  ;;  %3362 = vmatmul.msk.f32.gmra.mxu0 %vm602_vm2, %v1983_v15  ;;  %v1916_v16 = vadd.f32 %v4859_v51, %v4696_v17 }
 0x597   :  { %v2761_v21 = vmax.f32 %v2760_v46, %v2688_v22  ;;  %2586 = vmatmul.f32.gmra.mxu3 %v2432_v23  ;;  %v1989_v14 = vmax.f32 %v1916_v16, 0.0 }
 0x59a   :  { %v2317_v7 = vpop.f32.mrf.mxu0  ;;  %v2539_v34 = vpop.f32.mrf.mxu3 }
 0x59b   :  { %v2318_v44 = vadd.f32 %v4674_v13, %v2317_v7  ;;  %v2540_v2 = vadd.f32 %v4755_v0, %v2539_v34 }
 0x59d   :  { %v2433_v31 = vmax.f32 %v2318_v44, 0.0  ;;  %v2689_v4 = vmax.f32 %v2540_v2, 0.0  ;;  %3363 = vmatmul.msk.f32.gmra.mxu0 %vm602_vm2, %v1984_v50  ;;  %v1919_v50 = vadd.f32 %v4859_v51, %v4703_v9 }
 0x59f   :  { %v2762_v36 = vmax.f32 %v2761_v21, %v2689_v4  ;;  %2589 = vmatmul.f32.gmra.mxu3 %v2433_v31  ;;  %v1990_v31 = vmax.f32 %v1919_v50, 0.0 }
 0x5a2   :  { %v2320_v58 = vpop.f32.mrf.mxu0  ;;  %v2542_v53 = vpop.f32.mrf.mxu3 }
 0x5a3   :  { %v2321_v55 = vadd.f32 %v4674_v13, %v2320_v58  ;;  %v2543_v52 = vadd.f32 %v4755_v0, %v2542_v53  ;;  %v1922_v53 = vadd.f32 %v4859_v51, %v4710_v8 }
 0x5a5   :  { %v2434_v41 = vmax.f32 %v2321_v55, 0.0  ;;  %v2690_v24 = vmax.f32 %v2543_v52, 0.0  ;;  %3364 = vmatmul.msk.f32.gmra.mxu0 %vm602_vm2, %v1985_v57  ;;  %v1991_v52 = vmax.f32 %v1922_v53, 0.0 }
 0x5a7   :  { %v2763_v27 = vmax.f32 %v2762_v36, %v2690_v24  ;;  %2592 = vmatmul.f32.gmra.mxu3 %v2434_v41 }
 0x5aa   :  { %v2323_v20 = vpop.f32.mrf.mxu0  ;;  %v2545_v37 = vpop.f32.mrf.mxu3 }
 0x5ab   :  { %v2324_v54 = vadd.f32 %v4674_v13, %v2323_v20  ;;  %v2546_v26 = vadd.f32 %v4755_v0, %v2545_v37  ;;  %v1925_v20 = vadd.f32 %v4859_v51, %v4717_v12 }
 0x5ad   :  { %v2435_v60 = vmax.f32 %v2324_v54, 0.0  ;;  %v2691_v33 = vmax.f32 %v2546_v26, 0.0  ;;  %3365 = vmatmul.msk.f32.gmra.mxu0 %vm602_vm2, %v1986_v62  ;;  %v1992_v54 = vmax.f32 %v1925_v20, 0.0 }
 0x5af   :  { %v2764_v1 = vmax.f32 %v2763_v27, %v2691_v33  ;;  %2595 = vmatmul.f32.gmra.mxu3 %v2435_v60 }
 0x5b1   :  { %v2765_v28 = vrot.slane %v2764_v1, 4 }
 0x5b2   :  { %v2326_v59 = vpop.f32.mrf.mxu0  ;;  %v2548_v49 = vpop.f32.mrf.mxu3 }
 0x5b3   :  { %v2766_v32 = vmax.f32 %v2764_v1, %v2765_v28  ;;  %v2327_v43 = vadd.f32 %v4674_v13, %v2326_v59  ;;  %v2549_v3 = vadd.f32 %v4755_v0, %v2548_v49  ;;  %v1928_v1 = vadd.f32 %v4859_v51, %v4725_v61 }
 0x5b5   :  { %v2767_v6 = vrot.slane %v2766_v32, 2  ;;  %v2436_v5 = vmax.f32 %v2327_v43, 0.0  ;;  %3366 = vmatmul.msk.f32.gmra.mxu0 %vm602_vm2, %v1987_v30  ;;  %v2692_v25 = vmax.f32 %v2549_v3, 0.0  ;;  %v1993_v49 = vmax.f32 %v1928_v1, 0.0 }
 0x5b7   :  { %v2768_v19 = vmax.f32 %v2766_v32, %v2767_v6  ;;  %2598 = vmatmul.f32.gmra.mxu3 %v2436_v5 }
 0x5b9   :  { %v2769_v10 = vrot.slane %v2768_v19, 1 }
 0x5ba   :  { %v2329_v42 = vpop.f32.mrf.mxu0  ;;  %v2551_v18 = vpop.f32.mrf.mxu3 }
 0x5bb   :  { %v2770_v40 = vmax.f32 %v2768_v19, %v2769_v10  ;;  %v2330_v45 = vadd.f32 %v4674_v13, %v2329_v42  ;;  %v2552_v46 = vadd.f32 %v4755_v0, %v2551_v18 }
 0x5bd   :  { %v4877_v11 = vsel %vm2846_vm4, %v2770_v40, %v4828_v56  ;;  %v2437_v15 = vmax.f32 %v2330_v45, 0.0  ;;  %v2693_v47 = vmax.f32 %v2552_v46, 0.0  ;;  %3367 = vmatmul.msk.f32.gmra.mxu0 %vm602_vm2, %v1988_v29 }
 0x5bf   :  { %v2771_v38 = vmax.f32 %v2692_v25, %v2693_v47  ;;  %2601 = vmatmul.f32.gmra.mxu3 %v2437_v15 }
 0x5c2   :  { %v2332_v23 = vpop.f32.mrf.mxu0  ;;  %v2554_v22 = vpop.f32.mrf.mxu3 }
 0x5c3   :  { %v2333_v21 = vadd.f32 %v4674_v13, %v2332_v23  ;;  %v2555_v7 = vadd.f32 %v4755_v0, %v2554_v22 }
 0x5c5   :  { %v2438_v34 = vmax.f32 %v2333_v21, 0.0  ;;  %v2694_v56 = vmax.f32 %v2555_v7, 0.0  ;;  %3368 = vmatmul.msk.f32.gmra.mxu0 %vm602_vm2, %v1989_v14 }
 0x5c7   :  { %v2772_v44 = vmax.f32 %v2771_v38, %v2694_v56  ;;  %2604 = vmatmul.f32.gmra.mxu3 %v2438_v34 }
 0x5ca   :  { %v2335_v2 = vpop.f32.mrf.mxu0  ;;  %v2557_v17 = vpop.f32.mrf.mxu3 }
 0x5cb   :  { %v2336_v4 = vadd.f32 %v4674_v13, %v2335_v2  ;;  %v2558_v35 = vadd.f32 %v4755_v0, %v2557_v17  ;;  %v2906_v17 = vld [vmem:[%s5152_s9 + $0xf8] sm:$0xff] }
 0x5cc   :  { %2931 = vmatpush.msra.mxu2 %v2906_v17 }
 0x5cd   :  { %v2439_v36 = vmax.f32 %v2336_v4, 0.0  ;;  %v2695_v58 = vmax.f32 %v2558_v35, 0.0  ;;  %3369 = vmatmul.msk.f32.gmra.mxu0 %vm602_vm2, %v1990_v31 }
 0x5cf   :  { %v2773_v57 = vmax.f32 %v2772_v44, %v2695_v58  ;;  %2607 = vmatmul.f32.gmra.mxu3 %v2439_v36 }
 0x5d2   :  { %v2338_v55 = vpop.f32.mrf.mxu0  ;;  %v2560_v9 = vpop.f32.mrf.mxu3 }
 0x5d3   :  { %v2339_v41 = vadd.f32 %v4674_v13, %v2338_v55  ;;  %v2561_v24 = vadd.f32 %v4755_v0, %v2560_v9 }
 0x5d5   :  { %v2440_v48 = vmax.f32 %v2339_v41, 0.0  ;;  %v2696_v27 = vmax.f32 %v2561_v24, 0.0  ;;  %3370 = vmatmul.msk.f32.gmra.mxu0 %vm602_vm2, %v1991_v52 }
 0x5d7   :  { %v2774_v37 = vmax.f32 %v2773_v57, %v2696_v27  ;;  %2610 = vmatmul.f32.gmra.mxu3 %v2440_v48 }
 0x5da   :  { %v2341_v62 = vpop.f32.mrf.mxu0  ;;  %v2563_v8 = vpop.f32.mrf.mxu3 }
 0x5db   :  { %v2342_v26 = vadd.f32 %v4674_v13, %v2341_v62  ;;  %v2564_v60 = vadd.f32 %v4755_v0, %v2563_v8 }
 0x5dd   :  { %v2441_v33 = vmax.f32 %v2342_v26, 0.0  ;;  %v2697_v63 = vmax.f32 %v2564_v60, 0.0  ;;  %3371 = vmatmul.msk.f32.gmra.mxu0 %vm602_vm2, %v1992_v54 }
 0x5df   :  { %v2775_v28 = vmax.f32 %v2774_v37, %v2697_v63  ;;  %2613 = vmatmul.f32.gmra.mxu3 %v2441_v33 }
 0x5e2   :  { %v2344_v59 = vpop.f32.mrf.mxu0  ;;  %v2566_v12 = vpop.f32.mrf.mxu3 }
 0x5e3   :  { %v2345_v30 = vadd.f32 %v4674_v13, %v2344_v59  ;;  %v2567_v32 = vadd.f32 %v4755_v0, %v2566_v12 }
 0x5e5   :  { %v2442_v43 = vmax.f32 %v2345_v30, 0.0  ;;  %v2698_v6 = vmax.f32 %v2567_v32, 0.0  ;;  %3372 = vmatmul.msk.f32.gmra.mxu0 %vm602_vm2, %v1993_v49  ;;  %v2904_v30 = vld [vmem:[%s5152_s9 + $0xe8] sm:$0xff] }
 0x5e7   :  { %v2776_v5 = vmax.f32 %v2775_v28, %v2698_v6  ;;  %2616 = vmatmul.f32.gmra.mxu3 %v2442_v43  ;;  %v2905_v28 = vld [vmem:[%s5152_s9 + $0xf0] sm:$0xff] }
 0x5e8   :  { %2932 = vmatpush.msra.mxu2 %v2905_v28 }
 0x5ea   :  { %v2347_v39 = vpop.f32.mrf.mxu0  ;;  %v2569_v19 = vpop.f32.mrf.mxu3  ;;  %2933 = vmatpush.msra.mxu2 %v2904_v30 }
 0x5eb   :  { %v2348_v10 = vadd.f32 %v4674_v13, %v2347_v39  ;;  %v2570_v61 = vadd.f32 %v4755_v0, %v2569_v19 }
 0x5ed   :  { %v2443_v51 = vmax.f32 %v2348_v10, 0.0  ;;  %v2699_v3 = vmax.f32 %v2570_v61, 0.0  ;;  %v2903_v61 = vld [vmem:[%s5152_s9 + $0xe0] sm:$0xff] }
 0x5ee   :  { %2934 = vmatpush.msra.mxu2 %v2903_v61 }
 0x5ef   :  { %v2777_v42 = vmax.f32 %v2776_v5, %v2699_v3  ;;  %2619 = vmatmul.f32.gmra.mxu3 %v2443_v51 }
 0x5f1   :  { %v2778_v18 = vrot.slane %v2777_v42, 4 }
 0x5f2   :  { %v2350_v29 = vpop.f32.mrf.mxu0  ;;  %v2572_v40 = vpop.f32.mrf.mxu3 }
 0x5f3   :  { %v2779_v45 = vmax.f32 %v2777_v42, %v2778_v18  ;;  %v2351_v46 = vadd.f32 %v4674_v13, %v2350_v29  ;;  %v2573_v38 = vadd.f32 %v4755_v0, %v2572_v40 }
 0x5f5   :  { %v2780_v25 = vrot.slane %v2779_v45, 2  ;;  %v2444_v15 = vmax.f32 %v2351_v46, 0.0  ;;  %v2700_v34 = vmax.f32 %v2573_v38, 0.0 }
 0x5f7   :  { %v2781_v47 = vmax.f32 %v2779_v45, %v2780_v25  ;;  %2622 = vmatmul.f32.gmra.mxu3 %v2444_v15 }
 0x5f9   :  { %v2782_v16 = vrot.slane %v2781_v47, 1 }
 0x5fa   :  { %v2353_v23 = vpop.f32.mrf.mxu0  ;;  %v2575_v22 = vpop.f32.mrf.mxu3 }
 0x5fb   :  { %v2783_v14 = vmax.f32 %v2781_v47, %v2782_v16  ;;  %v2354_v21 = vadd.f32 %v4674_v13, %v2353_v23  ;;  %v2576_v7 = vadd.f32 %v4755_v0, %v2575_v22 }
 0x5fd   :  { %v2445_v56 = vmax.f32 %v2354_v21, 0.0  ;;  %v2701_v50 = vmax.f32 %v2576_v7, 0.0  ;;  %v4913_v44 = vsel %vm2848_vm5, %v2783_v14, %v4877_v11  ;;  %v2902_v14 = vld [vmem:[%s5152_s9 + $0xd8] sm:$0xff] }
 0x5fe   :  { %2935 = vmatpush.msra.mxu2 %v2902_v14 }
 0x5ff   :  { %v2784_v2 = vmax.f32 %v2700_v34, %v2701_v50  ;;  %2625 = vmatmul.f32.gmra.mxu3 %v2445_v56 }
 0x602   :  { %v2356_v31 = vpop.f32.mrf.mxu0  ;;  %v2578_v4 = vpop.f32.mrf.mxu3 }
 0x603   :  { %v2357_v35 = vadd.f32 %v4674_v13, %v2356_v31  ;;  %v2579_v36 = vadd.f32 %v4755_v0, %v2578_v4 }
 0x605   :  { %v2446_v58 = vmax.f32 %v2357_v35, 0.0  ;;  %v2702_v53 = vmax.f32 %v2579_v36, 0.0 }
 0x607   :  { %v2785_v57 = vmax.f32 %v2784_v2, %v2702_v53  ;;  %2628 = vmatmul.f32.gmra.mxu3 %v2446_v58 }
 0x60a   :  { %v2359_v55 = vpop.f32.mrf.mxu0  ;;  %v2581_v11 = vpop.f32.mrf.mxu3 }
 0x60b   :  { %v2360_v9 = vadd.f32 %v4674_v13, %v2359_v55  ;;  %v2582_v52 = vadd.f32 %v4755_v0, %v2581_v11 }
 0x60d   :  { %v2447_v41 = vmax.f32 %v2360_v9, 0.0  ;;  %v2703_v24 = vmax.f32 %v2582_v52, 0.0 }
 0x60f   :  { %v2786_v48 = vmax.f32 %v2785_v57, %v2703_v24  ;;  %2631 = vmatmul.f32.gmra.mxu3 %v2447_v41  ;;  %v2901_v24 = vld [vmem:[%s5152_s9 + $0xd0] sm:$0xff] }
 0x610   :  { %2936 = vmatpush.msra.mxu2 %v2901_v24 }
 0x612   :  { %v2362_v27 = vpop.f32.mrf.mxu0  ;;  %v2584_v20 = vpop.f32.mrf.mxu3 }
 0x613   :  { %v2363_v37 = vadd.f32 %v4674_v13, %v2362_v27  ;;  %v2585_v62 = vadd.f32 %v4755_v0, %v2584_v20 }
 0x615   :  { %v2448_v8 = vmax.f32 %v2363_v37, 0.0  ;;  %v2704_v54 = vmax.f32 %v2585_v62, 0.0 }
 0x617   :  { %v2787_v26 = vmax.f32 %v2786_v48, %v2704_v54  ;;  %2634 = vmatmul.f32.gmra.mxu3 %v2448_v8 }
 0x61a   :  { %v2365_v60 = vpop.f32.mrf.mxu0  ;;  %v2587_v33 = vpop.f32.mrf.mxu3 }
 0x61b   :  { %v2366_v63 = vadd.f32 %v4674_v13, %v2365_v60  ;;  %v2588_v1 = vadd.f32 %v4755_v0, %v2587_v33  ;;  %v4935_v13 = vld [vmem:[%s5149_s6] ss:$0 sm:$0xff] }
 0x61d   :  { %v2449_v59 = vmax.f32 %v2366_v63, 0.0  ;;  %v2705_v12 = vmax.f32 %v2588_v1, 0.0 }
 0x61f   :  { %v2788_v49 = vmax.f32 %v2787_v26, %v2705_v12  ;;  %2637 = vmatmul.f32.gmra.mxu3 %v2449_v59 }
 0x622   :  { %v2368_v32 = vpop.f32.mrf.mxu0  ;;  %v2590_v43 = vpop.f32.mrf.mxu3 }
 0x623   :  { %v2369_v6 = vadd.f32 %v4935_v13, %v2368_v32  ;;  %v2591_v5 = vadd.f32 %v4755_v0, %v2590_v43  ;;  %v2900_v32 = vld [vmem:[%s5152_s9 + $0xc8] sm:$0xff] }
 0x624   :  { %2937 = vmatpush.msra.mxu2 %v2900_v32 }
 0x625   :  { %v2450_v39 = vmax.f32 %v2369_v6, 0.0  ;;  %v2706_v19 = vmax.f32 %v2591_v5, 0.0 }
 0x627   :  { %v2789_v10 = vmax.f32 %v2788_v49, %v2706_v19  ;;  %2640 = vmatmul.f32.gmra.mxu3 %v2450_v39  ;;  %v2899_v39 = vld [vmem:[%s5152_s9 + $0xc0] sm:$0xff] }
 0x628   :  { %2938 = vmatpush.msra.mxu2 %v2899_v39 }
 0x62a   :  { %v2371_v51 = vpop.f32.mrf.mxu0  ;;  %v2593_v3 = vpop.f32.mrf.mxu3 }
 0x62b   :  { %v2372_v42 = vadd.f32 %v4935_v13, %v2371_v51  ;;  %v2594_v18 = vadd.f32 %v4755_v0, %v2593_v3 }
 0x62d   :  { %v2451_v29 = vmax.f32 %v2372_v42, 0.0  ;;  %v2707_v40 = vmax.f32 %v2594_v18, 0.0 }
 0x62f   :  { %v2790_v45 = vmax.f32 %v2789_v10, %v2707_v40  ;;  %2643 = vmatmul.f32.gmra.mxu3 %v2451_v29 }
 0x631   :  { %v2791_v46 = vrot.slane %v2790_v45, 4 }
 0x632   :  { %v2374_v25 = vpop.f32.mrf.mxu0  ;;  %v2596_v15 = vpop.f32.mrf.mxu3 }
 0x633   :  { %v2792_v47 = vmax.f32 %v2790_v45, %v2791_v46  ;;  %v2375_v16 = vadd.f32 %v4935_v13, %v2374_v25  ;;  %v2597_v7 = vadd.f32 %v4755_v0, %v2596_v15  ;;  %v2898_v25 = vld [vmem:[%s5152_s9 + $0xb8] sm:$0xff] }
 0x634   :  { %2939 = vmatpush.msra.mxu2 %v2898_v25  ;;  %v2966_v25 = vld [vmem:[%s5154_s11 + $0x70] sm:$0xff] }
 0x635   :  { %v2793_v38 = vrot.slane %v2792_v47, 2  ;;  %v2452_v23 = vmax.f32 %v2375_v16, 0.0  ;;  %v2708_v31 = vmax.f32 %v2597_v7, 0.0 }
 0x637   :  { %v2794_v22 = vmax.f32 %v2792_v47, %v2793_v38  ;;  %2646 = vmatmul.f32.gmra.mxu3 %v2452_v23 }
 0x639   :  { %v2795_v21 = vrot.slane %v2794_v22, 1 }
 0x63a   :  { %v2377_v34 = vpop.f32.mrf.mxu0  ;;  %v2599_v56 = vpop.f32.mrf.mxu3 }
 0x63b   :  { %v2796_v50 = vmax.f32 %v2794_v22, %v2795_v21  ;;  %v2378_v2 = vadd.f32 %v4935_v13, %v2377_v34  ;;  %v2600_v17 = vadd.f32 %v4755_v0, %v2599_v56 }
 0x63d   :  { %v2453_v4 = vmax.f32 %v2378_v2, 0.0  ;;  %v2709_v35 = vmax.f32 %v2600_v17, 0.0  ;;  %v4953_v36 = vsel %vm2850_vm6, %v2796_v50, %v4913_v44  ;;  %v2897_v17 = vld [vmem:[%s5152_s9 + $0xb0] sm:$0xff] }
 0x63e   :  { %2940 = vmatpush.msra.mxu2 %v2897_v17 }
 0x63f   :  { %v2797_v58 = vmax.f32 %v2708_v31, %v2709_v35  ;;  %2649 = vmatmul.f32.gmra.mxu3 %v2453_v4 }
 0x642   :  { %v2380_v53 = vpop.f32.mrf.mxu0  ;;  %v2602_v57 = vpop.f32.mrf.mxu3 }
 0x643   :  { %v2381_v55 = vadd.f32 %v4935_v13, %v2380_v53  ;;  %v2603_v11 = vadd.f32 %v4755_v0, %v2602_v57 }
 0x645   :  { %v2454_v9 = vmax.f32 %v2381_v55, 0.0  ;;  %v2710_v52 = vmax.f32 %v2603_v11, 0.0 }
 0x647   :  { %v2798_v41 = vmax.f32 %v2797_v58, %v2710_v52  ;;  %2652 = vmatmul.f32.gmra.mxu3 %v2454_v9 }
 0x64a   :  { %v2383_v48 = vpop.f32.mrf.mxu0  ;;  %v2605_v44 = vpop.f32.mrf.mxu3 }
 0x64b   :  { %v2384_v27 = vadd.f32 %v4935_v13, %v2383_v48  ;;  %v2606_v20 = vadd.f32 %v4755_v0, %v2605_v44  ;;  %v2896_v44 = vld [vmem:[%s5152_s9 + $0xa8] sm:$0xff] }
 0x64c   :  { %2941 = vmatpush.msra.mxu2 %v2896_v44  ;;  %v2960_v44 = vld [vmem:[%s5154_s11 + $0x40] sm:$0xff] }
 0x64d   :  { %v2455_v37 = vmax.f32 %v2384_v27, 0.0  ;;  %v2711_v62 = vmax.f32 %v2606_v20, 0.0  ;;  %v2895_v27 = vld [vmem:[%s5152_s9 + $0xa0] sm:$0xff] }
 0x64e   :  { %2942 = vmatpush.msra.mxu2 %v2895_v27  ;;  %v3033_v27 = vld [vmem:[%s5156_s13 + $0x40] sm:$0xff] }
 0x64f   :  { %v2799_v8 = vmax.f32 %v2798_v41, %v2711_v62  ;;  %2655 = vmatmul.f32.gmra.mxu3 %v2455_v37 }
 0x652   :  { %v2386_v54 = vpop.f32.mrf.mxu0  ;;  %v2608_v26 = vpop.f32.mrf.mxu3 }
 0x653   :  { %v2387_v60 = vadd.f32 %v4935_v13, %v2386_v54  ;;  %v2609_v33 = vadd.f32 %v4755_v0, %v2608_v26 }
 0x655   :  { %v2456_v63 = vmax.f32 %v2387_v60, 0.0  ;;  %v2712_v1 = vmax.f32 %v2609_v33, 0.0  ;;  %v2894_v60 = vld [vmem:[%s5152_s9 + $0x98] sm:$0xff] }
 0x656   :  { %2943 = vmatpush.msra.mxu2 %v2894_v60  ;;  %v2958_v60 = vld [vmem:[%s5154_s11 + $0x30] sm:$0xff] }
 0x657   :  { %v2800_v28 = vmax.f32 %v2799_v8, %v2712_v1  ;;  %2658 = vmatmul.f32.gmra.mxu3 %v2456_v63  ;;  %v5002_v63 = vld [vmem:[%s5151_s8] ss:$0 sm:$0xff] }
 0x65a   :  { %v2389_v59 = vpop.f32.mrf.mxu0  ;;  %v2611_v12 = vpop.f32.mrf.mxu3 }
 0x65b   :  { %v2390_v49 = vadd.f32 %v4935_v13, %v2389_v59  ;;  %v2612_v30 = vadd.f32 %v4755_v0, %v2611_v12 }
 0x65d   :  { %v2457_v43 = vmax.f32 %v2390_v49, 0.0  ;;  %v2713_v6 = vmax.f32 %v2612_v30, 0.0 }
 0x65f   :  { %v2801_v5 = vmax.f32 %v2800_v28, %v2713_v6  ;;  %2661 = vmatmul.f32.gmra.mxu3 %v2457_v43  ;;  %v2893_v43 = vld [vmem:[%s5152_s9 + $0x90] sm:$0xff] }
 0x660   :  { %2944 = vmatpush.msra.mxu2 %v2893_v43 }
 0x662   :  { %v2392_v19 = vpop.f32.mrf.mxu0  ;;  %v2614_v10 = vpop.f32.mrf.mxu3 }
 0x663   :  { %v2393_v61 = vadd.f32 %v4935_v13, %v2392_v19  ;;  %v2615_v51 = vadd.f32 %v4755_v0, %v2614_v10 }
 0x665   :  { %v2458_v3 = vmax.f32 %v2393_v61, 0.0  ;;  %v2714_v42 = vmax.f32 %v2615_v51, 0.0  ;;  %v2892_v61 = vld [vmem:[%s5152_s9 + $0x88] sm:$0xff] }
 0x666   :  { %2945 = vmatpush.msra.mxu2 %v2892_v61  ;;  %v3028_v61 = vld [vmem:[%s5156_s13 + $0x18] sm:$0xff] }
 0x667   :  { %v2802_v18 = vmax.f32 %v2801_v5, %v2714_v42  ;;  %2664 = vmatmul.f32.gmra.mxu3 %v2458_v3 }
 0x66a   :  { %v2617_v29 = vpop.f32.mrf.mxu3 }
 0x66b   :  { %v2618_v40 = vadd.f32 %v4755_v0, %v2617_v29  ;;  %v2891_v29 = vld [vmem:[%s5152_s9 + $0x80] sm:$0xff] }
 0x66c   :  { %2946 = vmatpush.msra.mxu2 %v2891_v29  ;;  %v3024_v29 = vld [vmem:[%s5145_s2] sm:$0xff]  ;;  %s3425_s2 = smov [#allocation2]  }
 0x66d   :  { %v2715_v45 = vmax.f32 %v2618_v40, 0.0 }
 0x66f   :  { %v2803_v46 = vmax.f32 %v2802_v18, %v2715_v45 }
 0x671   :  { %v2804_v15 = vrot.slane %v2803_v46, 4 }
 0x672   :  { %v2620_v47 = vpop.f32.mrf.mxu3 }
 0x673   :  { %v2805_v16 = vmax.f32 %v2803_v46, %v2804_v15  ;;  %v2621_v22 = vadd.f32 %v4755_v0, %v2620_v47  ;;  %v2967_v46 = vld [vmem:[%s5154_s11 + $0x78] sm:$0xff] }
 0x674   :  { %v3040_v15 = vld [vmem:[%s5156_s13 + $0x78] sm:$0xff]  ;;  %2972 = vmatpush.msrb.mxu1 %v2967_v46 }
 0x675   :  { %v2806_v13 = vrot.slane %v2805_v16, 2  ;;  %v2716_v34 = vmax.f32 %v2621_v22, 0.0  ;;  %3045 = vmatpush.msrb.mxu2 %v3040_v15 }
 0x676   :  { %2973 = vmatpush.msrb.mxu1 %v2966_v25 }
 0x677   :  { %v2807_v38 = vmax.f32 %v2805_v16, %v2806_v13  ;;  %v3039_v13 = vld [vmem:[%s5156_s13 + $0x70] sm:$0xff] }
 0x678   :  { %3046 = vmatpush.msrb.mxu2 %v3039_v13  ;;  %v3381_v13 = vld [vmem:[%s5157_s14] ss:$0 sm:$0xff] }
 0x679   :  { %v2808_v23 = vrot.slane %v2807_v38, 1 }
 0x67a   :  { %v2623_v14 = vpop.f32.mrf.mxu3 }
 0x67b   :  { %v2809_v21 = vmax.f32 %v2807_v38, %v2808_v23  ;;  %v2624_v7 = vadd.f32 %v4755_v0, %v2623_v14  ;;  %v2965_v38 = vld [vmem:[%s5154_s11 + $0x68] sm:$0xff] }
 0x67c   :  { %v3038_v23 = vld [vmem:[%s5156_s13 + $0x68] sm:$0xff]  ;;  %2974 = vmatpush.msrb.mxu1 %v2965_v38 }
 0x67d   :  { %v2717_v56 = vmax.f32 %v2624_v7, 0.0  ;;  %v2871_v50 = vsel %vm2852_vm7, %v2809_v21, %v4953_v36  ;;  %3047 = vmatpush.msrb.mxu2 %v3038_v23 }
 0x67f   :  { %v2810_v2 = vmax.f32 %v2716_v34, %v2717_v56  ;;  %v2964_v34 = vld [vmem:[%s5154_s11 + $0x60] sm:$0xff] }
 0x680   :  { %v3037_v56 = vld [vmem:[%s5156_s13 + $0x60] sm:$0xff]  ;;  %2975 = vmatpush.msrb.mxu1 %v2964_v34 }
 0x681   :  { %3048 = vmatpush.msrb.mxu2 %v3037_v56 }
 0x682   :  { %v2626_v31 = vpop.f32.mrf.mxu3 }
 0x683   :  { %v2627_v4 = vadd.f32 %v4755_v0, %v2626_v31  ;;  %v2963_v31 = vld [vmem:[%s5154_s11 + $0x58] sm:$0xff] }
 0x684   :  { %2976 = vmatpush.msrb.mxu1 %v2963_v31 }
 0x685   :  { %v2718_v35 = vmax.f32 %v2627_v4, 0.0  ;;  %v3036_v4 = vld [vmem:[%s5156_s13 + $0x58] sm:$0xff] }
 0x686   :  { %3049 = vmatpush.msrb.mxu2 %v3036_v4 }
 0x687   :  { %v2811_v58 = vmax.f32 %v2810_v2, %v2718_v35 }
 0x68a   :  { %v2629_v53 = vpop.f32.mrf.mxu3 }
 0x68b   :  { %v2630_v57 = vadd.f32 %v4755_v0, %v2629_v53 }
 0x68d   :  { %v2719_v55 = vmax.f32 %v2630_v57, 0.0  ;;  %v2962_v57 = vld [vmem:[%s5154_s11 + $0x50] sm:$0xff] }
 0x68e   :  { %2977 = vmatpush.msrb.mxu1 %v2962_v57 }
 0x68f   :  { %v2812_v11 = vmax.f32 %v2811_v58, %v2719_v55  ;;  %v3035_v55 = vld [vmem:[%s5156_s13 + $0x50] sm:$0xff] }
 0x690   :  { %3050 = vmatpush.msrb.mxu2 %v3035_v55 }
 0x692   :  { %v2632_v9 = vpop.f32.mrf.mxu3 }
 0x693   :  { %v2633_v52 = vadd.f32 %v4755_v0, %v2632_v9 }
 0x695   :  { %v2720_v36 = vmax.f32 %v2633_v52, 0.0  ;;  %v2961_v52 = vld [vmem:[%s5154_s11 + $0x48] sm:$0xff] }
 0x696   :  { %2978 = vmatpush.msrb.mxu1 %v2961_v52 }
 0x697   :  { %v2813_v41 = vmax.f32 %v2812_v11, %v2720_v36  ;;  %v3034_v36 = vld [vmem:[%s5156_s13 + $0x48] sm:$0xff] }
 0x698   :  { %3051 = vmatpush.msrb.mxu2 %v3034_v36  ;;  %2979 = vmatpush.msrb.mxu1 %v2960_v44 }
 0x69a   :  { %v2635_v24 = vpop.f32.mrf.mxu3  ;;  %3052 = vmatpush.msrb.mxu2 %v3033_v27 }
 0x69b   :  { %v2636_v48 = vadd.f32 %v4755_v0, %v2635_v24 }
 0x69d   :  { %v2721_v20 = vmax.f32 %v2636_v48, 0.0 }
 0x69f   :  { %v2814_v37 = vmax.f32 %v2813_v41, %v2721_v20 }
 0x6a2   :  { %v2638_v62 = vpop.f32.mrf.mxu3 }
 0x6a3   :  { %v2639_v8 = vadd.f32 %v4755_v0, %v2638_v62  ;;  %v2959_v62 = vld [vmem:[%s5154_s11 + $0x38] sm:$0xff] }
 0x6a4   :  { %2980 = vmatpush.msrb.mxu1 %v2959_v62 }
 0x6a5   :  { %v2722_v54 = vmax.f32 %v2639_v8, 0.0  ;;  %v3032_v8 = vld [vmem:[%s5156_s13 + $0x38] sm:$0xff] }
 0x6a6   :  { %3053 = vmatpush.msrb.mxu2 %v3032_v8  ;;  %2981 = vmatpush.msrb.mxu1 %v2958_v60 }
 0x6a7   :  { %v2815_v26 = vmax.f32 %v2814_v37, %v2722_v54 }
 0x6aa   :  { %v2641_v33 = vpop.f32.mrf.mxu3 }
 0x6ab   :  { %v2642_v1 = vadd.f32 %v5002_v63, %v2641_v33  ;;  %v3031_v33 = vld [vmem:[%s5156_s13 + $0x30] sm:$0xff] }
 0x6ac   :  { %3054 = vmatpush.msrb.mxu2 %v3031_v33 }
 0x6ad   :  { %v2723_v28 = vmax.f32 %v2642_v1, 0.0  ;;  %v2957_v1 = vld [vmem:[%s5154_s11 + $0x28] sm:$0xff] }
 0x6ae   :  { %2982 = vmatpush.msrb.mxu1 %v2957_v1 }
 0x6af   :  { %v2816_v59 = vmax.f32 %v2815_v26, %v2723_v28  ;;  %v3030_v28 = vld [vmem:[%s5156_s13 + $0x28] sm:$0xff] }
 0x6b0   :  { %3055 = vmatpush.msrb.mxu2 %v3030_v28 }
 0x6b1   :  { %v2817_v12 = vrot.slane %v2816_v59, 4 }
 0x6b2   :  { %v2644_v49 = vpop.f32.mrf.mxu3 }
 0x6b3   :  { %v2818_v0 = vmax.f32 %v2816_v59, %v2817_v12  ;;  %v2645_v40 = vadd.f32 %v5002_v63, %v2644_v49  ;;  %v2956_v12 = vld [vmem:[%s5154_s11 + $0x20] sm:$0xff] }
 0x6b4   :  { %v3029_v49 = vld [vmem:[%s5156_s13 + $0x20] sm:$0xff]  ;;  %2983 = vmatpush.msrb.mxu1 %v2956_v12 }
 0x6b5   :  { %v2819_v30 = vrot.slane %v2818_v0, 2  ;;  %v2724_v22 = vmax.f32 %v2645_v40, 0.0  ;;  %3056 = vmatpush.msrb.mxu2 %v3029_v49  ;;  %v3379_v40 = vld [vmem:[%s5153_s10] ss:$0 sm:$0xff]  ;;  %s3104_s10 = sshll.u32 %s3425_s2, 4  ;;  %s3105_s10 = int_to_ptr.vmem [resolvable:$true] %s3104_s10 }
 0x6b7   :  { %v2820_v32 = vmax.f32 %v2818_v0, %v2819_v30  ;;  %v2955_v30 = vld [vmem:[%s5154_s11 + $0x18] sm:$0xff]  ;;  %3057 = vmatpush.msrb.mxu2 %v3028_v61 }
 0x6b8   :  { %2984 = vmatpush.msrb.mxu1 %v2955_v30 }
 0x6b9   :  { %v2821_v6 = vrot.slane %v2820_v32, 1 }
 0x6ba   :  { %v2647_v5 = vpop.f32.mrf.mxu3 }
 0x6bb   :  { %v2822_v39 = vmax.f32 %v2820_v32, %v2821_v6  ;;  %v2648_v18 = vadd.f32 %v5002_v63, %v2647_v5 }
 0x6bd   :  { %v5009_v19 = vsel %vm2854_vm8, %v2822_v39, %v2871_v50  ;;  %v2725_v47 = vmax.f32 %v2648_v18, 0.0  ;;  %v3025_v18 = vld [vmem:[%s5156_s13] sm:$0xff] }
 0x6bf   :  { %v2823_v50 = vmax.f32 %v2724_v22, %v2725_v47 }
 0x6c2   :  { %v2650_v10 = vpop.f32.mrf.mxu3 }
 0x6c3   :  { %v2651_v45 = vadd.f32 %v5002_v63, %v2650_v10  ;;  %v2954_v10 = vld [vmem:[%s5154_s11 + $0x10] sm:$0xff] }
 0x6c4   :  { %2985 = vmatpush.msrb.mxu1 %v2954_v10 }
 0x6c5   :  { %v2726_v14 = vmax.f32 %v2651_v45, 0.0  ;;  %v2928_v45 = vpop.f32.mrf.mxu1 }
 0x6c6   :  { %v2929_v46 = vadd.f32 %v3379_v40, %v2928_v45 }
 0x6c7   :  { %v2824_v35 = vmax.f32 %v2823_v50, %v2726_v14 }
 0x6ca   :  { %v2653_v51 = vpop.f32.mrf.mxu3 }
 0x6cb   :  { %v2654_v16 = vadd.f32 %v5002_v63, %v2653_v51  ;;  %v2953_v51 = vld [vmem:[%s5154_s11 + $0x8] sm:$0xff] }
 0x6cc   :  { %2986 = vmatpush.msrb.mxu1 %v2953_v51 }
 0x6cd   :  { %v2727_v2 = vmax.f32 %v2654_v16, 0.0  ;;  %v3380_v16 = vld [vmem:[%s5155_s12] ss:$0 sm:$0xff] }
 0x6cf   :  { %v2825_v11 = vmax.f32 %v2824_v35, %v2727_v2 }
 0x6d2   :  { %v2656_v3 = vpop.f32.mrf.mxu3 }
 0x6d3   :  { %v2657_v21 = vadd.f32 %v5002_v63, %v2656_v3  ;;  %v3027_v3 = vld [vmem:[%s5156_s13 + $0x10] sm:$0xff] }
 0x6d4   :  { %3058 = vmatpush.msrb.mxu2 %v3027_v3 }
 0x6d5   :  { %v2728_v58 = vmax.f32 %v2657_v21, 0.0 }
 0x6d7   :  { %v2826_v41 = vmax.f32 %v2825_v11, %v2728_v58 }
 0x6da   :  { %v2659_v42 = vpop.f32.mrf.mxu3 }
 0x6db   :  { %v2660_v17 = vadd.f32 %v5002_v63, %v2659_v42  ;;  %v3026_v42 = vld [vmem:[%s5156_s13 + $0x8] sm:$0xff] }
 0x6dc   :  { %3059 = vmatpush.msrb.mxu2 %v3026_v42 }
 0x6dd   :  { %v2729_v9 = vmax.f32 %v2660_v17, 0.0 }
 0x6de   :  { %3060 = vmatpush.msrb.mxu2 %v3025_v18 }
 0x6df   :  { %v2827_v20 = vmax.f32 %v2826_v41, %v2729_v9 }
 0x6e2   :  { %v2662_v7 = vpop.f32.mrf.mxu3 }
 0x6e3   :  { %v2663_v53 = vadd.f32 %v5002_v63, %v2662_v7 }
 0x6e5   :  { %v2730_v24 = vmax.f32 %v2663_v53, 0.0 }
 0x6e7   :  { %v2828_v54 = vmax.f32 %v2827_v20, %v2730_v24 }
 0x6ea   :  { %v2665_v48 = vpop.f32.mrf.mxu3 }
 0x6eb   :  { %v2666_v37 = vadd.f32 %v5002_v63, %v2665_v48 }
 0x6ed   :  { %v2731_v26 = vmax.f32 %v2666_v37, 0.0 }
 0x6ef   :  { %v2829_v63 = vmax.f32 %v2828_v54, %v2731_v26 }
 0x6f1   :  { %v2830_v59 = vrot.slane %v2829_v63, 4 }
 0x6f3   :  { %v2831_v0 = vmax.f32 %v2829_v63, %v2830_v59 }
 0x6f5   :  { %v2832_v32 = vrot.slane %v2831_v0, 2 }
 0x6f7   :  { %v2833_v43 = vmax.f32 %v2831_v0, %v2832_v32 }
 0x6f9   :  { %v2834_v6 = vrot.slane %v2833_v43, 1 }
 0x6fb   :  { %v2835_v5 = vmax.f32 %v2833_v43, %v2834_v6 }
 0x6fd   :  { %v2873_v39 = vsel %vm2856_vm9, %v2835_v5, %v5009_v19  ;;  %v2952_v19 = vld [vmem:[%s5154_s11] sm:$0xff] }
 0x6fe   :  { %2947 = vmatmul.f32.vlgmr.msra.gmra.mxu2 %v2873_v39  ;;  %2987 = vmatpush.msrb.mxu1 %v2952_v19 }
 0x706   :  { %3061 = vmatmul.f32.vlgmr.msrb.gmra.mxu2 %v3024_v29 }
 0x781   :  { %v2948_v25 = vpop.f32.mrf.mxu2 }
 0x782   :  { %v2949_v15 = vadd.f32 %v2948_v25, %v2929_v46 }
 0x784   :  { %v2951_v47 = vmax.f32 %v2949_v15, 0.0 }
 0x786   :  { %2988 = vmatmul.f32.vlgmr.msrb.gmra.mxu1 %v2951_v47 }
 0x789   :  { %v3062_v23 = vpop.f32.mrf.mxu2 }
 0x78a   :  { %v3063_v21 = vadd.f32 %v3381_v13, %v3062_v23 }
 0x78c   :  { %v5135_v34 = vmax.f32 %v3063_v21, 0.0 }
 0x78e   :  { %v3066_v56 = vmul.f32 %v5135_v34, %v5135_v34 }
 0x803   :  { %v2989_v38 = vpop.f32.mrf.mxu1 }
 0x804   :  { %v2990_v22 = vadd.f32 %v3380_v16, %v2989_v38 }
 0x806   :  { %v2992_v14 = vmax.f32 %v2990_v22, 0.0 }
 0x808   :  { %v2993_v7 = vmul.f32 %v2992_v14, %v2992_v14 }
 0x80a   :  { %2994 = vadd.xlane.f32.xlu0 %v2993_v7 }
 0x812   :  { %3067 = vadd.xlane.f32.xlu0 %v3066_v56 }
 0x87d   :  { %v2995_v50 = vpop.xlane.xlu0 %2994 }
 0x87e   :  { %3382 = vrsqrt.f32 %v2995_v50  ;;  %vm3003_vm10 = vcmp.eq.f32.partialorder %v2995_v50, inf  ;;  %v3006_v52 = vand.u32 2147483648, %v2995_v50  ;;  %vm3005_vm11 = vcmp.eq.f32.partialorder %v2995_v50, 0.0 }
 0x884   :  { %v3383_v2 = vpop.eup %3382 }
 0x885   :  { %v2997_v17 = vmul.f32 %v3383_v2, %v2995_v50  ;;  %v3068_v31 = vpop.xlane.xlu0 %3067 }
 0x886   :  { %3384 = vrsqrt.f32 %v3068_v31  ;;  %vm3076_vm12 = vcmp.eq.f32.partialorder %v3068_v31, inf  ;;  %v3079_v37 = vand.u32 2147483648, %v3068_v31  ;;  %vm3078_vm13 = vcmp.eq.f32.partialorder %v3068_v31, 0.0 }
 0x887   :  { %v2998_v4 = vmul.f32 %v3383_v2, %v2997_v17 }
 0x889   :  { %v2999_v35 = vmul.f32 0.5, %v2998_v4 }
 0x88b   :  { %v3000_v58 = vsub.f32 1.5, %v2999_v35 }
 0x88c   :  { %v3385_v53 = vpop.eup %3384 }
 0x88d   :  { %v3001_v57 = vmul.f32 %v3383_v2, %v3000_v58  ;;  %v3070_v55 = vmul.f32 %v3385_v53, %v3068_v31 }
 0x88f   :  { %v3002_v11 = vmul.f32 %v3001_v57, %v2995_v50  ;;  %v3071_v9 = vmul.f32 %v3385_v53, %v3070_v55 }
 0x891   :  { %v3004_v36 = vsel %vm3003_vm10, %v2995_v50, %v3002_v11  ;;  %v3072_v41 = vmul.f32 0.5, %v3071_v9 }
 0x892   :  { %v3007_v24 = vsel %vm3005_vm11, %v3006_v52, %v3004_v36 }
 0x893   :  { %v3008_v48 = vmax.f32 %v3007_v24, 1e-12  ;;  %v3073_v44 = vsub.f32 1.5, %v3072_v41 }
 0x895   :  { %3386 = vrcp.f32 %v3008_v48  ;;  %v3074_v27 = vmul.f32 %v3385_v53, %v3073_v44  ;;  %v3020_v63 = vand.u32 2147483648, %v3008_v48  ;;  %v3018_v28 = vand.u32 2147483647, %v3008_v48 }
 0x896   :  { %vm3014_vm15 = vweird.f32 %v3008_v48 }
 0x897   :  { %v3075_v20 = vmul.f32 %v3074_v27, %v3068_v31  ;;  %v3021_v49 = vor.u32 1.1754944e-38, %v3020_v63  ;;  %vm3019_vm1 = vcmp.eq.f32.partialorder %v3018_v28, 8.507059e+37 }
 0x899   :  { %v3077_v62 = vsel %vm3076_vm12, %v3068_v31, %v3075_v20 }
 0x89a   :  { %v3080_v8 = vsel %vm3078_vm13, %v3079_v37, %v3077_v62 }
 0x89b   :  { %v3387_v54 = vpop.eup %3386  ;;  %v3081_v26 = vmax.f32 %v3080_v8, 1e-12 }
 0x89c   :  { %v3010_v60 = vmul.f32 %v3387_v54, %v3008_v48  ;;  %vm3015_vm14 = vweird.f32 %v3387_v54 }
 0x89d   :  { %3388 = vrcp.f32 %v3081_v26  ;;  %vm3016_vm0 = vmor %vm3014_vm15, %vm3015_vm14  ;;  %v3093_v5 = vand.u32 2147483648, %v3081_v26  ;;  %v3091_v10 = vand.u32 2147483647, %v3081_v26  ;;  %vm3087_vm3 = vweird.f32 %v3081_v26 }
 0x89e   :  { %v3011_v33 = vsub.f32 1.0, %v3010_v60 }
 0x89f   :  { %v3094_v51 = vor.u32 1.1754944e-38, %v3093_v5  ;;  %vm3092_vm5 = vcmp.eq.f32.partialorder %v3091_v10, 8.507059e+37 }
 0x8a0   :  { %v3012_v1 = vmul.f32 %v3387_v54, %v3011_v33 }
 0x8a2   :  { %v3013_v59 = vadd.f32 %v3387_v54, %v3012_v1 }
 0x8a3   :  { %v3389_v12 = vpop.eup %3388 }
 0x8a4   :  { %v3017_v0 = vsel %vm3016_vm0, %v3387_v54, %v3013_v59  ;;  %v3083_v30 = vmul.f32 %v3389_v12, %v3081_v26  ;;  %vm3088_vm2 = vweird.f32 %v3389_v12 }
 0x8a5   :  { %v3022_v32 = vsel %vm3019_vm1, %v3021_v49, %v3017_v0  ;;  %vm3089_vm4 = vmor %vm3087_vm3, %vm3088_vm2 }
 0x8a6   :  { %v3023_v43 = vmul.f32 %v3022_v32, %v2992_v14  ;;  %v3084_v6 = vsub.f32 1.0, %v3083_v30 }
 0x8a8   :  { %v3085_v39 = vmul.f32 %v3389_v12, %v3084_v6  ;;  %3098 = vst [vmem:[#allocation2 + $0x8] sm:$0xff] %v3023_v43 }
 0x8aa   :  { %v3086_v61 = vadd.f32 %v3389_v12, %v3085_v39 }
 0x8ac   :  { %v3090_v3 = vsel %vm3089_vm4, %v3389_v12, %v3086_v61 }
 0x8ad   :  { %v3095_v19 = vsel %vm3092_vm5, %v3094_v51, %v3090_v3 }
 0x8ae   :  { %v3096_v42 = vmul.f32 %v3095_v19, %v5135_v34 }
 0x8b0   :  { %3097 = vst [vmem:[#allocation2] sm:$0xff] %v3096_v42 }
 0x8b1   :  { %3109 = dma.vmem_to_hbm [thread:$0]  %s3105_s10, 256, %s3107_s7, [#allocation3]  }
 0x8b2   :  { %3423 = dma.done.wait [#allocation3], 256  }
 0x8b3   :  { %3424 = vsyncadd [#allocation3], 4294967040 }
 0x8b4   :  { %3114 = vsyncpa [#allocation3], 1 }

</bundles_post_ra>
